<compile_context>
chip_gen: v7x
topology: tpu7x:2x2x1
jax: 0.10.0
libtpu: 0.0.40
codegen_flags: <defaults>
</compile_context>

<pallas_src>
import functools
import math

import jax
import jax.numpy as jnp
from jax.experimental import pallas as pl
from jax.experimental.pallas import tpu as pltpu

LANE = 128  # TPU vreg lane width


# --------------------------------------------------------------------------------------
# In-kernel helpers
# --------------------------------------------------------------------------------------
def _masked_layer_norm(r, gamma, beta, *, e_real, eps):
    """LayerNorm over the first e_real lanes of r.
    Robust to arbitrary values in padded lanes (they are masked out of mean/var);
    padded output lanes come out as 0 because gamma/beta are zero-padded."""
    lane = jax.lax.broadcasted_iota(jnp.int32, (1, r.shape[-1]), 1)
    lmask = (lane < e_real).astype(jnp.float32)
    inv_e = 1.0 / float(e_real)
    mu = jnp.sum(r * lmask, axis=-1, keepdims=True) * inv_e
    c = (r - mu) * lmask
    var = jnp.sum(c * c, axis=-1, keepdims=True) * inv_e
    return c * jax.lax.rsqrt(var + eps) * gamma + beta


def _attn_block(x_q, x_kv, wq, bq, wkv, bkv, wo, bo, gamma, beta, *,
                num_heads, head_dim, e_real, e_pad, eps, cdt, approx_recip):
    """One CrossAttention layer call for one batch element:
       LayerNorm( out_proj( MHA(q_src, kv_src, kv_src) ) + q_src ).
    1/sqrt(head_dim) is pre-folded into wq/bq; weights are already in cdt storage."""
    lq = x_q.shape[0]

    # Fused in-projections (key == value -> K|V share one matmul over x_kv).
    q = jnp.dot(x_q.astype(cdt), wq, preferred_element_type=jnp.float32) + bq
    kv = jnp.dot(x_kv.astype(cdt), wkv, preferred_element_type=jnp.float32) + bkv

    # Scores for all heads, stacked on the leading axis, then ONE softmax chain
    # (max / exp / sum / reciprocal) over the whole (H, Lq, Lk) tensor.
    s_heads = []
    for h in range(num_heads):          # static unroll; num_heads is small
        lo = h * head_dim
        q_h = q[:, lo:lo + head_dim].astype(cdt)                 # (Lq, Dh)
        k_h = kv[:, lo:lo + head_dim].astype(cdt)                # (Lk, Dh)
        s_heads.append(jnp.einsum("qd,kd->qk", q_h, k_h,
                                  preferred_element_type=jnp.float32))
    s = jnp.stack(s_heads, axis=0)                               # (H, Lq, Lk) f32
    m = jnp.max(s, axis=-1, keepdims=True)
    p = jnp.exp(s - m)
    denom = jnp.sum(p, axis=-1, keepdims=True)
    p = p * pl.reciprocal(denom, approx=approx_recip)

    # Per-head attention output with the out-projection folded into the head loop so
    # the accumulator / final store stay lane-dense (E_pad wide), no head concat.
    acc = jnp.zeros((lq, e_pad), jnp.float32)
    for h in range(num_heads):
        lo = h * head_dim
        v_h = kv[:, e_pad + lo:e_pad + lo + head_dim].astype(cdt)   # (Lk, Dh)
        o_h = jnp.dot(p[h].astype(cdt), v_h,
                      preferred_element_type=jnp.float32)           # (Lq, Dh)
        acc = acc + jnp.dot(o_h.astype(cdt), wo[lo:lo + head_dim, :],
                            preferred_element_type=jnp.float32)     # (Lq, E_pad)

    attn = acc + bo
    # attention-weight dropout and output dropout are identity in eval mode.
    return _masked_layer_norm(attn + x_q, gamma, beta, e_real=e_real, eps=eps)


# --------------------------------------------------------------------------------------
# Fused whole-forward Pallas kernel (one batch element per grid step)
# --------------------------------------------------------------------------------------
def _fused_forward_kernel(
    x1_ref, x2_ref,
    p1w_ref, p1b_ref, p2w_ref, p2b_ref,
    wq_ref, bq_ref, wkv_ref, bkv_ref, wo_ref, bo_ref, lng_ref, lnb_ref,
    fng_ref, fnb_ref,
    o1_ref, o2_ref, *,
    num_layers, num_heads, head_dim, e_real, e_pad, eps, cdt, approx_recip,
):
    # Input projections (weights pre-transposed / padded / pre-cast to cdt).
    h1 = jnp.dot(x1_ref[0].astype(cdt), p1w_ref[...],
                 preferred_element_type=jnp.float32) + p1b_ref[...]   # (S1, E_pad)
    h2 = jnp.dot(x2_ref[0].astype(cdt), p2w_ref[...],
                 preferred_element_type=jnp.float32) + p2b_ref[...]   # (S2, E_pad)

    attn = functools.partial(
        _attn_block, num_heads=num_heads, head_dim=head_dim, e_real=e_real,
        e_pad=e_pad, eps=eps, cdt=cdt, approx_recip=approx_recip)

    for l in range(num_layers):          # static unroll; weights stay VMEM-resident
        lw = (wq_ref[l], bq_ref[l], wkv_ref[l], bkv_ref[l],
              wo_ref[l], bo_ref[l], lng_ref[l], lnb_ref[l])
        h1 = attn(h1, h2, *lw)           # x1 = layer(x1, x2, x2)
        h2 = attn(h2, h1, *lw)           # x2 = layer(x2, x1, x1)  (uses updated x1)

    o1_ref[0] = _masked_layer_norm(h1, fng_ref[...], fnb_ref[...],
                                   e_real=e_real, eps=eps)
    o2_ref[0] = _masked_layer_norm(h2, fng_ref[...], fnb_ref[...],
                                   e_real=e_real, eps=eps)


# --------------------------------------------------------------------------------------
# Forward pass wrapper
# --------------------------------------------------------------------------------------
@functools.partial(jax.jit, static_argnames=("num_heads", "embed_dim", "fast"))
def cross_attention_transformer(x1, x2, kparams, *, num_heads, embed_dim, fast=True):
    """x1: (S1, B, E1), x2: (S2, B, E2)  (sequence-first like nn.MultiheadAttention).
    Returns (norm(x1'), norm(x2')) shaped (S1, B, E), (S2, B, E)."""
    # Batch-major once; the single fused kernel keeps activations on-chip after that.
    x1 = jnp.transpose(x1, (1, 0, 2))
    x2 = jnp.transpose(x2, (1, 0, 2))
    B, S1, E1 = x1.shape
    _, S2, E2 = x2.shape

    wq_all = kparams["wq_all"]
    num_layers, E_pad, _ = wq_all.shape
    cdt = wq_all.dtype                      # bf16 (fast) or f32 (exact), set in prepare
    head_dim = embed_dim // num_heads

    kern = functools.partial(
        _fused_forward_kernel, num_layers=num_layers, num_heads=num_heads,
        head_dim=head_dim, e_real=embed_dim, e_pad=E_pad, eps=1e-5,
        cdt=cdt, approx_recip=bool(fast))

    const2 = lambda b: (0, 0)
    const3 = lambda b: (0, 0, 0)

    o1, o2 = pl.pallas_call(
        kern,
        out_shape=(jax.ShapeDtypeStruct((B, S1, E_pad), jnp.float32),
                   jax.ShapeDtypeStruct((B, S2, E_pad), jnp.float32)),
        grid=(B,),
        in_specs=[
            pl.BlockSpec((1, S1, E1), lambda b: (b, 0, 0)),            # x1 batch slice
            pl.BlockSpec((1, S2, E2), lambda b: (b, 0, 0)),            # x2 batch slice
            pl.BlockSpec((E1, E_pad), const2),                         # proj_x1 W^T
            pl.BlockSpec((1, E_pad), const2),                          # proj_x1 b
            pl.BlockSpec((E2, E_pad), const2),                         # proj_x2 W^T
            pl.BlockSpec((1, E_pad), const2),                          # proj_x2 b
            pl.BlockSpec((num_layers, E_pad, E_pad), const3),          # Wq^T (scaled)
            pl.BlockSpec((num_layers, 1, E_pad), const3),              # bq  (scaled)
            pl.BlockSpec((num_layers, E_pad, 2 * E_pad), const3),      # [Wk^T | Wv^T]
            pl.BlockSpec((num_layers, 1, 2 * E_pad), const3),          # [bk | bv]
            pl.BlockSpec((num_layers, E_pad, E_pad), const3),          # Wo^T
            pl.BlockSpec((num_layers, 1, E_pad), const3),              # bo
            pl.BlockSpec((num_layers, 1, E_pad), const3),              # layer LN gamma
            pl.BlockSpec((num_layers, 1, E_pad), const3),              # layer LN beta
            pl.BlockSpec((1, E_pad), const2),                          # final LN gamma
            pl.BlockSpec((1, E_pad), const2),                          # final LN beta
        ],
        out_specs=(pl.BlockSpec((1, S1, E_pad), lambda b: (b, 0, 0)),
                   pl.BlockSpec((1, S2, E_pad), lambda b: (b, 0, 0))),
        compiler_params=pltpu.CompilerParams(dimension_semantics=("parallel",)),
    )(x1, x2,
      kparams["proj_x1_wt"], kparams["proj_x1_b"],
      kparams["proj_x2_wt"], kparams["proj_x2_b"],
      kparams["wq_all"], kparams["bq_all"], kparams["wkv_all"], kparams["bkv_all"],
      kparams["wo_all"], kparams["bo_all"], kparams["ln_g_all"], kparams["ln_b_all"],
      kparams["norm_gamma"], kparams["norm_beta"])

    # Drop the lane padding, back to sequence-first.
    o1 = jnp.transpose(o1[..., :embed_dim], (1, 0, 2))
    o2 = jnp.transpose(o2[..., :embed_dim], (1, 0, 2))
    return o1, o2


# --------------------------------------------------------------------------------------
# Parameter prep: transposes / padding / K|V fusion / scale folding / dtype cast,
# all hoisted out of the forward pass and done exactly once.
# --------------------------------------------------------------------------------------
def prepare_params(params, embed_dim, num_heads, *, fast=True):
    E = embed_dim
    E_pad = ((E + LANE - 1) // LANE) * LANE
    wdt = jnp.bfloat16 if fast else jnp.float32
    scale = 1.0 / math.sqrt(E // num_heads)
    L = len(params["layers"])

    def pad2(a, rows, cols):
        out = jnp.zeros((rows, cols), jnp.float32)
        return out.at[: a.shape[0], : a.shape[1]].set(a.astype(jnp.float32))

    def padrow(v, width):
        return jnp.zeros((1, width), jnp.float32).at[0, : v.shape[0]].set(
            v.astype(jnp.float32))

    wq_all = jnp.zeros((L, E_pad, E_pad), jnp.float32)
    bq_all = jnp.zeros((L, 1, E_pad), jnp.float32)
    wkv_all = jnp.zeros((L, E_pad, 2 * E_pad), jnp.float32)
    bkv_all = jnp.zeros((L, 1, 2 * E_pad), jnp.float32)
    wo_all = jnp.zeros((L, E_pad, E_pad), jnp.float32)
    bo_all = jnp.zeros((L, 1, E_pad), jnp.float32)
    lng_all = jnp.zeros((L, 1, E_pad), jnp.float32)
    lnb_all = jnp.zeros((L, 1, E_pad), jnp.float32)

    for l, lp in enumerate(params["layers"]):
        w_in, b_in = lp["in_proj_w"], lp["in_proj_b"]
        wq, wk, wv = w_in[:E], w_in[E:2 * E], w_in[2 * E:]
        bq, bk, bv = b_in[:E], b_in[E:2 * E], b_in[2 * E:]
        # 1/sqrt(head_dim) folded into the query projection.
        wq_all = wq_all.at[l, :E, :E].set(scale * wq.T)
        bq_all = bq_all.at[l, 0, :E].set(scale * bq)
        wkv_all = wkv_all.at[l, :E, :E].set(wk.T).at[l, :E, E_pad:E_pad + E].set(wv.T)
        bkv_all = bkv_all.at[l, 0, :E].set(bk).at[l, 0, E_pad:E_pad + E].set(bv)
        wo_all = wo_all.at[l, :E, :E].set(lp["out_proj_w"].T)
        bo_all = bo_all.at[l, 0, :E].set(lp["out_proj_b"])
        lng_all = lng_all.at[l, 0, :E].set(lp["norm_gamma"])
        lnb_all = lnb_all.at[l, 0, :E].set(lp["norm_beta"])

    return {
        # matmul weights stored in the compute dtype (bf16 fast / f32 exact)
        "proj_x1_wt": pad2(params["proj_x1_w"].T,
                           params["proj_x1_w"].shape[1], E_pad).astype(wdt),
        "proj_x2_wt": pad2(params["proj_x2_w"].T,
                           params["proj_x2_w"].shape[1], E_pad).astype(wdt),
        "wq_all": wq_all.astype(wdt),
        "wkv_all": wkv_all.astype(wdt),
        "wo_all": wo_all.astype(wdt),
        # biases / LN params stay f32
        "proj_x1_b": padrow(params["proj_x1_b"], E_pad),
        "proj_x2_b": padrow(params["proj_x2_b"], E_pad),
        "bq_all": bq_all, "bkv_all": bkv_all, "bo_all": bo_all,
        "ln_g_all": lng_all, "ln_b_all": lnb_all,
        "norm_gamma": padrow(params["norm_gamma"], E_pad),
        "norm_beta": padrow(params["norm_beta"], E_pad),
    }


# --------------------------------------------------------------------------------------
# Pure-JAX f32 reference (exact PyTorch semantics) for correctness checks
# --------------------------------------------------------------------------------------
def _ref_mha(query, key, value, lp, H):
    Lq, B, E = query.shape
    Lk = key.shape[0]
    Dh = E // H
    w_in, b_in = lp["in_proj_w"], lp["in_proj_b"]
    q = query.reshape(Lq * B, E) @ w_in[:E].T + b_in[:E]
    k = key.reshape(Lk * B, E) @ w_in[E:2 * E].T + b_in[E:2 * E]
    v = value.reshape(Lk * B, E) @ w_in[2 * E:].T + b_in[2 * E:]
    q = q.reshape(Lq, B * H, Dh).transpose(1, 0, 2)
    k = k.reshape(Lk, B * H, Dh).transpose(1, 0, 2)
    v = v.reshape(Lk, B * H, Dh).transpose(1, 0, 2)
    s = jnp.einsum("bqd,bkd->bqk", q, k) / math.sqrt(Dh)
    p = jax.nn.softmax(s, axis=-1)
    a = jnp.einsum("bqk,bkd->bqd", p, v)
    a = a.transpose(1, 0, 2).reshape(Lq * B, E)
    return (a @ lp["out_proj_w"].T + lp["out_proj_b"]).reshape(Lq, B, E)


def _ref_ln(x, g, b, eps=1e-5):
    mu = jnp.mean(x, -1, keepdims=True)
    var = jnp.mean((x - mu) ** 2, -1, keepdims=True)
    return (x - mu) * jax.lax.rsqrt(var + eps) * g + b


def _ref_forward(x1, x2, params, H):
    x1 = x1 @ params["proj_x1_w"].T + params["proj_x1_b"]
    x2 = x2 @ params["proj_x2_w"].T + params["proj_x2_b"]
    for lp in params["layers"]:
        x1 = _ref_ln(_ref_mha(x1, x2, x2, lp, H) + x1, lp["norm_gamma"], lp["norm_beta"])
        x2 = _ref_ln(_ref_mha(x2, x1, x1, lp, H) + x2, lp["norm_gamma"], lp["norm_beta"])
    return (_ref_ln(x1, params["norm_gamma"], params["norm_beta"]),
            _ref_ln(x2, params["norm_gamma"], params["norm_beta"]))


# --------------------------------------------------------------------------------------
# Deterministic parameter init (PyTorch layout)
# --------------------------------------------------------------------------------------
def init_params(key, embed_dim, num_layers, embed_dim_x1, embed_dim_x2):
    def w(k, shape, scale=0.1):
        return (scale * jax.random.normal(k, shape)).astype(jnp.float32)

    keys = jax.random.split(key, 4 + num_layers)
    params = {
        "proj_x1_w": w(keys[0], (embed_dim, embed_dim_x1)),
        "proj_x1_b": w(keys[1], (embed_dim,)),
        "proj_x2_w": w(keys[2], (embed_dim, embed_dim_x2)),
        "proj_x2_b": w(keys[3], (embed_dim,)),
        "norm_gamma": jnp.ones((embed_dim,), jnp.float32),
        "norm_beta": jnp.zeros((embed_dim,), jnp.float32),
        "layers": [],
    }
    for l in range(num_layers):
        ks = jax.random.split(keys[4 + l], 4)
        params["layers"].append({
            "in_proj_w": w(ks[0], (3 * embed_dim, embed_dim)),
            "in_proj_b": w(ks[1], (3 * embed_dim,)),
            "out_proj_w": w(ks[2], (embed_dim, embed_dim)),
            "out_proj_b": w(ks[3], (embed_dim,)),
            "norm_gamma": jnp.ones((embed_dim,), jnp.float32),
            "norm_beta": jnp.zeros((embed_dim,), jnp.float32),
        })
    return params


# --------------------------------------------------------------------------------------
if __name__ == "__main__":
    embed_dim, num_heads, ff_dim, num_layers = 32, 4, 64, 2
    embed_dim_x1, embed_dim_x2 = 16, 24
    S1, S2, B = 8, 6, 2

    root = jax.random.PRNGKey(0)
    kp_key, k1, k2 = jax.random.split(root, 3)
    params = init_params(kp_key, embed_dim, num_layers, embed_dim_x1, embed_dim_x2)

    x1 = jax.random.normal(k1, (S1, B, embed_dim_x1), jnp.float32)
    x2 = jax.random.normal(k2, (S2, B, embed_dim_x2), jnp.float32)

    # fast path: resident bf16 weights + approx-reciprocal softmax (f32 accumulation)
    kp_fast = prepare_params(params, embed_dim, num_heads, fast=True)
    out1, out2 = cross_attention_transformer(
        x1, x2, kp_fast, num_heads=num_heads, embed_dim=embed_dim, fast=True)
    jax.block_until_ready((out1, out2))

    # exact path: f32 weights + exact reciprocal (faithful to the PyTorch module numerics)
    kp_exact = prepare_params(params, embed_dim, num_heads, fast=False)
    ex1, ex2 = cross_attention_transformer(
        x1, x2, kp_exact, num_heads=num_heads, embed_dim=embed_dim, fast=False)
    jax.block_until_ready((ex1, ex2))

    ref1, ref2 = _ref_forward(x1, x2, params, num_heads)
    assert out1.shape == (S1, B, embed_dim) and out2.shape == (S2, B, embed_dim)
    # exact path: tight check against the f32 reference
    assert jnp.allclose(ex1, ref1, atol=5e-4, rtol=5e-4)
    assert jnp.allclose(ex2, ref2, atol=5e-4, rtol=5e-4)
    # bf16 fast path: looser check (bf16 weight rounding + approx reciprocal)
    assert jnp.allclose(out1, ref1, atol=5e-2, rtol=5e-2)
    assert jnp.allclose(out2, ref2, atol=5e-2, rtol=5e-2)

    print("KERNEL_OK")
</pallas_src>

<mosaic_0001>
module attributes {stable_mosaic.version = 11 : i64} {
  func.func @_fused_forward_kernel(%arg0: i32, %arg1: memref<1x8x16xf32, #tpu.memory_space<vmem>>, %arg2: memref<1x6x24xf32, #tpu.memory_space<vmem>>, %arg3: memref<16x128xbf16, #tpu.memory_space<vmem>>, %arg4: memref<1x128xf32, #tpu.memory_space<vmem>>, %arg5: memref<24x128xbf16, #tpu.memory_space<vmem>>, %arg6: memref<1x128xf32, #tpu.memory_space<vmem>>, %arg7: memref<2x128x128xbf16, #tpu.memory_space<vmem>>, %arg8: memref<2x1x128xf32, #tpu.memory_space<vmem>>, %arg9: memref<2x128x256xbf16, #tpu.memory_space<vmem>>, %arg10: memref<2x1x256xf32, #tpu.memory_space<vmem>>, %arg11: memref<2x128x128xbf16, #tpu.memory_space<vmem>>, %arg12: memref<2x1x128xf32, #tpu.memory_space<vmem>>, %arg13: memref<2x1x128xf32, #tpu.memory_space<vmem>>, %arg14: memref<2x1x128xf32, #tpu.memory_space<vmem>>, %arg15: memref<1x128xf32, #tpu.memory_space<vmem>>, %arg16: memref<1x128xf32, #tpu.memory_space<vmem>>, %arg17: memref<1x8x128xf32, #tpu.memory_space<vmem>>, %arg18: memref<1x6x128xf32, #tpu.memory_space<vmem>>) attributes {dimension_semantics = [#tpu.dimension_semantics<parallel>], iteration_bounds = array<i64: 2>, scalar_prefetch = 0 : i64, scratch_operands = 0 : i64, tpu.core_type = #tpu.core_type<tc>, window_params = [{transform_indices = @transform_0, window_bounds = array<i64: 1, 8, 16>}, {transform_indices = @transform_1, window_bounds = array<i64: 1, 6, 24>}, {pipeline_mode = #tpu.pipeline_mode<synchronous>, transform_indices = @transform_2, window_bounds = array<i64: 16, 128>}, {pipeline_mode = #tpu.pipeline_mode<synchronous>, transform_indices = @transform_3, window_bounds = array<i64: 1, 128>}, {pipeline_mode = #tpu.pipeline_mode<synchronous>, transform_indices = @transform_4, window_bounds = array<i64: 24, 128>}, {pipeline_mode = #tpu.pipeline_mode<synchronous>, transform_indices = @transform_5, window_bounds = array<i64: 1, 128>}, {pipeline_mode = #tpu.pipeline_mode<synchronous>, transform_indices = @transform_6, window_bounds = array<i64: 2, 128, 128>}, {pipeline_mode = #tpu.pipeline_mode<synchronous>, transform_indices = @transform_7, window_bounds = array<i64: 2, 1, 128>}, {pipeline_mode = #tpu.pipeline_mode<synchronous>, transform_indices = @transform_8, window_bounds = array<i64: 2, 128, 256>}, {pipeline_mode = #tpu.pipeline_mode<synchronous>, transform_indices = @transform_9, window_bounds = array<i64: 2, 1, 256>}, {pipeline_mode = #tpu.pipeline_mode<synchronous>, transform_indices = @transform_10, window_bounds = array<i64: 2, 128, 128>}, {pipeline_mode = #tpu.pipeline_mode<synchronous>, transform_indices = @transform_11, window_bounds = array<i64: 2, 1, 128>}, {pipeline_mode = #tpu.pipeline_mode<synchronous>, transform_indices = @transform_12, window_bounds = array<i64: 2, 1, 128>}, {pipeline_mode = #tpu.pipeline_mode<synchronous>, transform_indices = @transform_13, window_bounds = array<i64: 2, 1, 128>}, {pipeline_mode = #tpu.pipeline_mode<synchronous>, transform_indices = @transform_14, window_bounds = array<i64: 1, 128>}, {pipeline_mode = #tpu.pipeline_mode<synchronous>, transform_indices = @transform_15, window_bounds = array<i64: 1, 128>}, {transform_indices = @transform_16, window_bounds = array<i64: 1, 8, 128>}, {transform_indices = @transform_17, window_bounds = array<i64: 1, 6, 128>}]} {
    %c0 = arith.constant 0 : index
    %c0_0 = arith.constant 0 : index
    %c0_1 = arith.constant 0 : index
    %0 = vector.load %arg1[%c0, %c0_0, %c0_1] : memref<1x8x16xf32, #tpu.memory_space<vmem>>, vector<1x8x16xf32>
    %1 = vector.shape_cast %0 : vector<1x8x16xf32> to vector<8x16xf32>
    %2 = arith.truncf %1 : vector<8x16xf32> to vector<8x16xbf16>
    %c0_2 = arith.constant 0 : index
    %c0_3 = arith.constant 0 : index
    %3 = vector.load %arg3[%c0_2, %c0_3] : memref<16x128xbf16, #tpu.memory_space<vmem>>, vector<16x128xbf16>
    %cst = arith.constant dense<0.000000e+00> : vector<8x128xf32>
    %4 = tpu.matmul %2, %3, %cst {dimension_numbers = #tpu.dot_dimension_numbers<[1], [0], [0], [1], [0, 0, 1, 1], [], []>} : vector<8x16xbf16>, vector<16x128xbf16>, vector<8x128xf32> -> vector<8x128xf32>
    %c0_4 = arith.constant 0 : index
    %c0_5 = arith.constant 0 : index
    %5 = vector.load %arg4[%c0_4, %c0_5] : memref<1x128xf32, #tpu.memory_space<vmem>>, vector<1x128xf32>
    %6 = vector.broadcast %5 : vector<1x128xf32> to vector<8x128xf32>
    %7 = arith.addf %4, %6 : vector<8x128xf32>
    %c0_6 = arith.constant 0 : index
    %c0_7 = arith.constant 0 : index
    %c0_8 = arith.constant 0 : index
    %8 = vector.load %arg2[%c0_6, %c0_7, %c0_8] : memref<1x6x24xf32, #tpu.memory_space<vmem>>, vector<1x6x24xf32>
    %9 = vector.shape_cast %8 : vector<1x6x24xf32> to vector<6x24xf32>
    %10 = arith.truncf %9 : vector<6x24xf32> to vector<6x24xbf16>
    %c0_9 = arith.constant 0 : index
    %c0_10 = arith.constant 0 : index
    %11 = vector.load %arg5[%c0_9, %c0_10] : memref<24x128xbf16, #tpu.memory_space<vmem>>, vector<24x128xbf16>
    %cst_11 = arith.constant dense<0.000000e+00> : vector<6x128xf32>
    %12 = tpu.matmul %10, %11, %cst_11 {dimension_numbers = #tpu.dot_dimension_numbers<[1], [0], [0], [1], [0, 0, 1, 1], [], []>} : vector<6x24xbf16>, vector<24x128xbf16>, vector<6x128xf32> -> vector<6x128xf32>
    %c0_12 = arith.constant 0 : index
    %c0_13 = arith.constant 0 : index
    %13 = vector.load %arg6[%c0_12, %c0_13] : memref<1x128xf32, #tpu.memory_space<vmem>>, vector<1x128xf32>
    %14 = vector.broadcast %13 : vector<1x128xf32> to vector<6x128xf32>
    %15 = arith.addf %12, %14 : vector<6x128xf32>
    %c0_14 = arith.constant 0 : index
    %c0_15 = arith.constant 0 : index
    %c0_16 = arith.constant 0 : index
    %16 = vector.load %arg7[%c0_14, %c0_15, %c0_16] : memref<2x128x128xbf16, #tpu.memory_space<vmem>>, vector<1x128x128xbf16>
    %17 = vector.shape_cast %16 : vector<1x128x128xbf16> to vector<128x128xbf16>
    %c0_17 = arith.constant 0 : index
    %c0_18 = arith.constant 0 : index
    %c0_19 = arith.constant 0 : index
    %18 = vector.load %arg8[%c0_17, %c0_18, %c0_19] : memref<2x1x128xf32, #tpu.memory_space<vmem>>, vector<1x1x128xf32>
    %19 = vector.shape_cast %18 : vector<1x1x128xf32> to vector<1x128xf32>
    %c0_20 = arith.constant 0 : index
    %c0_21 = arith.constant 0 : index
    %c0_22 = arith.constant 0 : index
    %20 = vector.load %arg9[%c0_20, %c0_21, %c0_22] : memref<2x128x256xbf16, #tpu.memory_space<vmem>>, vector<1x128x256xbf16>
    %21 = vector.shape_cast %20 : vector<1x128x256xbf16> to vector<128x256xbf16>
    %c0_23 = arith.constant 0 : index
    %c0_24 = arith.constant 0 : index
    %c0_25 = arith.constant 0 : index
    %22 = vector.load %arg10[%c0_23, %c0_24, %c0_25] : memref<2x1x256xf32, #tpu.memory_space<vmem>>, vector<1x1x256xf32>
    %23 = vector.shape_cast %22 : vector<1x1x256xf32> to vector<1x256xf32>
    %c0_26 = arith.constant 0 : index
    %c0_27 = arith.constant 0 : index
    %c0_28 = arith.constant 0 : index
    %24 = vector.load %arg11[%c0_26, %c0_27, %c0_28] : memref<2x128x128xbf16, #tpu.memory_space<vmem>>, vector<1x128x128xbf16>
    %25 = vector.shape_cast %24 : vector<1x128x128xbf16> to vector<128x128xbf16>
    %c0_29 = arith.constant 0 : index
    %c0_30 = arith.constant 0 : index
    %c0_31 = arith.constant 0 : index
    %26 = vector.load %arg12[%c0_29, %c0_30, %c0_31] : memref<2x1x128xf32, #tpu.memory_space<vmem>>, vector<1x1x128xf32>
    %27 = vector.shape_cast %26 : vector<1x1x128xf32> to vector<1x128xf32>
    %c0_32 = arith.constant 0 : index
    %c0_33 = arith.constant 0 : index
    %c0_34 = arith.constant 0 : index
    %28 = vector.load %arg13[%c0_32, %c0_33, %c0_34] : memref<2x1x128xf32, #tpu.memory_space<vmem>>, vector<1x1x128xf32>
    %29 = vector.shape_cast %28 : vector<1x1x128xf32> to vector<1x128xf32>
    %c0_35 = arith.constant 0 : index
    %c0_36 = arith.constant 0 : index
    %c0_37 = arith.constant 0 : index
    %30 = vector.load %arg14[%c0_35, %c0_36, %c0_37] : memref<2x1x128xf32, #tpu.memory_space<vmem>>, vector<1x1x128xf32>
    %31 = vector.shape_cast %30 : vector<1x1x128xf32> to vector<1x128xf32>
    %32 = arith.truncf %7 : vector<8x128xf32> to vector<8x128xbf16>
    %cst_38 = arith.constant dense<0.000000e+00> : vector<8x128xf32>
    %33 = tpu.matmul %32, %17, %cst_38 {dimension_numbers = #tpu.dot_dimension_numbers<[1], [0], [0], [1], [0, 0, 1, 1], [], []>} : vector<8x128xbf16>, vector<128x128xbf16>, vector<8x128xf32> -> vector<8x128xf32>
    %34 = vector.broadcast %19 : vector<1x128xf32> to vector<8x128xf32>
    %35 = arith.addf %33, %34 : vector<8x128xf32>
    %36 = arith.truncf %15 : vector<6x128xf32> to vector<6x128xbf16>
    %cst_39 = arith.constant dense<0.000000e+00> : vector<6x256xf32>
    %37 = tpu.matmul %36, %21, %cst_39 {dimension_numbers = #tpu.dot_dimension_numbers<[1], [0], [0], [1], [0, 0, 1, 1], [], []>} : vector<6x128xbf16>, vector<128x256xbf16>, vector<6x256xf32> -> vector<6x256xf32>
    %38 = vector.broadcast %23 : vector<1x256xf32> to vector<6x256xf32>
    %39 = arith.addf %37, %38 : vector<6x256xf32>
    %40 = vector.extract_strided_slice %35 {offsets = [0, 0], sizes = [8, 8], strides = [1, 1]} : vector<8x128xf32> to vector<8x8xf32>
    %41 = arith.truncf %40 : vector<8x8xf32> to vector<8x8xbf16>
    %42 = vector.extract_strided_slice %39 {offsets = [0, 0], sizes = [6, 8], strides = [1, 1]} : vector<6x256xf32> to vector<6x8xf32>
    %43 = arith.truncf %42 : vector<6x8xf32> to vector<6x8xbf16>
    "tpu.trace_start"() <{level = 10 : i32, message = "qd,kd->qk"}> : () -> ()
    %cst_40 = arith.constant dense<0.000000e+00> : vector<8x6xf32>
    %44 = tpu.matmul %41, %43, %cst_40 {dimension_numbers = #tpu.dot_dimension_numbers<[1], [1], [0], [0], [0, 0, 1, 0], [], []>} : vector<8x8xbf16>, vector<6x8xbf16>, vector<8x6xf32> -> vector<8x6xf32>
    "tpu.trace_stop"() : () -> ()
    %45 = vector.extract_strided_slice %35 {offsets = [0, 8], sizes = [8, 8], strides = [1, 1]} : vector<8x128xf32> to vector<8x8xf32>
    %46 = arith.truncf %45 : vector<8x8xf32> to vector<8x8xbf16>
    %47 = vector.extract_strided_slice %39 {offsets = [0, 8], sizes = [6, 8], strides = [1, 1]} : vector<6x256xf32> to vector<6x8xf32>
    %48 = arith.truncf %47 : vector<6x8xf32> to vector<6x8xbf16>
    "tpu.trace_start"() <{level = 10 : i32, message = "qd,kd->qk"}> : () -> ()
    %cst_41 = arith.constant dense<0.000000e+00> : vector<8x6xf32>
    %49 = tpu.matmul %46, %48, %cst_41 {dimension_numbers = #tpu.dot_dimension_numbers<[1], [1], [0], [0], [0, 0, 1, 0], [], []>} : vector<8x8xbf16>, vector<6x8xbf16>, vector<8x6xf32> -> vector<8x6xf32>
    "tpu.trace_stop"() : () -> ()
    %50 = vector.extract_strided_slice %35 {offsets = [0, 16], sizes = [8, 8], strides = [1, 1]} : vector<8x128xf32> to vector<8x8xf32>
    %51 = arith.truncf %50 : vector<8x8xf32> to vector<8x8xbf16>
    %52 = vector.extract_strided_slice %39 {offsets = [0, 16], sizes = [6, 8], strides = [1, 1]} : vector<6x256xf32> to vector<6x8xf32>
    %53 = arith.truncf %52 : vector<6x8xf32> to vector<6x8xbf16>
    "tpu.trace_start"() <{level = 10 : i32, message = "qd,kd->qk"}> : () -> ()
    %cst_42 = arith.constant dense<0.000000e+00> : vector<8x6xf32>
    %54 = tpu.matmul %51, %53, %cst_42 {dimension_numbers = #tpu.dot_dimension_numbers<[1], [1], [0], [0], [0, 0, 1, 0], [], []>} : vector<8x8xbf16>, vector<6x8xbf16>, vector<8x6xf32> -> vector<8x6xf32>
    "tpu.trace_stop"() : () -> ()
    %55 = vector.extract_strided_slice %35 {offsets = [0, 24], sizes = [8, 8], strides = [1, 1]} : vector<8x128xf32> to vector<8x8xf32>
    %56 = arith.truncf %55 : vector<8x8xf32> to vector<8x8xbf16>
    %57 = vector.extract_strided_slice %39 {offsets = [0, 24], sizes = [6, 8], strides = [1, 1]} : vector<6x256xf32> to vector<6x8xf32>
    %58 = arith.truncf %57 : vector<6x8xf32> to vector<6x8xbf16>
    "tpu.trace_start"() <{level = 10 : i32, message = "qd,kd->qk"}> : () -> ()
    %cst_43 = arith.constant dense<0.000000e+00> : vector<8x6xf32>
    %59 = tpu.matmul %56, %58, %cst_43 {dimension_numbers = #tpu.dot_dimension_numbers<[1], [1], [0], [0], [0, 0, 1, 0], [], []>} : vector<8x8xbf16>, vector<6x8xbf16>, vector<8x6xf32> -> vector<8x6xf32>
    "tpu.trace_stop"() : () -> ()
    %60 = vector.shape_cast %44 : vector<8x6xf32> to vector<1x8x6xf32>
    %61 = vector.shape_cast %49 : vector<8x6xf32> to vector<1x8x6xf32>
    %62 = vector.shape_cast %54 : vector<8x6xf32> to vector<1x8x6xf32>
    %63 = vector.shape_cast %59 : vector<8x6xf32> to vector<1x8x6xf32>
    %64 = tpu.concatenate %60, %61, %62, %63 in 0 : vector<1x8x6xf32>, vector<1x8x6xf32>, vector<1x8x6xf32>, vector<1x8x6xf32> -> vector<4x8x6xf32>
    %cst_44 = arith.constant dense<0xFF800000> : vector<4x8xf32>
    %65 = vector.multi_reduction <maximumf>, %64, %cst_44 [2] : vector<4x8x6xf32> to vector<4x8xf32>
    %66 = vector.shape_cast %65 : vector<4x8xf32> to vector<4x8x1xf32>
    %67 = vector.broadcast %66 : vector<4x8x1xf32> to vector<4x8x6xf32>
    %68 = arith.subf %64, %67 : vector<4x8x6xf32>
    %69 = math.exp %68 : vector<4x8x6xf32>
    %cst_45 = arith.constant dense<0.000000e+00> : vector<4x8xf32>
    %70 = vector.multi_reduction <add>, %69, %cst_45 [2] : vector<4x8x6xf32> to vector<4x8xf32>
    %71 = vector.shape_cast %70 : vector<4x8xf32> to vector<4x8x1xf32>
    %72 = tpu.reciprocal %71 {approx = true} : vector<4x8x1xf32> -> vector<4x8x1xf32>
    %73 = vector.broadcast %72 : vector<4x8x1xf32> to vector<4x8x6xf32>
    %74 = arith.mulf %69, %73 : vector<4x8x6xf32>
    %cst_46 = arith.constant 0.000000e+00 : f32
    %75 = vector.broadcast %cst_46 : f32 to vector<8x128xf32>
    %76 = vector.extract_strided_slice %39 {offsets = [0, 128], sizes = [6, 8], strides = [1, 1]} : vector<6x256xf32> to vector<6x8xf32>
    %77 = arith.truncf %76 : vector<6x8xf32> to vector<6x8xbf16>
    %78 = vector.extract_strided_slice %74 {offsets = [0, 0, 0], sizes = [1, 8, 6], strides = [1, 1, 1]} : vector<4x8x6xf32> to vector<1x8x6xf32>
    %79 = vector.shape_cast %78 : vector<1x8x6xf32> to vector<8x6xf32>
    %80 = arith.truncf %79 : vector<8x6xf32> to vector<8x6xbf16>
    %cst_47 = arith.constant dense<0.000000e+00> : vector<8x8xf32>
    %81 = tpu.matmul %80, %77, %cst_47 {dimension_numbers = #tpu.dot_dimension_numbers<[1], [0], [0], [1], [0, 0, 1, 1], [], []>} : vector<8x6xbf16>, vector<6x8xbf16>, vector<8x8xf32> -> vector<8x8xf32>
    %82 = arith.truncf %81 : vector<8x8xf32> to vector<8x8xbf16>
    %83 = vector.extract_strided_slice %25 {offsets = [0, 0], sizes = [8, 128], strides = [1, 1]} : vector<128x128xbf16> to vector<8x128xbf16>
    %cst_48 = arith.constant dense<0.000000e+00> : vector<8x128xf32>
    %84 = tpu.matmul %82, %83, %cst_48 {dimension_numbers = #tpu.dot_dimension_numbers<[1], [0], [0], [1], [0, 0, 1, 1], [], []>} : vector<8x8xbf16>, vector<8x128xbf16>, vector<8x128xf32> -> vector<8x128xf32>
    %85 = arith.addf %75, %84 : vector<8x128xf32>
    %86 = vector.extract_strided_slice %39 {offsets = [0, 136], sizes = [6, 8], strides = [1, 1]} : vector<6x256xf32> to vector<6x8xf32>
    %87 = arith.truncf %86 : vector<6x8xf32> to vector<6x8xbf16>
    %88 = vector.extract_strided_slice %74 {offsets = [1, 0, 0], sizes = [1, 8, 6], strides = [1, 1, 1]} : vector<4x8x6xf32> to vector<1x8x6xf32>
    %89 = vector.shape_cast %88 : vector<1x8x6xf32> to vector<8x6xf32>
    %90 = arith.truncf %89 : vector<8x6xf32> to vector<8x6xbf16>
    %cst_49 = arith.constant dense<0.000000e+00> : vector<8x8xf32>
    %91 = tpu.matmul %90, %87, %cst_49 {dimension_numbers = #tpu.dot_dimension_numbers<[1], [0], [0], [1], [0, 0, 1, 1], [], []>} : vector<8x6xbf16>, vector<6x8xbf16>, vector<8x8xf32> -> vector<8x8xf32>
    %92 = arith.truncf %91 : vector<8x8xf32> to vector<8x8xbf16>
    %93 = vector.extract_strided_slice %25 {offsets = [8, 0], sizes = [8, 128], strides = [1, 1]} : vector<128x128xbf16> to vector<8x128xbf16>
    %cst_50 = arith.constant dense<0.000000e+00> : vector<8x128xf32>
    %94 = tpu.matmul %92, %93, %cst_50 {dimension_numbers = #tpu.dot_dimension_numbers<[1], [0], [0], [1], [0, 0, 1, 1], [], []>} : vector<8x8xbf16>, vector<8x128xbf16>, vector<8x128xf32> -> vector<8x128xf32>
    %95 = arith.addf %85, %94 : vector<8x128xf32>
    %96 = vector.extract_strided_slice %39 {offsets = [0, 144], sizes = [6, 8], strides = [1, 1]} : vector<6x256xf32> to vector<6x8xf32>
    %97 = arith.truncf %96 : vector<6x8xf32> to vector<6x8xbf16>
    %98 = vector.extract_strided_slice %74 {offsets = [2, 0, 0], sizes = [1, 8, 6], strides = [1, 1, 1]} : vector<4x8x6xf32> to vector<1x8x6xf32>
    %99 = vector.shape_cast %98 : vector<1x8x6xf32> to vector<8x6xf32>
    %100 = arith.truncf %99 : vector<8x6xf32> to vector<8x6xbf16>
    %cst_51 = arith.constant dense<0.000000e+00> : vector<8x8xf32>
    %101 = tpu.matmul %100, %97, %cst_51 {dimension_numbers = #tpu.dot_dimension_numbers<[1], [0], [0], [1], [0, 0, 1, 1], [], []>} : vector<8x6xbf16>, vector<6x8xbf16>, vector<8x8xf32> -> vector<8x8xf32>
    %102 = arith.truncf %101 : vector<8x8xf32> to vector<8x8xbf16>
    %103 = vector.extract_strided_slice %25 {offsets = [16, 0], sizes = [8, 128], strides = [1, 1]} : vector<128x128xbf16> to vector<8x128xbf16>
    %cst_52 = arith.constant dense<0.000000e+00> : vector<8x128xf32>
    %104 = tpu.matmul %102, %103, %cst_52 {dimension_numbers = #tpu.dot_dimension_numbers<[1], [0], [0], [1], [0, 0, 1, 1], [], []>} : vector<8x8xbf16>, vector<8x128xbf16>, vector<8x128xf32> -> vector<8x128xf32>
    %105 = arith.addf %95, %104 : vector<8x128xf32>
    %106 = vector.extract_strided_slice %39 {offsets = [0, 152], sizes = [6, 8], strides = [1, 1]} : vector<6x256xf32> to vector<6x8xf32>
    %107 = arith.truncf %106 : vector<6x8xf32> to vector<6x8xbf16>
    %108 = vector.extract_strided_slice %74 {offsets = [3, 0, 0], sizes = [1, 8, 6], strides = [1, 1, 1]} : vector<4x8x6xf32> to vector<1x8x6xf32>
    %109 = vector.shape_cast %108 : vector<1x8x6xf32> to vector<8x6xf32>
    %110 = arith.truncf %109 : vector<8x6xf32> to vector<8x6xbf16>
    %cst_53 = arith.constant dense<0.000000e+00> : vector<8x8xf32>
    %111 = tpu.matmul %110, %107, %cst_53 {dimension_numbers = #tpu.dot_dimension_numbers<[1], [0], [0], [1], [0, 0, 1, 1], [], []>} : vector<8x6xbf16>, vector<6x8xbf16>, vector<8x8xf32> -> vector<8x8xf32>
    %112 = arith.truncf %111 : vector<8x8xf32> to vector<8x8xbf16>
    %113 = vector.extract_strided_slice %25 {offsets = [24, 0], sizes = [8, 128], strides = [1, 1]} : vector<128x128xbf16> to vector<8x128xbf16>
    %cst_54 = arith.constant dense<0.000000e+00> : vector<8x128xf32>
    %114 = tpu.matmul %112, %113, %cst_54 {dimension_numbers = #tpu.dot_dimension_numbers<[1], [0], [0], [1], [0, 0, 1, 1], [], []>} : vector<8x8xbf16>, vector<8x128xbf16>, vector<8x128xf32> -> vector<8x128xf32>
    %115 = arith.addf %105, %114 : vector<8x128xf32>
    %116 = vector.broadcast %27 : vector<1x128xf32> to vector<8x128xf32>
    %117 = arith.addf %115, %116 : vector<8x128xf32>
    %118 = arith.addf %117, %7 : vector<8x128xf32>
    %119 = tpu.iota {dimensions = array<i32: 1>} : vector<1x128xi32>
    %c32_i32 = arith.constant 32 : i32
    %120 = vector.broadcast %c32_i32 : i32 to vector<1x128xi32>
    %121 = arith.cmpi slt, %119, %120 : vector<1x128xi32>
    %122 = arith.extui %121 : vector<1x128xi1> to vector<1x128xi32>
    %123 = arith.sitofp %122 : vector<1x128xi32> to vector<1x128xf32>
    %124 = vector.broadcast %123 : vector<1x128xf32> to vector<8x128xf32>
    %125 = arith.mulf %118, %124 : vector<8x128xf32>
    %cst_55 = arith.constant dense<0.000000e+00> : vector<8xf32>
    %126 = vector.multi_reduction <add>, %125, %cst_55 [1] : vector<8x128xf32> to vector<8xf32>
    %127 = vector.shape_cast %126 : vector<8xf32> to vector<8x1xf32>
    %cst_56 = arith.constant 3.125000e-02 : f32
    %128 = vector.broadcast %cst_56 : f32 to vector<8x1xf32>
    %129 = arith.mulf %127, %128 : vector<8x1xf32>
    %130 = vector.broadcast %129 : vector<8x1xf32> to vector<8x128xf32>
    %131 = arith.subf %118, %130 : vector<8x128xf32>
    %132 = vector.broadcast %123 : vector<1x128xf32> to vector<8x128xf32>
    %133 = arith.mulf %131, %132 : vector<8x128xf32>
    %134 = arith.mulf %133, %133 : vector<8x128xf32>
    %cst_57 = arith.constant dense<0.000000e+00> : vector<8xf32>
    %135 = vector.multi_reduction <add>, %134, %cst_57 [1] : vector<8x128xf32> to vector<8xf32>
    %136 = vector.shape_cast %135 : vector<8xf32> to vector<8x1xf32>
    %cst_58 = arith.constant 3.125000e-02 : f32
    %137 = vector.broadcast %cst_58 : f32 to vector<8x1xf32>
    %138 = arith.mulf %136, %137 : vector<8x1xf32>
    %cst_59 = arith.constant 9.99999974E-6 : f32
    %139 = vector.broadcast %cst_59 : f32 to vector<8x1xf32>
    %140 = arith.addf %138, %139 : vector<8x1xf32>
    %141 = math.rsqrt %140 : vector<8x1xf32>
    %142 = vector.broadcast %141 : vector<8x1xf32> to vector<8x128xf32>
    %143 = arith.mulf %133, %142 : vector<8x128xf32>
    %144 = vector.broadcast %29 : vector<1x128xf32> to vector<8x128xf32>
    %145 = arith.mulf %143, %144 : vector<8x128xf32>
    %146 = vector.broadcast %31 : vector<1x128xf32> to vector<8x128xf32>
    %147 = arith.addf %145, %146 : vector<8x128xf32>
    %148 = arith.truncf %15 : vector<6x128xf32> to vector<6x128xbf16>
    %cst_60 = arith.constant dense<0.000000e+00> : vector<6x128xf32>
    %149 = tpu.matmul %148, %17, %cst_60 {dimension_numbers = #tpu.dot_dimension_numbers<[1], [0], [0], [1], [0, 0, 1, 1], [], []>} : vector<6x128xbf16>, vector<128x128xbf16>, vector<6x128xf32> -> vector<6x128xf32>
    %150 = vector.broadcast %19 : vector<1x128xf32> to vector<6x128xf32>
    %151 = arith.addf %149, %150 : vector<6x128xf32>
    %152 = arith.truncf %147 : vector<8x128xf32> to vector<8x128xbf16>
    %cst_61 = arith.constant dense<0.000000e+00> : vector<8x256xf32>
    %153 = tpu.matmul %152, %21, %cst_61 {dimension_numbers = #tpu.dot_dimension_numbers<[1], [0], [0], [1], [0, 0, 1, 1], [], []>} : vector<8x128xbf16>, vector<128x256xbf16>, vector<8x256xf32> -> vector<8x256xf32>
    %154 = vector.broadcast %23 : vector<1x256xf32> to vector<8x256xf32>
    %155 = arith.addf %153, %154 : vector<8x256xf32>
    %156 = vector.extract_strided_slice %151 {offsets = [0, 0], sizes = [6, 8], strides = [1, 1]} : vector<6x128xf32> to vector<6x8xf32>
    %157 = arith.truncf %156 : vector<6x8xf32> to vector<6x8xbf16>
    %158 = vector.extract_strided_slice %155 {offsets = [0, 0], sizes = [8, 8], strides = [1, 1]} : vector<8x256xf32> to vector<8x8xf32>
    %159 = arith.truncf %158 : vector<8x8xf32> to vector<8x8xbf16>
    "tpu.trace_start"() <{level = 10 : i32, message = "qd,kd->qk"}> : () -> ()
    %cst_62 = arith.constant dense<0.000000e+00> : vector<6x8xf32>
    %160 = tpu.matmul %157, %159, %cst_62 {dimension_numbers = #tpu.dot_dimension_numbers<[1], [1], [0], [0], [0, 0, 1, 0], [], []>} : vector<6x8xbf16>, vector<8x8xbf16>, vector<6x8xf32> -> vector<6x8xf32>
    "tpu.trace_stop"() : () -> ()
    %161 = vector.extract_strided_slice %151 {offsets = [0, 8], sizes = [6, 8], strides = [1, 1]} : vector<6x128xf32> to vector<6x8xf32>
    %162 = arith.truncf %161 : vector<6x8xf32> to vector<6x8xbf16>
    %163 = vector.extract_strided_slice %155 {offsets = [0, 8], sizes = [8, 8], strides = [1, 1]} : vector<8x256xf32> to vector<8x8xf32>
    %164 = arith.truncf %163 : vector<8x8xf32> to vector<8x8xbf16>
    "tpu.trace_start"() <{level = 10 : i32, message = "qd,kd->qk"}> : () -> ()
    %cst_63 = arith.constant dense<0.000000e+00> : vector<6x8xf32>
    %165 = tpu.matmul %162, %164, %cst_63 {dimension_numbers = #tpu.dot_dimension_numbers<[1], [1], [0], [0], [0, 0, 1, 0], [], []>} : vector<6x8xbf16>, vector<8x8xbf16>, vector<6x8xf32> -> vector<6x8xf32>
    "tpu.trace_stop"() : () -> ()
    %166 = vector.extract_strided_slice %151 {offsets = [0, 16], sizes = [6, 8], strides = [1, 1]} : vector<6x128xf32> to vector<6x8xf32>
    %167 = arith.truncf %166 : vector<6x8xf32> to vector<6x8xbf16>
    %168 = vector.extract_strided_slice %155 {offsets = [0, 16], sizes = [8, 8], strides = [1, 1]} : vector<8x256xf32> to vector<8x8xf32>
    %169 = arith.truncf %168 : vector<8x8xf32> to vector<8x8xbf16>
    "tpu.trace_start"() <{level = 10 : i32, message = "qd,kd->qk"}> : () -> ()
    %cst_64 = arith.constant dense<0.000000e+00> : vector<6x8xf32>
    %170 = tpu.matmul %167, %169, %cst_64 {dimension_numbers = #tpu.dot_dimension_numbers<[1], [1], [0], [0], [0, 0, 1, 0], [], []>} : vector<6x8xbf16>, vector<8x8xbf16>, vector<6x8xf32> -> vector<6x8xf32>
    "tpu.trace_stop"() : () -> ()
    %171 = vector.extract_strided_slice %151 {offsets = [0, 24], sizes = [6, 8], strides = [1, 1]} : vector<6x128xf32> to vector<6x8xf32>
    %172 = arith.truncf %171 : vector<6x8xf32> to vector<6x8xbf16>
    %173 = vector.extract_strided_slice %155 {offsets = [0, 24], sizes = [8, 8], strides = [1, 1]} : vector<8x256xf32> to vector<8x8xf32>
    %174 = arith.truncf %173 : vector<8x8xf32> to vector<8x8xbf16>
    "tpu.trace_start"() <{level = 10 : i32, message = "qd,kd->qk"}> : () -> ()
    %cst_65 = arith.constant dense<0.000000e+00> : vector<6x8xf32>
    %175 = tpu.matmul %172, %174, %cst_65 {dimension_numbers = #tpu.dot_dimension_numbers<[1], [1], [0], [0], [0, 0, 1, 0], [], []>} : vector<6x8xbf16>, vector<8x8xbf16>, vector<6x8xf32> -> vector<6x8xf32>
    "tpu.trace_stop"() : () -> ()
    %176 = vector.shape_cast %160 : vector<6x8xf32> to vector<1x6x8xf32>
    %177 = vector.shape_cast %165 : vector<6x8xf32> to vector<1x6x8xf32>
    %178 = vector.shape_cast %170 : vector<6x8xf32> to vector<1x6x8xf32>
    %179 = vector.shape_cast %175 : vector<6x8xf32> to vector<1x6x8xf32>
    %180 = tpu.concatenate %176, %177, %178, %179 in 0 : vector<1x6x8xf32>, vector<1x6x8xf32>, vector<1x6x8xf32>, vector<1x6x8xf32> -> vector<4x6x8xf32>
    %cst_66 = arith.constant dense<0xFF800000> : vector<4x6xf32>
    %181 = vector.multi_reduction <maximumf>, %180, %cst_66 [2] : vector<4x6x8xf32> to vector<4x6xf32>
    %182 = vector.shape_cast %181 : vector<4x6xf32> to vector<4x6x1xf32>
    %183 = vector.broadcast %182 : vector<4x6x1xf32> to vector<4x6x8xf32>
    %184 = arith.subf %180, %183 : vector<4x6x8xf32>
    %185 = math.exp %184 : vector<4x6x8xf32>
    %cst_67 = arith.constant dense<0.000000e+00> : vector<4x6xf32>
    %186 = vector.multi_reduction <add>, %185, %cst_67 [2] : vector<4x6x8xf32> to vector<4x6xf32>
    %187 = vector.shape_cast %186 : vector<4x6xf32> to vector<4x6x1xf32>
    %188 = tpu.reciprocal %187 {approx = true} : vector<4x6x1xf32> -> vector<4x6x1xf32>
    %189 = vector.broadcast %188 : vector<4x6x1xf32> to vector<4x6x8xf32>
    %190 = arith.mulf %185, %189 : vector<4x6x8xf32>
    %cst_68 = arith.constant 0.000000e+00 : f32
    %191 = vector.broadcast %cst_68 : f32 to vector<6x128xf32>
    %192 = vector.extract_strided_slice %155 {offsets = [0, 128], sizes = [8, 8], strides = [1, 1]} : vector<8x256xf32> to vector<8x8xf32>
    %193 = arith.truncf %192 : vector<8x8xf32> to vector<8x8xbf16>
    %194 = vector.extract_strided_slice %190 {offsets = [0, 0, 0], sizes = [1, 6, 8], strides = [1, 1, 1]} : vector<4x6x8xf32> to vector<1x6x8xf32>
    %195 = vector.shape_cast %194 : vector<1x6x8xf32> to vector<6x8xf32>
    %196 = arith.truncf %195 : vector<6x8xf32> to vector<6x8xbf16>
    %cst_69 = arith.constant dense<0.000000e+00> : vector<6x8xf32>
    %197 = tpu.matmul %196, %193, %cst_69 {dimension_numbers = #tpu.dot_dimension_numbers<[1], [0], [0], [1], [0, 0, 1, 1], [], []>} : vector<6x8xbf16>, vector<8x8xbf16>, vector<6x8xf32> -> vector<6x8xf32>
    %198 = arith.truncf %197 : vector<6x8xf32> to vector<6x8xbf16>
    %199 = vector.extract_strided_slice %25 {offsets = [0, 0], sizes = [8, 128], strides = [1, 1]} : vector<128x128xbf16> to vector<8x128xbf16>
    %cst_70 = arith.constant dense<0.000000e+00> : vector<6x128xf32>
    %200 = tpu.matmul %198, %199, %cst_70 {dimension_numbers = #tpu.dot_dimension_numbers<[1], [0], [0], [1], [0, 0, 1, 1], [], []>} : vector<6x8xbf16>, vector<8x128xbf16>, vector<6x128xf32> -> vector<6x128xf32>
    %201 = arith.addf %191, %200 : vector<6x128xf32>
    %202 = vector.extract_strided_slice %155 {offsets = [0, 136], sizes = [8, 8], strides = [1, 1]} : vector<8x256xf32> to vector<8x8xf32>
    %203 = arith.truncf %202 : vector<8x8xf32> to vector<8x8xbf16>
    %204 = vector.extract_strided_slice %190 {offsets = [1, 0, 0], sizes = [1, 6, 8], strides = [1, 1, 1]} : vector<4x6x8xf32> to vector<1x6x8xf32>
    %205 = vector.shape_cast %204 : vector<1x6x8xf32> to vector<6x8xf32>
    %206 = arith.truncf %205 : vector<6x8xf32> to vector<6x8xbf16>
    %cst_71 = arith.constant dense<0.000000e+00> : vector<6x8xf32>
    %207 = tpu.matmul %206, %203, %cst_71 {dimension_numbers = #tpu.dot_dimension_numbers<[1], [0], [0], [1], [0, 0, 1, 1], [], []>} : vector<6x8xbf16>, vector<8x8xbf16>, vector<6x8xf32> -> vector<6x8xf32>
    %208 = arith.truncf %207 : vector<6x8xf32> to vector<6x8xbf16>
    %209 = vector.extract_strided_slice %25 {offsets = [8, 0], sizes = [8, 128], strides = [1, 1]} : vector<128x128xbf16> to vector<8x128xbf16>
    %cst_72 = arith.constant dense<0.000000e+00> : vector<6x128xf32>
    %210 = tpu.matmul %208, %209, %cst_72 {dimension_numbers = #tpu.dot_dimension_numbers<[1], [0], [0], [1], [0, 0, 1, 1], [], []>} : vector<6x8xbf16>, vector<8x128xbf16>, vector<6x128xf32> -> vector<6x128xf32>
    %211 = arith.addf %201, %210 : vector<6x128xf32>
    %212 = vector.extract_strided_slice %155 {offsets = [0, 144], sizes = [8, 8], strides = [1, 1]} : vector<8x256xf32> to vector<8x8xf32>
    %213 = arith.truncf %212 : vector<8x8xf32> to vector<8x8xbf16>
    %214 = vector.extract_strided_slice %190 {offsets = [2, 0, 0], sizes = [1, 6, 8], strides = [1, 1, 1]} : vector<4x6x8xf32> to vector<1x6x8xf32>
    %215 = vector.shape_cast %214 : vector<1x6x8xf32> to vector<6x8xf32>
    %216 = arith.truncf %215 : vector<6x8xf32> to vector<6x8xbf16>
    %cst_73 = arith.constant dense<0.000000e+00> : vector<6x8xf32>
    %217 = tpu.matmul %216, %213, %cst_73 {dimension_numbers = #tpu.dot_dimension_numbers<[1], [0], [0], [1], [0, 0, 1, 1], [], []>} : vector<6x8xbf16>, vector<8x8xbf16>, vector<6x8xf32> -> vector<6x8xf32>
    %218 = arith.truncf %217 : vector<6x8xf32> to vector<6x8xbf16>
    %219 = vector.extract_strided_slice %25 {offsets = [16, 0], sizes = [8, 128], strides = [1, 1]} : vector<128x128xbf16> to vector<8x128xbf16>
    %cst_74 = arith.constant dense<0.000000e+00> : vector<6x128xf32>
    %220 = tpu.matmul %218, %219, %cst_74 {dimension_numbers = #tpu.dot_dimension_numbers<[1], [0], [0], [1], [0, 0, 1, 1], [], []>} : vector<6x8xbf16>, vector<8x128xbf16>, vector<6x128xf32> -> vector<6x128xf32>
    %221 = arith.addf %211, %220 : vector<6x128xf32>
    %222 = vector.extract_strided_slice %155 {offsets = [0, 152], sizes = [8, 8], strides = [1, 1]} : vector<8x256xf32> to vector<8x8xf32>
    %223 = arith.truncf %222 : vector<8x8xf32> to vector<8x8xbf16>
    %224 = vector.extract_strided_slice %190 {offsets = [3, 0, 0], sizes = [1, 6, 8], strides = [1, 1, 1]} : vector<4x6x8xf32> to vector<1x6x8xf32>
    %225 = vector.shape_cast %224 : vector<1x6x8xf32> to vector<6x8xf32>
    %226 = arith.truncf %225 : vector<6x8xf32> to vector<6x8xbf16>
    %cst_75 = arith.constant dense<0.000000e+00> : vector<6x8xf32>
    %227 = tpu.matmul %226, %223, %cst_75 {dimension_numbers = #tpu.dot_dimension_numbers<[1], [0], [0], [1], [0, 0, 1, 1], [], []>} : vector<6x8xbf16>, vector<8x8xbf16>, vector<6x8xf32> -> vector<6x8xf32>
    %228 = arith.truncf %227 : vector<6x8xf32> to vector<6x8xbf16>
    %229 = vector.extract_strided_slice %25 {offsets = [24, 0], sizes = [8, 128], strides = [1, 1]} : vector<128x128xbf16> to vector<8x128xbf16>
    %cst_76 = arith.constant dense<0.000000e+00> : vector<6x128xf32>
    %230 = tpu.matmul %228, %229, %cst_76 {dimension_numbers = #tpu.dot_dimension_numbers<[1], [0], [0], [1], [0, 0, 1, 1], [], []>} : vector<6x8xbf16>, vector<8x128xbf16>, vector<6x128xf32> -> vector<6x128xf32>
    %231 = arith.addf %221, %230 : vector<6x128xf32>
    %232 = vector.broadcast %27 : vector<1x128xf32> to vector<6x128xf32>
    %233 = arith.addf %231, %232 : vector<6x128xf32>
    %234 = arith.addf %233, %15 : vector<6x128xf32>
    %235 = tpu.iota {dimensions = array<i32: 1>} : vector<1x128xi32>
    %c32_i32_77 = arith.constant 32 : i32
    %236 = vector.broadcast %c32_i32_77 : i32 to vector<1x128xi32>
    %237 = arith.cmpi slt, %235, %236 : vector<1x128xi32>
    %238 = arith.extui %237 : vector<1x128xi1> to vector<1x128xi32>
    %239 = arith.sitofp %238 : vector<1x128xi32> to vector<1x128xf32>
    %240 = vector.broadcast %239 : vector<1x128xf32> to vector<6x128xf32>
    %241 = arith.mulf %234, %240 : vector<6x128xf32>
    %cst_78 = arith.constant dense<0.000000e+00> : vector<6xf32>
    %242 = vector.multi_reduction <add>, %241, %cst_78 [1] : vector<6x128xf32> to vector<6xf32>
    %243 = vector.shape_cast %242 : vector<6xf32> to vector<6x1xf32>
    %cst_79 = arith.constant 3.125000e-02 : f32
    %244 = vector.broadcast %cst_79 : f32 to vector<6x1xf32>
    %245 = arith.mulf %243, %244 : vector<6x1xf32>
    %246 = vector.broadcast %245 : vector<6x1xf32> to vector<6x128xf32>
    %247 = arith.subf %234, %246 : vector<6x128xf32>
    %248 = vector.broadcast %239 : vector<1x128xf32> to vector<6x128xf32>
    %249 = arith.mulf %247, %248 : vector<6x128xf32>
    %250 = arith.mulf %249, %249 : vector<6x128xf32>
    %cst_80 = arith.constant dense<0.000000e+00> : vector<6xf32>
    %251 = vector.multi_reduction <add>, %250, %cst_80 [1] : vector<6x128xf32> to vector<6xf32>
    %252 = vector.shape_cast %251 : vector<6xf32> to vector<6x1xf32>
    %cst_81 = arith.constant 3.125000e-02 : f32
    %253 = vector.broadcast %cst_81 : f32 to vector<6x1xf32>
    %254 = arith.mulf %252, %253 : vector<6x1xf32>
    %cst_82 = arith.constant 9.99999974E-6 : f32
    %255 = vector.broadcast %cst_82 : f32 to vector<6x1xf32>
    %256 = arith.addf %254, %255 : vector<6x1xf32>
    %257 = math.rsqrt %256 : vector<6x1xf32>
    %258 = vector.broadcast %257 : vector<6x1xf32> to vector<6x128xf32>
    %259 = arith.mulf %249, %258 : vector<6x128xf32>
    %260 = vector.broadcast %29 : vector<1x128xf32> to vector<6x128xf32>
    %261 = arith.mulf %259, %260 : vector<6x128xf32>
    %262 = vector.broadcast %31 : vector<1x128xf32> to vector<6x128xf32>
    %263 = arith.addf %261, %262 : vector<6x128xf32>
    %c1 = arith.constant 1 : index
    %c0_83 = arith.constant 0 : index
    %c0_84 = arith.constant 0 : index
    %264 = vector.load %arg7[%c1, %c0_83, %c0_84] : memref<2x128x128xbf16, #tpu.memory_space<vmem>>, vector<1x128x128xbf16>
    %265 = vector.shape_cast %264 : vector<1x128x128xbf16> to vector<128x128xbf16>
    %c1_85 = arith.constant 1 : index
    %c0_86 = arith.constant 0 : index
    %c0_87 = arith.constant 0 : index
    %266 = vector.load %arg8[%c1_85, %c0_86, %c0_87] : memref<2x1x128xf32, #tpu.memory_space<vmem>>, vector<1x1x128xf32>
    %267 = vector.shape_cast %266 : vector<1x1x128xf32> to vector<1x128xf32>
    %c1_88 = arith.constant 1 : index
    %c0_89 = arith.constant 0 : index
    %c0_90 = arith.constant 0 : index
    %268 = vector.load %arg9[%c1_88, %c0_89, %c0_90] : memref<2x128x256xbf16, #tpu.memory_space<vmem>>, vector<1x128x256xbf16>
    %269 = vector.shape_cast %268 : vector<1x128x256xbf16> to vector<128x256xbf16>
    %c1_91 = arith.constant 1 : index
    %c0_92 = arith.constant 0 : index
    %c0_93 = arith.constant 0 : index
    %270 = vector.load %arg10[%c1_91, %c0_92, %c0_93] : memref<2x1x256xf32, #tpu.memory_space<vmem>>, vector<1x1x256xf32>
    %271 = vector.shape_cast %270 : vector<1x1x256xf32> to vector<1x256xf32>
    %c1_94 = arith.constant 1 : index
    %c0_95 = arith.constant 0 : index
    %c0_96 = arith.constant 0 : index
    %272 = vector.load %arg11[%c1_94, %c0_95, %c0_96] : memref<2x128x128xbf16, #tpu.memory_space<vmem>>, vector<1x128x128xbf16>
    %273 = vector.shape_cast %272 : vector<1x128x128xbf16> to vector<128x128xbf16>
    %c1_97 = arith.constant 1 : index
    %c0_98 = arith.constant 0 : index
    %c0_99 = arith.constant 0 : index
    %274 = vector.load %arg12[%c1_97, %c0_98, %c0_99] : memref<2x1x128xf32, #tpu.memory_space<vmem>>, vector<1x1x128xf32>
    %275 = vector.shape_cast %274 : vector<1x1x128xf32> to vector<1x128xf32>
    %c1_100 = arith.constant 1 : index
    %c0_101 = arith.constant 0 : index
    %c0_102 = arith.constant 0 : index
    %276 = vector.load %arg13[%c1_100, %c0_101, %c0_102] : memref<2x1x128xf32, #tpu.memory_space<vmem>>, vector<1x1x128xf32>
    %277 = vector.shape_cast %276 : vector<1x1x128xf32> to vector<1x128xf32>
    %c1_103 = arith.constant 1 : index
    %c0_104 = arith.constant 0 : index
    %c0_105 = arith.constant 0 : index
    %278 = vector.load %arg14[%c1_103, %c0_104, %c0_105] : memref<2x1x128xf32, #tpu.memory_space<vmem>>, vector<1x1x128xf32>
    %279 = vector.shape_cast %278 : vector<1x1x128xf32> to vector<1x128xf32>
    %280 = arith.truncf %147 : vector<8x128xf32> to vector<8x128xbf16>
    %cst_106 = arith.constant dense<0.000000e+00> : vector<8x128xf32>
    %281 = tpu.matmul %280, %265, %cst_106 {dimension_numbers = #tpu.dot_dimension_numbers<[1], [0], [0], [1], [0, 0, 1, 1], [], []>} : vector<8x128xbf16>, vector<128x128xbf16>, vector<8x128xf32> -> vector<8x128xf32>
    %282 = vector.broadcast %267 : vector<1x128xf32> to vector<8x128xf32>
    %283 = arith.addf %281, %282 : vector<8x128xf32>
    %284 = arith.truncf %263 : vector<6x128xf32> to vector<6x128xbf16>
    %cst_107 = arith.constant dense<0.000000e+00> : vector<6x256xf32>
    %285 = tpu.matmul %284, %269, %cst_107 {dimension_numbers = #tpu.dot_dimension_numbers<[1], [0], [0], [1], [0, 0, 1, 1], [], []>} : vector<6x128xbf16>, vector<128x256xbf16>, vector<6x256xf32> -> vector<6x256xf32>
    %286 = vector.broadcast %271 : vector<1x256xf32> to vector<6x256xf32>
    %287 = arith.addf %285, %286 : vector<6x256xf32>
    %288 = vector.extract_strided_slice %283 {offsets = [0, 0], sizes = [8, 8], strides = [1, 1]} : vector<8x128xf32> to vector<8x8xf32>
    %289 = arith.truncf %288 : vector<8x8xf32> to vector<8x8xbf16>
    %290 = vector.extract_strided_slice %287 {offsets = [0, 0], sizes = [6, 8], strides = [1, 1]} : vector<6x256xf32> to vector<6x8xf32>
    %291 = arith.truncf %290 : vector<6x8xf32> to vector<6x8xbf16>
    "tpu.trace_start"() <{level = 10 : i32, message = "qd,kd->qk"}> : () -> ()
    %cst_108 = arith.constant dense<0.000000e+00> : vector<8x6xf32>
    %292 = tpu.matmul %289, %291, %cst_108 {dimension_numbers = #tpu.dot_dimension_numbers<[1], [1], [0], [0], [0, 0, 1, 0], [], []>} : vector<8x8xbf16>, vector<6x8xbf16>, vector<8x6xf32> -> vector<8x6xf32>
    "tpu.trace_stop"() : () -> ()
    %293 = vector.extract_strided_slice %283 {offsets = [0, 8], sizes = [8, 8], strides = [1, 1]} : vector<8x128xf32> to vector<8x8xf32>
    %294 = arith.truncf %293 : vector<8x8xf32> to vector<8x8xbf16>
    %295 = vector.extract_strided_slice %287 {offsets = [0, 8], sizes = [6, 8], strides = [1, 1]} : vector<6x256xf32> to vector<6x8xf32>
    %296 = arith.truncf %295 : vector<6x8xf32> to vector<6x8xbf16>
    "tpu.trace_start"() <{level = 10 : i32, message = "qd,kd->qk"}> : () -> ()
    %cst_109 = arith.constant dense<0.000000e+00> : vector<8x6xf32>
    %297 = tpu.matmul %294, %296, %cst_109 {dimension_numbers = #tpu.dot_dimension_numbers<[1], [1], [0], [0], [0, 0, 1, 0], [], []>} : vector<8x8xbf16>, vector<6x8xbf16>, vector<8x6xf32> -> vector<8x6xf32>
    "tpu.trace_stop"() : () -> ()
    %298 = vector.extract_strided_slice %283 {offsets = [0, 16], sizes = [8, 8], strides = [1, 1]} : vector<8x128xf32> to vector<8x8xf32>
    %299 = arith.truncf %298 : vector<8x8xf32> to vector<8x8xbf16>
    %300 = vector.extract_strided_slice %287 {offsets = [0, 16], sizes = [6, 8], strides = [1, 1]} : vector<6x256xf32> to vector<6x8xf32>
    %301 = arith.truncf %300 : vector<6x8xf32> to vector<6x8xbf16>
    "tpu.trace_start"() <{level = 10 : i32, message = "qd,kd->qk"}> : () -> ()
    %cst_110 = arith.constant dense<0.000000e+00> : vector<8x6xf32>
    %302 = tpu.matmul %299, %301, %cst_110 {dimension_numbers = #tpu.dot_dimension_numbers<[1], [1], [0], [0], [0, 0, 1, 0], [], []>} : vector<8x8xbf16>, vector<6x8xbf16>, vector<8x6xf32> -> vector<8x6xf32>
    "tpu.trace_stop"() : () -> ()
    %303 = vector.extract_strided_slice %283 {offsets = [0, 24], sizes = [8, 8], strides = [1, 1]} : vector<8x128xf32> to vector<8x8xf32>
    %304 = arith.truncf %303 : vector<8x8xf32> to vector<8x8xbf16>
    %305 = vector.extract_strided_slice %287 {offsets = [0, 24], sizes = [6, 8], strides = [1, 1]} : vector<6x256xf32> to vector<6x8xf32>
    %306 = arith.truncf %305 : vector<6x8xf32> to vector<6x8xbf16>
    "tpu.trace_start"() <{level = 10 : i32, message = "qd,kd->qk"}> : () -> ()
    %cst_111 = arith.constant dense<0.000000e+00> : vector<8x6xf32>
    %307 = tpu.matmul %304, %306, %cst_111 {dimension_numbers = #tpu.dot_dimension_numbers<[1], [1], [0], [0], [0, 0, 1, 0], [], []>} : vector<8x8xbf16>, vector<6x8xbf16>, vector<8x6xf32> -> vector<8x6xf32>
    "tpu.trace_stop"() : () -> ()
    %308 = vector.shape_cast %292 : vector<8x6xf32> to vector<1x8x6xf32>
    %309 = vector.shape_cast %297 : vector<8x6xf32> to vector<1x8x6xf32>
    %310 = vector.shape_cast %302 : vector<8x6xf32> to vector<1x8x6xf32>
    %311 = vector.shape_cast %307 : vector<8x6xf32> to vector<1x8x6xf32>
    %312 = tpu.concatenate %308, %309, %310, %311 in 0 : vector<1x8x6xf32>, vector<1x8x6xf32>, vector<1x8x6xf32>, vector<1x8x6xf32> -> vector<4x8x6xf32>
    %cst_112 = arith.constant dense<0xFF800000> : vector<4x8xf32>
    %313 = vector.multi_reduction <maximumf>, %312, %cst_112 [2] : vector<4x8x6xf32> to vector<4x8xf32>
    %314 = vector.shape_cast %313 : vector<4x8xf32> to vector<4x8x1xf32>
    %315 = vector.broadcast %314 : vector<4x8x1xf32> to vector<4x8x6xf32>
    %316 = arith.subf %312, %315 : vector<4x8x6xf32>
    %317 = math.exp %316 : vector<4x8x6xf32>
    %cst_113 = arith.constant dense<0.000000e+00> : vector<4x8xf32>
    %318 = vector.multi_reduction <add>, %317, %cst_113 [2] : vector<4x8x6xf32> to vector<4x8xf32>
    %319 = vector.shape_cast %318 : vector<4x8xf32> to vector<4x8x1xf32>
    %320 = tpu.reciprocal %319 {approx = true} : vector<4x8x1xf32> -> vector<4x8x1xf32>
    %321 = vector.broadcast %320 : vector<4x8x1xf32> to vector<4x8x6xf32>
    %322 = arith.mulf %317, %321 : vector<4x8x6xf32>
    %cst_114 = arith.constant 0.000000e+00 : f32
    %323 = vector.broadcast %cst_114 : f32 to vector<8x128xf32>
    %324 = vector.extract_strided_slice %287 {offsets = [0, 128], sizes = [6, 8], strides = [1, 1]} : vector<6x256xf32> to vector<6x8xf32>
    %325 = arith.truncf %324 : vector<6x8xf32> to vector<6x8xbf16>
    %326 = vector.extract_strided_slice %322 {offsets = [0, 0, 0], sizes = [1, 8, 6], strides = [1, 1, 1]} : vector<4x8x6xf32> to vector<1x8x6xf32>
    %327 = vector.shape_cast %326 : vector<1x8x6xf32> to vector<8x6xf32>
    %328 = arith.truncf %327 : vector<8x6xf32> to vector<8x6xbf16>
    %cst_115 = arith.constant dense<0.000000e+00> : vector<8x8xf32>
    %329 = tpu.matmul %328, %325, %cst_115 {dimension_numbers = #tpu.dot_dimension_numbers<[1], [0], [0], [1], [0, 0, 1, 1], [], []>} : vector<8x6xbf16>, vector<6x8xbf16>, vector<8x8xf32> -> vector<8x8xf32>
    %330 = arith.truncf %329 : vector<8x8xf32> to vector<8x8xbf16>
    %331 = vector.extract_strided_slice %273 {offsets = [0, 0], sizes = [8, 128], strides = [1, 1]} : vector<128x128xbf16> to vector<8x128xbf16>
    %cst_116 = arith.constant dense<0.000000e+00> : vector<8x128xf32>
    %332 = tpu.matmul %330, %331, %cst_116 {dimension_numbers = #tpu.dot_dimension_numbers<[1], [0], [0], [1], [0, 0, 1, 1], [], []>} : vector<8x8xbf16>, vector<8x128xbf16>, vector<8x128xf32> -> vector<8x128xf32>
    %333 = arith.addf %323, %332 : vector<8x128xf32>
    %334 = vector.extract_strided_slice %287 {offsets = [0, 136], sizes = [6, 8], strides = [1, 1]} : vector<6x256xf32> to vector<6x8xf32>
    %335 = arith.truncf %334 : vector<6x8xf32> to vector<6x8xbf16>
    %336 = vector.extract_strided_slice %322 {offsets = [1, 0, 0], sizes = [1, 8, 6], strides = [1, 1, 1]} : vector<4x8x6xf32> to vector<1x8x6xf32>
    %337 = vector.shape_cast %336 : vector<1x8x6xf32> to vector<8x6xf32>
    %338 = arith.truncf %337 : vector<8x6xf32> to vector<8x6xbf16>
    %cst_117 = arith.constant dense<0.000000e+00> : vector<8x8xf32>
    %339 = tpu.matmul %338, %335, %cst_117 {dimension_numbers = #tpu.dot_dimension_numbers<[1], [0], [0], [1], [0, 0, 1, 1], [], []>} : vector<8x6xbf16>, vector<6x8xbf16>, vector<8x8xf32> -> vector<8x8xf32>
    %340 = arith.truncf %339 : vector<8x8xf32> to vector<8x8xbf16>
    %341 = vector.extract_strided_slice %273 {offsets = [8, 0], sizes = [8, 128], strides = [1, 1]} : vector<128x128xbf16> to vector<8x128xbf16>
    %cst_118 = arith.constant dense<0.000000e+00> : vector<8x128xf32>
    %342 = tpu.matmul %340, %341, %cst_118 {dimension_numbers = #tpu.dot_dimension_numbers<[1], [0], [0], [1], [0, 0, 1, 1], [], []>} : vector<8x8xbf16>, vector<8x128xbf16>, vector<8x128xf32> -> vector<8x128xf32>
    %343 = arith.addf %333, %342 : vector<8x128xf32>
    %344 = vector.extract_strided_slice %287 {offsets = [0, 144], sizes = [6, 8], strides = [1, 1]} : vector<6x256xf32> to vector<6x8xf32>
    %345 = arith.truncf %344 : vector<6x8xf32> to vector<6x8xbf16>
    %346 = vector.extract_strided_slice %322 {offsets = [2, 0, 0], sizes = [1, 8, 6], strides = [1, 1, 1]} : vector<4x8x6xf32> to vector<1x8x6xf32>
    %347 = vector.shape_cast %346 : vector<1x8x6xf32> to vector<8x6xf32>
    %348 = arith.truncf %347 : vector<8x6xf32> to vector<8x6xbf16>
    %cst_119 = arith.constant dense<0.000000e+00> : vector<8x8xf32>
    %349 = tpu.matmul %348, %345, %cst_119 {dimension_numbers = #tpu.dot_dimension_numbers<[1], [0], [0], [1], [0, 0, 1, 1], [], []>} : vector<8x6xbf16>, vector<6x8xbf16>, vector<8x8xf32> -> vector<8x8xf32>
    %350 = arith.truncf %349 : vector<8x8xf32> to vector<8x8xbf16>
    %351 = vector.extract_strided_slice %273 {offsets = [16, 0], sizes = [8, 128], strides = [1, 1]} : vector<128x128xbf16> to vector<8x128xbf16>
    %cst_120 = arith.constant dense<0.000000e+00> : vector<8x128xf32>
    %352 = tpu.matmul %350, %351, %cst_120 {dimension_numbers = #tpu.dot_dimension_numbers<[1], [0], [0], [1], [0, 0, 1, 1], [], []>} : vector<8x8xbf16>, vector<8x128xbf16>, vector<8x128xf32> -> vector<8x128xf32>
    %353 = arith.addf %343, %352 : vector<8x128xf32>
    %354 = vector.extract_strided_slice %287 {offsets = [0, 152], sizes = [6, 8], strides = [1, 1]} : vector<6x256xf32> to vector<6x8xf32>
    %355 = arith.truncf %354 : vector<6x8xf32> to vector<6x8xbf16>
    %356 = vector.extract_strided_slice %322 {offsets = [3, 0, 0], sizes = [1, 8, 6], strides = [1, 1, 1]} : vector<4x8x6xf32> to vector<1x8x6xf32>
    %357 = vector.shape_cast %356 : vector<1x8x6xf32> to vector<8x6xf32>
    %358 = arith.truncf %357 : vector<8x6xf32> to vector<8x6xbf16>
    %cst_121 = arith.constant dense<0.000000e+00> : vector<8x8xf32>
    %359 = tpu.matmul %358, %355, %cst_121 {dimension_numbers = #tpu.dot_dimension_numbers<[1], [0], [0], [1], [0, 0, 1, 1], [], []>} : vector<8x6xbf16>, vector<6x8xbf16>, vector<8x8xf32> -> vector<8x8xf32>
    %360 = arith.truncf %359 : vector<8x8xf32> to vector<8x8xbf16>
    %361 = vector.extract_strided_slice %273 {offsets = [24, 0], sizes = [8, 128], strides = [1, 1]} : vector<128x128xbf16> to vector<8x128xbf16>
    %cst_122 = arith.constant dense<0.000000e+00> : vector<8x128xf32>
    %362 = tpu.matmul %360, %361, %cst_122 {dimension_numbers = #tpu.dot_dimension_numbers<[1], [0], [0], [1], [0, 0, 1, 1], [], []>} : vector<8x8xbf16>, vector<8x128xbf16>, vector<8x128xf32> -> vector<8x128xf32>
    %363 = arith.addf %353, %362 : vector<8x128xf32>
    %364 = vector.broadcast %275 : vector<1x128xf32> to vector<8x128xf32>
    %365 = arith.addf %363, %364 : vector<8x128xf32>
    %366 = arith.addf %365, %147 : vector<8x128xf32>
    %367 = tpu.iota {dimensions = array<i32: 1>} : vector<1x128xi32>
    %c32_i32_123 = arith.constant 32 : i32
    %368 = vector.broadcast %c32_i32_123 : i32 to vector<1x128xi32>
    %369 = arith.cmpi slt, %367, %368 : vector<1x128xi32>
    %370 = arith.extui %369 : vector<1x128xi1> to vector<1x128xi32>
    %371 = arith.sitofp %370 : vector<1x128xi32> to vector<1x128xf32>
    %372 = vector.broadcast %371 : vector<1x128xf32> to vector<8x128xf32>
    %373 = arith.mulf %366, %372 : vector<8x128xf32>
    %cst_124 = arith.constant dense<0.000000e+00> : vector<8xf32>
    %374 = vector.multi_reduction <add>, %373, %cst_124 [1] : vector<8x128xf32> to vector<8xf32>
    %375 = vector.shape_cast %374 : vector<8xf32> to vector<8x1xf32>
    %cst_125 = arith.constant 3.125000e-02 : f32
    %376 = vector.broadcast %cst_125 : f32 to vector<8x1xf32>
    %377 = arith.mulf %375, %376 : vector<8x1xf32>
    %378 = vector.broadcast %377 : vector<8x1xf32> to vector<8x128xf32>
    %379 = arith.subf %366, %378 : vector<8x128xf32>
    %380 = vector.broadcast %371 : vector<1x128xf32> to vector<8x128xf32>
    %381 = arith.mulf %379, %380 : vector<8x128xf32>
    %382 = arith.mulf %381, %381 : vector<8x128xf32>
    %cst_126 = arith.constant dense<0.000000e+00> : vector<8xf32>
    %383 = vector.multi_reduction <add>, %382, %cst_126 [1] : vector<8x128xf32> to vector<8xf32>
    %384 = vector.shape_cast %383 : vector<8xf32> to vector<8x1xf32>
    %cst_127 = arith.constant 3.125000e-02 : f32
    %385 = vector.broadcast %cst_127 : f32 to vector<8x1xf32>
    %386 = arith.mulf %384, %385 : vector<8x1xf32>
    %cst_128 = arith.constant 9.99999974E-6 : f32
    %387 = vector.broadcast %cst_128 : f32 to vector<8x1xf32>
    %388 = arith.addf %386, %387 : vector<8x1xf32>
    %389 = math.rsqrt %388 : vector<8x1xf32>
    %390 = vector.broadcast %389 : vector<8x1xf32> to vector<8x128xf32>
    %391 = arith.mulf %381, %390 : vector<8x128xf32>
    %392 = vector.broadcast %277 : vector<1x128xf32> to vector<8x128xf32>
    %393 = arith.mulf %391, %392 : vector<8x128xf32>
    %394 = vector.broadcast %279 : vector<1x128xf32> to vector<8x128xf32>
    %395 = arith.addf %393, %394 : vector<8x128xf32>
    %396 = arith.truncf %263 : vector<6x128xf32> to vector<6x128xbf16>
    %cst_129 = arith.constant dense<0.000000e+00> : vector<6x128xf32>
    %397 = tpu.matmul %396, %265, %cst_129 {dimension_numbers = #tpu.dot_dimension_numbers<[1], [0], [0], [1], [0, 0, 1, 1], [], []>} : vector<6x128xbf16>, vector<128x128xbf16>, vector<6x128xf32> -> vector<6x128xf32>
    %398 = vector.broadcast %267 : vector<1x128xf32> to vector<6x128xf32>
    %399 = arith.addf %397, %398 : vector<6x128xf32>
    %400 = arith.truncf %395 : vector<8x128xf32> to vector<8x128xbf16>
    %cst_130 = arith.constant dense<0.000000e+00> : vector<8x256xf32>
    %401 = tpu.matmul %400, %269, %cst_130 {dimension_numbers = #tpu.dot_dimension_numbers<[1], [0], [0], [1], [0, 0, 1, 1], [], []>} : vector<8x128xbf16>, vector<128x256xbf16>, vector<8x256xf32> -> vector<8x256xf32>
    %402 = vector.broadcast %271 : vector<1x256xf32> to vector<8x256xf32>
    %403 = arith.addf %401, %402 : vector<8x256xf32>
    %404 = vector.extract_strided_slice %399 {offsets = [0, 0], sizes = [6, 8], strides = [1, 1]} : vector<6x128xf32> to vector<6x8xf32>
    %405 = arith.truncf %404 : vector<6x8xf32> to vector<6x8xbf16>
    %406 = vector.extract_strided_slice %403 {offsets = [0, 0], sizes = [8, 8], strides = [1, 1]} : vector<8x256xf32> to vector<8x8xf32>
    %407 = arith.truncf %406 : vector<8x8xf32> to vector<8x8xbf16>
    "tpu.trace_start"() <{level = 10 : i32, message = "qd,kd->qk"}> : () -> ()
    %cst_131 = arith.constant dense<0.000000e+00> : vector<6x8xf32>
    %408 = tpu.matmul %405, %407, %cst_131 {dimension_numbers = #tpu.dot_dimension_numbers<[1], [1], [0], [0], [0, 0, 1, 0], [], []>} : vector<6x8xbf16>, vector<8x8xbf16>, vector<6x8xf32> -> vector<6x8xf32>
    "tpu.trace_stop"() : () -> ()
    %409 = vector.extract_strided_slice %399 {offsets = [0, 8], sizes = [6, 8], strides = [1, 1]} : vector<6x128xf32> to vector<6x8xf32>
    %410 = arith.truncf %409 : vector<6x8xf32> to vector<6x8xbf16>
    %411 = vector.extract_strided_slice %403 {offsets = [0, 8], sizes = [8, 8], strides = [1, 1]} : vector<8x256xf32> to vector<8x8xf32>
    %412 = arith.truncf %411 : vector<8x8xf32> to vector<8x8xbf16>
    "tpu.trace_start"() <{level = 10 : i32, message = "qd,kd->qk"}> : () -> ()
    %cst_132 = arith.constant dense<0.000000e+00> : vector<6x8xf32>
    %413 = tpu.matmul %410, %412, %cst_132 {dimension_numbers = #tpu.dot_dimension_numbers<[1], [1], [0], [0], [0, 0, 1, 0], [], []>} : vector<6x8xbf16>, vector<8x8xbf16>, vector<6x8xf32> -> vector<6x8xf32>
    "tpu.trace_stop"() : () -> ()
    %414 = vector.extract_strided_slice %399 {offsets = [0, 16], sizes = [6, 8], strides = [1, 1]} : vector<6x128xf32> to vector<6x8xf32>
    %415 = arith.truncf %414 : vector<6x8xf32> to vector<6x8xbf16>
    %416 = vector.extract_strided_slice %403 {offsets = [0, 16], sizes = [8, 8], strides = [1, 1]} : vector<8x256xf32> to vector<8x8xf32>
    %417 = arith.truncf %416 : vector<8x8xf32> to vector<8x8xbf16>
    "tpu.trace_start"() <{level = 10 : i32, message = "qd,kd->qk"}> : () -> ()
    %cst_133 = arith.constant dense<0.000000e+00> : vector<6x8xf32>
    %418 = tpu.matmul %415, %417, %cst_133 {dimension_numbers = #tpu.dot_dimension_numbers<[1], [1], [0], [0], [0, 0, 1, 0], [], []>} : vector<6x8xbf16>, vector<8x8xbf16>, vector<6x8xf32> -> vector<6x8xf32>
    "tpu.trace_stop"() : () -> ()
    %419 = vector.extract_strided_slice %399 {offsets = [0, 24], sizes = [6, 8], strides = [1, 1]} : vector<6x128xf32> to vector<6x8xf32>
    %420 = arith.truncf %419 : vector<6x8xf32> to vector<6x8xbf16>
    %421 = vector.extract_strided_slice %403 {offsets = [0, 24], sizes = [8, 8], strides = [1, 1]} : vector<8x256xf32> to vector<8x8xf32>
    %422 = arith.truncf %421 : vector<8x8xf32> to vector<8x8xbf16>
    "tpu.trace_start"() <{level = 10 : i32, message = "qd,kd->qk"}> : () -> ()
    %cst_134 = arith.constant dense<0.000000e+00> : vector<6x8xf32>
    %423 = tpu.matmul %420, %422, %cst_134 {dimension_numbers = #tpu.dot_dimension_numbers<[1], [1], [0], [0], [0, 0, 1, 0], [], []>} : vector<6x8xbf16>, vector<8x8xbf16>, vector<6x8xf32> -> vector<6x8xf32>
    "tpu.trace_stop"() : () -> ()
    %424 = vector.shape_cast %408 : vector<6x8xf32> to vector<1x6x8xf32>
    %425 = vector.shape_cast %413 : vector<6x8xf32> to vector<1x6x8xf32>
    %426 = vector.shape_cast %418 : vector<6x8xf32> to vector<1x6x8xf32>
    %427 = vector.shape_cast %423 : vector<6x8xf32> to vector<1x6x8xf32>
    %428 = tpu.concatenate %424, %425, %426, %427 in 0 : vector<1x6x8xf32>, vector<1x6x8xf32>, vector<1x6x8xf32>, vector<1x6x8xf32> -> vector<4x6x8xf32>
    %cst_135 = arith.constant dense<0xFF800000> : vector<4x6xf32>
    %429 = vector.multi_reduction <maximumf>, %428, %cst_135 [2] : vector<4x6x8xf32> to vector<4x6xf32>
    %430 = vector.shape_cast %429 : vector<4x6xf32> to vector<4x6x1xf32>
    %431 = vector.broadcast %430 : vector<4x6x1xf32> to vector<4x6x8xf32>
    %432 = arith.subf %428, %431 : vector<4x6x8xf32>
    %433 = math.exp %432 : vector<4x6x8xf32>
    %cst_136 = arith.constant dense<0.000000e+00> : vector<4x6xf32>
    %434 = vector.multi_reduction <add>, %433, %cst_136 [2] : vector<4x6x8xf32> to vector<4x6xf32>
    %435 = vector.shape_cast %434 : vector<4x6xf32> to vector<4x6x1xf32>
    %436 = tpu.reciprocal %435 {approx = true} : vector<4x6x1xf32> -> vector<4x6x1xf32>
    %437 = vector.broadcast %436 : vector<4x6x1xf32> to vector<4x6x8xf32>
    %438 = arith.mulf %433, %437 : vector<4x6x8xf32>
    %cst_137 = arith.constant 0.000000e+00 : f32
    %439 = vector.broadcast %cst_137 : f32 to vector<6x128xf32>
    %440 = vector.extract_strided_slice %403 {offsets = [0, 128], sizes = [8, 8], strides = [1, 1]} : vector<8x256xf32> to vector<8x8xf32>
    %441 = arith.truncf %440 : vector<8x8xf32> to vector<8x8xbf16>
    %442 = vector.extract_strided_slice %438 {offsets = [0, 0, 0], sizes = [1, 6, 8], strides = [1, 1, 1]} : vector<4x6x8xf32> to vector<1x6x8xf32>
    %443 = vector.shape_cast %442 : vector<1x6x8xf32> to vector<6x8xf32>
    %444 = arith.truncf %443 : vector<6x8xf32> to vector<6x8xbf16>
    %cst_138 = arith.constant dense<0.000000e+00> : vector<6x8xf32>
    %445 = tpu.matmul %444, %441, %cst_138 {dimension_numbers = #tpu.dot_dimension_numbers<[1], [0], [0], [1], [0, 0, 1, 1], [], []>} : vector<6x8xbf16>, vector<8x8xbf16>, vector<6x8xf32> -> vector<6x8xf32>
    %446 = arith.truncf %445 : vector<6x8xf32> to vector<6x8xbf16>
    %447 = vector.extract_strided_slice %273 {offsets = [0, 0], sizes = [8, 128], strides = [1, 1]} : vector<128x128xbf16> to vector<8x128xbf16>
    %cst_139 = arith.constant dense<0.000000e+00> : vector<6x128xf32>
    %448 = tpu.matmul %446, %447, %cst_139 {dimension_numbers = #tpu.dot_dimension_numbers<[1], [0], [0], [1], [0, 0, 1, 1], [], []>} : vector<6x8xbf16>, vector<8x128xbf16>, vector<6x128xf32> -> vector<6x128xf32>
    %449 = arith.addf %439, %448 : vector<6x128xf32>
    %450 = vector.extract_strided_slice %403 {offsets = [0, 136], sizes = [8, 8], strides = [1, 1]} : vector<8x256xf32> to vector<8x8xf32>
    %451 = arith.truncf %450 : vector<8x8xf32> to vector<8x8xbf16>
    %452 = vector.extract_strided_slice %438 {offsets = [1, 0, 0], sizes = [1, 6, 8], strides = [1, 1, 1]} : vector<4x6x8xf32> to vector<1x6x8xf32>
    %453 = vector.shape_cast %452 : vector<1x6x8xf32> to vector<6x8xf32>
    %454 = arith.truncf %453 : vector<6x8xf32> to vector<6x8xbf16>
    %cst_140 = arith.constant dense<0.000000e+00> : vector<6x8xf32>
    %455 = tpu.matmul %454, %451, %cst_140 {dimension_numbers = #tpu.dot_dimension_numbers<[1], [0], [0], [1], [0, 0, 1, 1], [], []>} : vector<6x8xbf16>, vector<8x8xbf16>, vector<6x8xf32> -> vector<6x8xf32>
    %456 = arith.truncf %455 : vector<6x8xf32> to vector<6x8xbf16>
    %457 = vector.extract_strided_slice %273 {offsets = [8, 0], sizes = [8, 128], strides = [1, 1]} : vector<128x128xbf16> to vector<8x128xbf16>
    %cst_141 = arith.constant dense<0.000000e+00> : vector<6x128xf32>
    %458 = tpu.matmul %456, %457, %cst_141 {dimension_numbers = #tpu.dot_dimension_numbers<[1], [0], [0], [1], [0, 0, 1, 1], [], []>} : vector<6x8xbf16>, vector<8x128xbf16>, vector<6x128xf32> -> vector<6x128xf32>
    %459 = arith.addf %449, %458 : vector<6x128xf32>
    %460 = vector.extract_strided_slice %403 {offsets = [0, 144], sizes = [8, 8], strides = [1, 1]} : vector<8x256xf32> to vector<8x8xf32>
    %461 = arith.truncf %460 : vector<8x8xf32> to vector<8x8xbf16>
    %462 = vector.extract_strided_slice %438 {offsets = [2, 0, 0], sizes = [1, 6, 8], strides = [1, 1, 1]} : vector<4x6x8xf32> to vector<1x6x8xf32>
    %463 = vector.shape_cast %462 : vector<1x6x8xf32> to vector<6x8xf32>
    %464 = arith.truncf %463 : vector<6x8xf32> to vector<6x8xbf16>
    %cst_142 = arith.constant dense<0.000000e+00> : vector<6x8xf32>
    %465 = tpu.matmul %464, %461, %cst_142 {dimension_numbers = #tpu.dot_dimension_numbers<[1], [0], [0], [1], [0, 0, 1, 1], [], []>} : vector<6x8xbf16>, vector<8x8xbf16>, vector<6x8xf32> -> vector<6x8xf32>
    %466 = arith.truncf %465 : vector<6x8xf32> to vector<6x8xbf16>
    %467 = vector.extract_strided_slice %273 {offsets = [16, 0], sizes = [8, 128], strides = [1, 1]} : vector<128x128xbf16> to vector<8x128xbf16>
    %cst_143 = arith.constant dense<0.000000e+00> : vector<6x128xf32>
    %468 = tpu.matmul %466, %467, %cst_143 {dimension_numbers = #tpu.dot_dimension_numbers<[1], [0], [0], [1], [0, 0, 1, 1], [], []>} : vector<6x8xbf16>, vector<8x128xbf16>, vector<6x128xf32> -> vector<6x128xf32>
    %469 = arith.addf %459, %468 : vector<6x128xf32>
    %470 = vector.extract_strided_slice %403 {offsets = [0, 152], sizes = [8, 8], strides = [1, 1]} : vector<8x256xf32> to vector<8x8xf32>
    %471 = arith.truncf %470 : vector<8x8xf32> to vector<8x8xbf16>
    %472 = vector.extract_strided_slice %438 {offsets = [3, 0, 0], sizes = [1, 6, 8], strides = [1, 1, 1]} : vector<4x6x8xf32> to vector<1x6x8xf32>
    %473 = vector.shape_cast %472 : vector<1x6x8xf32> to vector<6x8xf32>
    %474 = arith.truncf %473 : vector<6x8xf32> to vector<6x8xbf16>
    %cst_144 = arith.constant dense<0.000000e+00> : vector<6x8xf32>
    %475 = tpu.matmul %474, %471, %cst_144 {dimension_numbers = #tpu.dot_dimension_numbers<[1], [0], [0], [1], [0, 0, 1, 1], [], []>} : vector<6x8xbf16>, vector<8x8xbf16>, vector<6x8xf32> -> vector<6x8xf32>
    %476 = arith.truncf %475 : vector<6x8xf32> to vector<6x8xbf16>
    %477 = vector.extract_strided_slice %273 {offsets = [24, 0], sizes = [8, 128], strides = [1, 1]} : vector<128x128xbf16> to vector<8x128xbf16>
    %cst_145 = arith.constant dense<0.000000e+00> : vector<6x128xf32>
    %478 = tpu.matmul %476, %477, %cst_145 {dimension_numbers = #tpu.dot_dimension_numbers<[1], [0], [0], [1], [0, 0, 1, 1], [], []>} : vector<6x8xbf16>, vector<8x128xbf16>, vector<6x128xf32> -> vector<6x128xf32>
    %479 = arith.addf %469, %478 : vector<6x128xf32>
    %480 = vector.broadcast %275 : vector<1x128xf32> to vector<6x128xf32>
    %481 = arith.addf %479, %480 : vector<6x128xf32>
    %482 = arith.addf %481, %263 : vector<6x128xf32>
    %483 = tpu.iota {dimensions = array<i32: 1>} : vector<1x128xi32>
    %c32_i32_146 = arith.constant 32 : i32
    %484 = vector.broadcast %c32_i32_146 : i32 to vector<1x128xi32>
    %485 = arith.cmpi slt, %483, %484 : vector<1x128xi32>
    %486 = arith.extui %485 : vector<1x128xi1> to vector<1x128xi32>
    %487 = arith.sitofp %486 : vector<1x128xi32> to vector<1x128xf32>
    %488 = vector.broadcast %487 : vector<1x128xf32> to vector<6x128xf32>
    %489 = arith.mulf %482, %488 : vector<6x128xf32>
    %cst_147 = arith.constant dense<0.000000e+00> : vector<6xf32>
    %490 = vector.multi_reduction <add>, %489, %cst_147 [1] : vector<6x128xf32> to vector<6xf32>
    %491 = vector.shape_cast %490 : vector<6xf32> to vector<6x1xf32>
    %cst_148 = arith.constant 3.125000e-02 : f32
    %492 = vector.broadcast %cst_148 : f32 to vector<6x1xf32>
    %493 = arith.mulf %491, %492 : vector<6x1xf32>
    %494 = vector.broadcast %493 : vector<6x1xf32> to vector<6x128xf32>
    %495 = arith.subf %482, %494 : vector<6x128xf32>
    %496 = vector.broadcast %487 : vector<1x128xf32> to vector<6x128xf32>
    %497 = arith.mulf %495, %496 : vector<6x128xf32>
    %498 = arith.mulf %497, %497 : vector<6x128xf32>
    %cst_149 = arith.constant dense<0.000000e+00> : vector<6xf32>
    %499 = vector.multi_reduction <add>, %498, %cst_149 [1] : vector<6x128xf32> to vector<6xf32>
    %500 = vector.shape_cast %499 : vector<6xf32> to vector<6x1xf32>
    %cst_150 = arith.constant 3.125000e-02 : f32
    %501 = vector.broadcast %cst_150 : f32 to vector<6x1xf32>
    %502 = arith.mulf %500, %501 : vector<6x1xf32>
    %cst_151 = arith.constant 9.99999974E-6 : f32
    %503 = vector.broadcast %cst_151 : f32 to vector<6x1xf32>
    %504 = arith.addf %502, %503 : vector<6x1xf32>
    %505 = math.rsqrt %504 : vector<6x1xf32>
    %506 = vector.broadcast %505 : vector<6x1xf32> to vector<6x128xf32>
    %507 = arith.mulf %497, %506 : vector<6x128xf32>
    %508 = vector.broadcast %277 : vector<1x128xf32> to vector<6x128xf32>
    %509 = arith.mulf %507, %508 : vector<6x128xf32>
    %510 = vector.broadcast %279 : vector<1x128xf32> to vector<6x128xf32>
    %511 = arith.addf %509, %510 : vector<6x128xf32>
    %c0_152 = arith.constant 0 : index
    %c0_153 = arith.constant 0 : index
    %512 = vector.load %arg15[%c0_152, %c0_153] : memref<1x128xf32, #tpu.memory_space<vmem>>, vector<1x128xf32>
    %c0_154 = arith.constant 0 : index
    %c0_155 = arith.constant 0 : index
    %513 = vector.load %arg16[%c0_154, %c0_155] : memref<1x128xf32, #tpu.memory_space<vmem>>, vector<1x128xf32>
    %514 = tpu.iota {dimensions = array<i32: 1>} : vector<1x128xi32>
    %c32_i32_156 = arith.constant 32 : i32
    %515 = vector.broadcast %c32_i32_156 : i32 to vector<1x128xi32>
    %516 = arith.cmpi slt, %514, %515 : vector<1x128xi32>
    %517 = arith.extui %516 : vector<1x128xi1> to vector<1x128xi32>
    %518 = arith.sitofp %517 : vector<1x128xi32> to vector<1x128xf32>
    %519 = vector.broadcast %518 : vector<1x128xf32> to vector<8x128xf32>
    %520 = arith.mulf %395, %519 : vector<8x128xf32>
    %cst_157 = arith.constant dense<0.000000e+00> : vector<8xf32>
    %521 = vector.multi_reduction <add>, %520, %cst_157 [1] : vector<8x128xf32> to vector<8xf32>
    %522 = vector.shape_cast %521 : vector<8xf32> to vector<8x1xf32>
    %cst_158 = arith.constant 3.125000e-02 : f32
    %523 = vector.broadcast %cst_158 : f32 to vector<8x1xf32>
    %524 = arith.mulf %522, %523 : vector<8x1xf32>
    %525 = vector.broadcast %524 : vector<8x1xf32> to vector<8x128xf32>
    %526 = arith.subf %395, %525 : vector<8x128xf32>
    %527 = vector.broadcast %518 : vector<1x128xf32> to vector<8x128xf32>
    %528 = arith.mulf %526, %527 : vector<8x128xf32>
    %529 = arith.mulf %528, %528 : vector<8x128xf32>
    %cst_159 = arith.constant dense<0.000000e+00> : vector<8xf32>
    %530 = vector.multi_reduction <add>, %529, %cst_159 [1] : vector<8x128xf32> to vector<8xf32>
    %531 = vector.shape_cast %530 : vector<8xf32> to vector<8x1xf32>
    %cst_160 = arith.constant 3.125000e-02 : f32
    %532 = vector.broadcast %cst_160 : f32 to vector<8x1xf32>
    %533 = arith.mulf %531, %532 : vector<8x1xf32>
    %cst_161 = arith.constant 9.99999974E-6 : f32
    %534 = vector.broadcast %cst_161 : f32 to vector<8x1xf32>
    %535 = arith.addf %533, %534 : vector<8x1xf32>
    %536 = math.rsqrt %535 : vector<8x1xf32>
    %537 = vector.broadcast %536 : vector<8x1xf32> to vector<8x128xf32>
    %538 = arith.mulf %528, %537 : vector<8x128xf32>
    %539 = vector.broadcast %512 : vector<1x128xf32> to vector<8x128xf32>
    %540 = arith.mulf %538, %539 : vector<8x128xf32>
    %541 = vector.broadcast %513 : vector<1x128xf32> to vector<8x128xf32>
    %542 = arith.addf %540, %541 : vector<8x128xf32>
    %c0_162 = arith.constant 0 : index
    %c0_163 = arith.constant 0 : index
    %c0_164 = arith.constant 0 : index
    %543 = vector.load %arg17[%c0_162, %c0_163, %c0_164] : memref<1x8x128xf32, #tpu.memory_space<vmem>>, vector<1x8x128xf32>
    %544 = vector.shape_cast %543 : vector<1x8x128xf32> to vector<8x128xf32>
    %545 = vector.shape_cast %542 : vector<8x128xf32> to vector<1x8x128xf32>
    tpu.vector_store %arg17[%c0_162, %c0_163, %c0_164], %545 {strides = array<i32>} : memref<1x8x128xf32, #tpu.memory_space<vmem>>, vector<1x8x128xf32>,
    %c0_165 = arith.constant 0 : index
    %c0_166 = arith.constant 0 : index
    %546 = vector.load %arg15[%c0_165, %c0_166] : memref<1x128xf32, #tpu.memory_space<vmem>>, vector<1x128xf32>
    %c0_167 = arith.constant 0 : index
    %c0_168 = arith.constant 0 : index
    %547 = vector.load %arg16[%c0_167, %c0_168] : memref<1x128xf32, #tpu.memory_space<vmem>>, vector<1x128xf32>
    %548 = tpu.iota {dimensions = array<i32: 1>} : vector<1x128xi32>
    %c32_i32_169 = arith.constant 32 : i32
    %549 = vector.broadcast %c32_i32_169 : i32 to vector<1x128xi32>
    %550 = arith.cmpi slt, %548, %549 : vector<1x128xi32>
    %551 = arith.extui %550 : vector<1x128xi1> to vector<1x128xi32>
    %552 = arith.sitofp %551 : vector<1x128xi32> to vector<1x128xf32>
    %553 = vector.broadcast %552 : vector<1x128xf32> to vector<6x128xf32>
    %554 = arith.mulf %511, %553 : vector<6x128xf32>
    %cst_170 = arith.constant dense<0.000000e+00> : vector<6xf32>
    %555 = vector.multi_reduction <add>, %554, %cst_170 [1] : vector<6x128xf32> to vector<6xf32>
    %556 = vector.shape_cast %555 : vector<6xf32> to vector<6x1xf32>
    %cst_171 = arith.constant 3.125000e-02 : f32
    %557 = vector.broadcast %cst_171 : f32 to vector<6x1xf32>
    %558 = arith.mulf %556, %557 : vector<6x1xf32>
    %559 = vector.broadcast %558 : vector<6x1xf32> to vector<6x128xf32>
    %560 = arith.subf %511, %559 : vector<6x128xf32>
    %561 = vector.broadcast %552 : vector<1x128xf32> to vector<6x128xf32>
    %562 = arith.mulf %560, %561 : vector<6x128xf32>
    %563 = arith.mulf %562, %562 : vector<6x128xf32>
    %cst_172 = arith.constant dense<0.000000e+00> : vector<6xf32>
    %564 = vector.multi_reduction <add>, %563, %cst_172 [1] : vector<6x128xf32> to vector<6xf32>
    %565 = vector.shape_cast %564 : vector<6xf32> to vector<6x1xf32>
    %cst_173 = arith.constant 3.125000e-02 : f32
    %566 = vector.broadcast %cst_173 : f32 to vector<6x1xf32>
    %567 = arith.mulf %565, %566 : vector<6x1xf32>
    %cst_174 = arith.constant 9.99999974E-6 : f32
    %568 = vector.broadcast %cst_174 : f32 to vector<6x1xf32>
    %569 = arith.addf %567, %568 : vector<6x1xf32>
    %570 = math.rsqrt %569 : vector<6x1xf32>
    %571 = vector.broadcast %570 : vector<6x1xf32> to vector<6x128xf32>
    %572 = arith.mulf %562, %571 : vector<6x128xf32>
    %573 = vector.broadcast %546 : vector<1x128xf32> to vector<6x128xf32>
    %574 = arith.mulf %572, %573 : vector<6x128xf32>
    %575 = vector.broadcast %547 : vector<1x128xf32> to vector<6x128xf32>
    %576 = arith.addf %574, %575 : vector<6x128xf32>
    %c0_175 = arith.constant 0 : index
    %c0_176 = arith.constant 0 : index
    %c0_177 = arith.constant 0 : index
    %577 = vector.load %arg18[%c0_175, %c0_176, %c0_177] : memref<1x6x128xf32, #tpu.memory_space<vmem>>, vector<1x6x128xf32>
    %578 = vector.shape_cast %577 : vector<1x6x128xf32> to vector<6x128xf32>
    %579 = vector.shape_cast %576 : vector<6x128xf32> to vector<1x6x128xf32>
    tpu.vector_store %arg18[%c0_175, %c0_176, %c0_177], %579 {strides = array<i32>} : memref<1x6x128xf32, #tpu.memory_space<vmem>>, vector<1x6x128xf32>,
    return
  }
  func.func @transform_0(%arg0: i32) -> (i32, i32, i32) {
    %c0_i32 = arith.constant 0 : i32
    %c0_i32_0 = arith.constant 0 : i32
    %c0_i32_1 = arith.constant 0 : i32
    return %arg0, %c0_i32, %c0_i32_0 : i32, i32, i32
  }
  func.func @transform_1(%arg0: i32) -> (i32, i32, i32) {
    %c0_i32 = arith.constant 0 : i32
    %c0_i32_0 = arith.constant 0 : i32
    %c0_i32_1 = arith.constant 0 : i32
    return %arg0, %c0_i32, %c0_i32_0 : i32, i32, i32
  }
  func.func @transform_2(%arg0: i32) -> (i32, i32) {
    %c0_i32 = arith.constant 0 : i32
    %c0_i32_0 = arith.constant 0 : i32
    %c0_i32_1 = arith.constant 0 : i32
    return %c0_i32, %c0_i32_0 : i32, i32
  }
  func.func @transform_3(%arg0: i32) -> (i32, i32) {
    %c0_i32 = arith.constant 0 : i32
    %c0_i32_0 = arith.constant 0 : i32
    %c0_i32_1 = arith.constant 0 : i32
    return %c0_i32, %c0_i32_0 : i32, i32
  }
  func.func @transform_4(%arg0: i32) -> (i32, i32) {
    %c0_i32 = arith.constant 0 : i32
    %c0_i32_0 = arith.constant 0 : i32
    %c0_i32_1 = arith.constant 0 : i32
    return %c0_i32, %c0_i32_0 : i32, i32
  }
  func.func @transform_5(%arg0: i32) -> (i32, i32) {
    %c0_i32 = arith.constant 0 : i32
    %c0_i32_0 = arith.constant 0 : i32
    %c0_i32_1 = arith.constant 0 : i32
    return %c0_i32, %c0_i32_0 : i32, i32
  }
  func.func @transform_6(%arg0: i32) -> (i32, i32, i32) {
    %c0_i32 = arith.constant 0 : i32
    %c0_i32_0 = arith.constant 0 : i32
    %c0_i32_1 = arith.constant 0 : i32
    %c0_i32_2 = arith.constant 0 : i32
    return %c0_i32, %c0_i32_0, %c0_i32_1 : i32, i32, i32
  }
  func.func @transform_7(%arg0: i32) -> (i32, i32, i32) {
    %c0_i32 = arith.constant 0 : i32
    %c0_i32_0 = arith.constant 0 : i32
    %c0_i32_1 = arith.constant 0 : i32
    %c0_i32_2 = arith.constant 0 : i32
    return %c0_i32, %c0_i32_0, %c0_i32_1 : i32, i32, i32
  }
  func.func @transform_8(%arg0: i32) -> (i32, i32, i32) {
    %c0_i32 = arith.constant 0 : i32
    %c0_i32_0 = arith.constant 0 : i32
    %c0_i32_1 = arith.constant 0 : i32
    %c0_i32_2 = arith.constant 0 : i32
    return %c0_i32, %c0_i32_0, %c0_i32_1 : i32, i32, i32
  }
  func.func @transform_9(%arg0: i32) -> (i32, i32, i32) {
    %c0_i32 = arith.constant 0 : i32
    %c0_i32_0 = arith.constant 0 : i32
    %c0_i32_1 = arith.constant 0 : i32
    %c0_i32_2 = arith.constant 0 : i32
    return %c0_i32, %c0_i32_0, %c0_i32_1 : i32, i32, i32
  }
  func.func @transform_10(%arg0: i32) -> (i32, i32, i32) {
    %c0_i32 = arith.constant 0 : i32
    %c0_i32_0 = arith.constant 0 : i32
    %c0_i32_1 = arith.constant 0 : i32
    %c0_i32_2 = arith.constant 0 : i32
    return %c0_i32, %c0_i32_0, %c0_i32_1 : i32, i32, i32
  }
  func.func @transform_11(%arg0: i32) -> (i32, i32, i32) {
    %c0_i32 = arith.constant 0 : i32
    %c0_i32_0 = arith.constant 0 : i32
    %c0_i32_1 = arith.constant 0 : i32
    %c0_i32_2 = arith.constant 0 : i32
    return %c0_i32, %c0_i32_0, %c0_i32_1 : i32, i32, i32
  }
  func.func @transform_12(%arg0: i32) -> (i32, i32, i32) {
    %c0_i32 = arith.constant 0 : i32
    %c0_i32_0 = arith.constant 0 : i32
    %c0_i32_1 = arith.constant 0 : i32
    %c0_i32_2 = arith.constant 0 : i32
    return %c0_i32, %c0_i32_0, %c0_i32_1 : i32, i32, i32
  }
  func.func @transform_13(%arg0: i32) -> (i32, i32, i32) {
    %c0_i32 = arith.constant 0 : i32
    %c0_i32_0 = arith.constant 0 : i32
    %c0_i32_1 = arith.constant 0 : i32
    %c0_i32_2 = arith.constant 0 : i32
    return %c0_i32, %c0_i32_0, %c0_i32_1 : i32, i32, i32
  }
  func.func @transform_14(%arg0: i32) -> (i32, i32) {
    %c0_i32 = arith.constant 0 : i32
    %c0_i32_0 = arith.constant 0 : i32
    %c0_i32_1 = arith.constant 0 : i32
    return %c0_i32, %c0_i32_0 : i32, i32
  }
  func.func @transform_15(%arg0: i32) -> (i32, i32) {
    %c0_i32 = arith.constant 0 : i32
    %c0_i32_0 = arith.constant 0 : i32
    %c0_i32_1 = arith.constant 0 : i32
    return %c0_i32, %c0_i32_0 : i32, i32
  }
  func.func @transform_16(%arg0: i32) -> (i32, i32, i32) {
    %c0_i32 = arith.constant 0 : i32
    %c0_i32_0 = arith.constant 0 : i32
    %c0_i32_1 = arith.constant 0 : i32
    return %arg0, %c0_i32, %c0_i32_0 : i32, i32, i32
  }
  func.func @transform_17(%arg0: i32) -> (i32, i32, i32) {
    %c0_i32 = arith.constant 0 : i32
    %c0_i32_0 = arith.constant 0 : i32
    %c0_i32_1 = arith.constant 0 : i32
    return %arg0, %c0_i32, %c0_i32_0 : i32, i32, i32
  }
}

</mosaic_0001>

<bundles_post_ra>
// kernel: cross_attention_transformer.1
= control target key start
LH: loop header
LB: loop body
LE: loop exit
PB: predicated region body
PF: predicated region fallthrough
CT: control target
= control target key end

     0   :  { %s6222_s0 = inlined_call_operand.vmem [shape: f32[2,8,16], index: 0, kind: input, shape index: {}]   ;;  %s6223_s1 = inlined_call_operand.vmem [shape: f32[2,6,24], index: 1, kind: input, shape index: {}]   ;;  %s6224_s2 = inlined_call_operand.vmem [shape: bf16[16,128], index: 2, kind: input, shape index: {}]   ;;  %s6225_s3 = inlined_call_operand.vmem [shape: f32[1,128], index: 3, kind: input, shape index: {}]   ;;  %s6226_s4 = inlined_call_operand.vmem [shape: bf16[24,128], index: 4, kind: input, shape index: {}]   ;;  %s6227_s5 = inlined_call_operand.vmem [shape: f32[1,128], index: 5, kind: input, shape index: {}]   ;;  %s6228_s6 = inlined_call_operand.hbm [shape: bf16[2,128,128], index: 6, kind: input, shape index: {}]   ;;  %s6229_s7 = inlined_call_operand.vmem [shape: f32[2,1,128], index: 7, kind: input, shape index: {}]   ;;  %s6230_s8 = inlined_call_operand.hbm [shape: bf16[2,128,256], index: 8, kind: input, shape index: {}]   ;;  %s6231_s9 = inlined_call_operand.vmem [shape: f32[2,1,256], index: 9, kind: input, shape index: {}]   ;;  %s6232_s10 = inlined_call_operand.hbm [shape: bf16[2,128,128], index: 10, kind: input, shape index: {}]   ;;  %s6233_s11 = inlined_call_operand.vmem [shape: f32[2,1,128], index: 11, kind: input, shape index: {}]   ;;  %s6234_s12 = inlined_call_operand.vmem [shape: f32[2,1,128], index: 12, kind: input, shape index: {}]   ;;  %s6235_s13 = inlined_call_operand.vmem [shape: f32[2,1,128], index: 13, kind: input, shape index: {}]   ;;  %s6236_s14 = inlined_call_operand.vmem [shape: f32[1,128], index: 14, kind: input, shape index: {}]   ;;  %s6237_s15 = inlined_call_operand.vmem [shape: f32[1,128], index: 15, kind: input, shape index: {}]   ;;  %s6238_s16 = inlined_call_operand.vmem [shape: f32[2,8,128], index: 16, kind: output, shape index: {0}]   ;;  %s6239_s17 = inlined_call_operand.vmem [shape: f32[2,6,128], index: 17, kind: output, shape index: {1}]  }
   0x1   :  { %6243 = sst [smem:[#allocation10_spill]] %s6222_s0 }
   0x2   :  { %6244 = sst [smem:[#allocation11_spill]] %s6223_s1 }
   0x3   :  { %6245 = sst [smem:[#allocation12_spill]] %s6237_s15 }
   0x4   :  { %6246 = sst [smem:[#allocation13_spill]] %s6238_s16 }
   0x5   :  { %6247 = sst [smem:[#allocation14_spill]] %s6239_s17 }
   0x6   :  { %23 = vsyncpa [#allocation3], 0 }
   0x7   :  { %24 = vsyncpa [#allocation5], 0  ;;  %s5311_s24 = smov 0  }
   0x8 LB: > { %6248 = sst [smem:[#allocation9_spill]] %s5206_s24  ;;  %s5208_s25 = smov [#allocation4]   ;;  %s5206_s24 = sphi %s5311_s24, %s30_s24  }
   0x9   : > { %s473_s26 = sshll.u32 %s5208_s25, 4  ;;  %s5317_s27 = sadd.s32 4294967295, %s5206_s24   ;;  %s5326_s26 = int_to_ptr.vmem [resolvable:$true] %s473_s26 }
   0xa   : > { %p4261_p0 = scmp.ge.s32.totalorder %s5206_s24, 1  ;;  %p433_p1 = scmp.lt.s32.totalorder %s5206_s24, 3 }
   0xb   : > { %p6241_p2 = scmp.eq.s32.totalorder %s5317_s27, 0  ;;  %s5209_s29 = smov [#allocation2]  }
   0xc   : > { %p5322_p3 = pnand %p4261_p0, %p433_p1  ;;  %s457_s0 = sshll.u32 %s5209_s29, 4  ;;  %s5330_s0 = int_to_ptr.vmem [resolvable:$true] %s457_s0 }
   0xd   : > { %s5210_s18 = smov [#allocation6]   ;;  %s5108_s21 = scalar_lea.hbm %s6230_s8, 4096 }
   0xe   : > { %s6249_s28 = scalar_select %p5322_p3, 1, 0 }
   0xf   : > { %p4928_p4 = pneg %p5322_p3  ;;  %s5338_s19 = sshll.u32 %s5210_s18, 4  ;;  %s490_s19 = int_to_ptr.vmem [resolvable:$true] %s5338_s19 }
  0x10   : > { %p5109_p6 = scmp.ne.s32.totalorder %s6230_s8, %s5108_s21  ;;  %p5115_p10 = scmp.lt.u32.totalorder %s5108_s21, %s6230_s8 }
  0x11   : > { %p5334_p5 = pnand %p6241_p2, %p4928_p4 }
  0x13   : > { %p5348_p7 = pneg %p5334_p5 }
  0x15   : > { %p5111_p8 = pnand %p5348_p7, %p5109_p6 }
  0x17   : > { %p5112_p9 = pneg %p5111_p8 }
  0x19   : > { %p5117_p11 = pnand %p5115_p10, %p5112_p9 }
  0x1b   : > { %5120 = shalt.err (!%p5117_p11)
}
  0x1c   : > { %s5121_s1 = scalar_lea.vmem %s5326_s26, 4096  ;;  %p5129_p1 = scmp.lt.s32.totalorder %s5326_s26, %s5326_s26 }
  0x1d   : > { %p5122_p12 = scmp.ne.s32.totalorder %s5326_s26, %s5121_s1  ;;  %p5130_p4 = scmp.lt.s32.totalorder %s5121_s1, %s5121_s1 }
  0x1f   : > { %p5124_p13 = pnand %p5122_p12, %p5348_p7  ;;  %p5131_p6 = por %p5130_p4, %p5129_p1 }
  0x21   : > { %p5125_p0 = pneg %p5124_p13 }
  0x23   : > { %p5132_p8 = pnand %p5131_p6, %p5125_p0 }
  0x25   : > { %5135 = shalt.err (!%p5132_p8)
}
  0x26   : > { %s5211_s20 = smov 128   ;;  %s5212_s21 = smov 8  }
  0x27   : > { %4934 = dma.hbm_to_vmem [thread:$0]  (!%p5334_p5), %s6230_s8, 4096, %s5326_s26, [#allocation5], %s5211_s20, %s5211_s20, %s5212_s21  }
  0x28   : > { %s5136_s24 = scalar_lea.hbm %s6228_s6, 2048 }
  0x29   : > { %p5137_p9 = scmp.ne.s32.totalorder %s6228_s6, %s5136_s24  ;;  %p5143_p12 = scmp.lt.u32.totalorder %s5136_s24, %s6228_s6 }
  0x2b   : > { %p5139_p10 = pnand %p5137_p9, %p5348_p7 }
  0x2d   : > { %p5140_p11 = pneg %p5139_p10 }
  0x2f   : > { %p5145_p13 = pnand %p5143_p12, %p5140_p11 }
  0x31   : > { %5148 = shalt.err (!%p5145_p13)
}
  0x32   : > { %s5149_s26 = scalar_lea.vmem %s5330_s0, 2048  ;;  %p5157_p6 = scmp.lt.s32.totalorder %s5330_s0, %s5330_s0 }
  0x33   : > { %p5150_p0 = scmp.ne.s32.totalorder %s5330_s0, %s5149_s26  ;;  %p5158_p8 = scmp.lt.s32.totalorder %s5149_s26, %s5149_s26 }
  0x35   : > { %p5152_p1 = pnand %p5150_p0, %p5348_p7  ;;  %p5159_p9 = por %p5158_p8, %p5157_p6 }
  0x37   : > { %p5153_p4 = pneg %p5152_p1 }
  0x39   : > { %p5160_p10 = pnand %p5159_p9, %p5153_p4 }
  0x3b   : > { %5163 = shalt.err (!%p5160_p10)
}
  0x3c   : > { %s5213_s16 = smov 64   ;;  %s5214_s15 = smov 4  }
  0x3d   : > { %4931 = dma.hbm_to_vmem [thread:$0]  (!%p5334_p5), %s6228_s6, 2048, %s5330_s0, [#allocation3], %s5213_s16, %s5213_s16, %s5214_s15  }
  0x3e   : > { %s5164_s22 = scalar_lea.hbm %s6232_s10, 2048 }
  0x3f   : > { %p5165_p11 = scmp.ne.s32.totalorder %s6232_s10, %s5164_s22  ;;  %p5171_p0 = scmp.lt.u32.totalorder %s5164_s22, %s6232_s10 }
  0x41   : > { %p5167_p12 = pnand %p5165_p11, %p5348_p7 }
  0x43   : > { %p5168_p13 = pneg %p5167_p12 }
  0x45   : > { %p5173_p1 = pnand %p5171_p0, %p5168_p13 }
  0x47   : > { %5176 = shalt.err (!%p5173_p1)
}
  0x48   : > { %s5177_s26 = scalar_lea.vmem %s490_s19, 2048  ;;  %p5185_p9 = scmp.lt.s32.totalorder %s490_s19, %s490_s19 }
  0x49   : > { %p5178_p4 = scmp.ne.s32.totalorder %s490_s19, %s5177_s26  ;;  %p5186_p10 = scmp.lt.s32.totalorder %s5177_s26, %s5177_s26 }
  0x4b   : > { %p5180_p6 = pnand %p5178_p4, %p5348_p7  ;;  %p5187_p2 = por %p5186_p10, %p5185_p9 }
  0x4d   : > { %p5181_p8 = pneg %p5180_p6 }
  0x4f   : > { %p5188_p3 = pnand %p5187_p2, %p5181_p8 }
  0x51   : > { %5191 = shalt.err (!%p5188_p3)
}
  0x52   : > { %4937 = dma.hbm_to_vmem [thread:$0]  (!%p5334_p5), %s6232_s10, 2048, %s490_s19, [#allocation5], %s5213_s16, %s5213_s16, %s5214_s15  }
  0x53   : > { %p6252_p11 = scmp.ne.s32.totalorder %s6249_s28, 0 }
  0x54   : > { %p6253_p12 = scmp.eq.s32.totalorder (!%p6252_p11), %s5317_s27, 0 }
  0x55   : > { %534 = sbr.rel (%p6252_p11) target bundleno = 8034 (0x1f62), region = 84 }
  0x5c   : > { %5197 = dma.done.wait (%p6253_p12), [#allocation3], 2048   ;;  %p6254_p7 = pmov %p6253_p12 }
  0x5e   : > { %5199 = vsyncadd (%p6254_p7), [#allocation3], 4294965248  ;;  %p6255_p13 = pmov %p6254_p7 }
  0x5f   : > { %p6256_p2 = pmov %p6254_p7 }
  0x60   : > { %5201 = dma.done.wait (%p6255_p13), [#allocation5], 6144  }
  0x61   : > { %5203 = vsyncadd (%p6256_p2), [#allocation5], 4294961152  ;;  %p600_p3 = scmp.lt.s32.totalorder %s5317_s27, 1  ;;  %v5215_v0 = vmov 0.0   ;;  %vm5216_vm0 = vmmov 0   ;;  %s6257_s25 = sld [smem:[#allocation11_spill]]  ;;  %v885_v48 = vlaneseq }
  0x62   : > { %4540 = vmatprep.subr.bf16.mxu1 %v5215_v0  ;;  %4544 = vmatprep.mubr.msk.bf16.mxu1 %vm5216_vm0, %v5215_v0  ;;  %v4965_v1 = vld [vmem:[%s6226_s4] sm:$0xff]   ;;  %vm703_vm1 = vcmask 1043456   ;;  %s6258_s22 = sld [smem:[#allocation10_spill]]  ;;  %v4966_v2 = vld [vmem:[%s6226_s4 + $0x8] ss:$0 sps:$4 sm:$0xff]   ;;  %vm634_vm2 = vcmask 130048  }
  0x63   : > { %4534 = vmatprep.subr.bf16.mxu0 %v5215_v0  ;;  %s6264_s27 = smov (!%p600_p3, %s5317_s27), 1  ;;  %4536 = vmatprep.mubr.msk.bf16.mxu0 %vm5216_vm0, %v5215_v0  ;;  %v4967_v4 = vld [vmem:[%s6224_s2] sm:$0xff]   ;;  %v705_v5 = vsel %vm703_vm1, %v4966_v2, 0  ;;  %vm699_vm3 = vcmask 195584   ;;  %v5458_v12 = vld [vmem:[#allocation4 + $0x14] ss:$8 sps:$4 sm:$0xff]  }
  0x64   : > { %s5429_s28 = sshll.u32 %s6264_s27, 3  ;;  %4541 = vmatpush3.bf16.msra.mxu1 %v4965_v1  ;;  %4535 = vmatpush3.bf16.msra.mxu0 %v4967_v4  ;;  %v5450_v8 = vld [vmem:[#allocation4 + $0x4] ss:$8 sps:$4 sm:$0xff]   ;;  %v5452_v10 = vld [vmem:[#allocation4] ss:$8 sps:$4 sm:$0xff]   ;;  %v5473_v16 = vld [vmem:[#allocation2 + $0x10] sm:$0xff]  }
  0x65   : > { %4542 = vmatprep.subr.bf16.mxu1 %v5215_v0  ;;  %4548 = vmatprep.subr.bf16.mxu0 %v5215_v0  ;;  %v5455_v11 = vld [vmem:[#allocation2] sm:$0xff]   ;;  %v5464_v13 = vld [vmem:[#allocation2 + $0x8] sm:$0xff]   ;;  %v5467_v14 = vld [vmem:[#allocation4 + $0x10] ss:$8 sps:$4 sm:$0xff]   ;;  %v5217_v32 = vmov 0   ;;  %v5557_v49 = vshrl.u32 %v885_v48, 7 }
  0x66   : > { %v5470_v15 = vld [vmem:[#allocation4 + $0x24] ss:$8 sps:$4 sm:$0xff]   ;;  %v5477_v17 = vld [vmem:[#allocation4 + $0x20] ss:$8 sps:$4 sm:$0xff]   ;;  %v5480_v18 = vld [vmem:[#allocation4 + $0x34] ss:$8 sps:$4 sm:$0xff]  }
  0x67   : > { %s607_s16 = scalar_lea.vmem %s6257_s25, %s5429_s28  ;;  %v5483_v19 = vld [vmem:[#allocation2 + $0x18] sm:$0xff]   ;;  %v5489_v21 = vld [vmem:[#allocation4 + $0x44] ss:$8 sps:$4 sm:$0xff]   ;;  %v5494_v23 = vld [vmem:[#allocation4 + $0x40] ss:$8 sps:$4 sm:$0xff]   ;;  %v887_v50 = vsub.s32 0, %v5557_v49 }
  0x68   : > { %s603_s23 = scalar_lea.vmem %s6258_s22, %s5429_s28  ;;  %v678_v3 = vld [vmem:[%s607_s16] sm:$0x3f]  ;;  %4543 = vmatpush3.bf16.msra.mxu1 %v705_v5  ;;  %v5485_v20 = vld [vmem:[#allocation4 + $0x30] ss:$8 sps:$4 sm:$0xff]   ;;  %v5498_v24 = vld [vmem:[#allocation4 + $0x54] ss:$8 sps:$4 sm:$0xff]  }
  0x69   : > { %v617_v6 = vld [vmem:[%s603_s23] sm:$0xff]  ;;  %v679_v9 = vpack.c.bf16 %v678_v3, %v678_v3  ;;  %975 = vmatprep.subr.bf16.mxu1 %v5450_v8  ;;  %v5501_v25 = vld [vmem:[#allocation2 + $0x28] sm:$0xff]   ;;  %v5504_v26 = vld [vmem:[#allocation4 + $0x50] ss:$8 sps:$4 sm:$0xff]   ;;  %vm1018_vm4 = vcmask 64512   ;;  %s5218_s24 = smov 112  }
  0x6a   : > { %v618_v7 = vpack.c.bf16 %v617_v6, %v617_v6  ;;  %v5491_v22 = vld [vmem:[#allocation2 + $0x20] sm:$0xff]   ;;  %v5519_v29 = vld [vmem:[#allocation4 + $0x74] ss:$8 sps:$4 sm:$0xff]   ;;  %v5521_v30 = vld [vmem:[#allocation4 + $0x70] ss:$8 sps:$4 sm:$0xff]   ;;  %s5219_s20 = smov 120  }
  0x6b   : > { %4545 = vmatmul.mubr.msk.bf16.vlgmr.msra.gmra.mrb[0].mxu1 %vm699_vm3, %v679_v9  ;;  %v5508_v27 = vld [vmem:[#allocation4 + $0x64] ss:$8 sps:$4 sm:$0xff]   ;;  %v5512_v28 = vld [vmem:[#allocation4 + $0x60] ss:$8 sps:$4 sm:$0xff]   ;;  %v5523_v31 = vld [vmem:[#allocation2 + $0x30] sm:$0xff]   ;;  %s5220_s21 = smov 104  }
  0x6c   : > { %4537 = vmatmul.mubr.msk.bf16.vlgmr.msra.gmra.mrb[0].mxu0 %vm634_vm2, %v618_v7  ;;  %976 = vmatpush1.bf16.msra.mxu1 %v5452_v10  ;;  %v5531_v33 = vld [vmem:[#allocation2 + $0x38] sm:$0xff]   ;;  %v4274_v34 = vld [vmem:[%s6225_s3] ss:$0 sm:$0xff]  ;;  %v891_v4 = vsub.s32 1, %v5557_v49  ;;  %vm1267_vm5 = vcmask 1042432   ;;  %vm1217_vm6 = vcmask 48128  }
  0x6d   : > { %4549 = vmatpush3.bf16.msra.mxu0 %v5455_v11  ;;  %4564 = vmatprep.mubr.msk.bf16.mxu0 %vm5216_vm0, %v5215_v0  ;;  %v4277_v35 = vld [vmem:[%s6227_s5] ss:$0 sm:$0xff]  ;;  %vm1971_vm8 = vcmask 62464   ;;  %vm2393_vm9 = vcmask 1045504   ;;  %s6259_s18 = sld [smem:[#allocation12_spill]]  ;;  %s6260_s26 = sld [smem:[#allocation13_spill]] }
  0x6e   : > { %4550 = vmatprep.subr.bf16.mxu0 %v5215_v0  ;;  %977 = vmatprep.subr.bf16.mxu1 %v5458_v12  ;;  %v780_v51 = vld [vmem:[%s6231_s9] sm:$0x3]  ;;  %s6261_s19 = sld [smem:[#allocation14_spill]] }
  0x6f   : > { %1007 = vmatprep.mubr.bf16.mxu1 %v5217_v32  ;;  %v5565_v52 = vrot.slane %v780_v51, %v887_v50  ;;  %v5570_v53 = vld [vmem:[%s6229_s7] ss:$0 sm:$0xff]  ;;  %v5588_v5 = vrot.slane %v780_v51, %v891_v4 }
  0x70   : > { %978 = vmatpush1.bf16.msra.mxu1 %v5467_v14 }
  0x71   : > { %4551 = vmatpush3.bf16.msra.mxu0 %v5464_v13  ;;  %979 = vmatprep.subr.bf16.mxu1 %v5470_v15 }
  0x72   : > { %4552 = vmatprep.subr.bf16.mxu0 %v5215_v0 }
  0x73   : > { %s611_s0 = scalar_lea.vmem %s6260_s26, %s5429_s28 }
  0x74   : > { %980 = vmatpush1.bf16.msra.mxu1 %v5477_v17  ;;  %s615_s25 = scalar_lea.vmem %s6261_s19, %s5429_s28 }
  0x75   : > { %4553 = vmatpush3.bf16.msra.mxu0 %v5473_v16  ;;  %981 = vmatprep.subr.bf16.mxu1 %v5480_v18 }
  0x76   : > { %4554 = vmatprep.subr.bf16.mxu0 %v5215_v0 }
  0x78   : > { %982 = vmatpush1.bf16.msra.mxu1 %v5485_v20 }
  0x79   : > { %4555 = vmatpush3.bf16.msra.mxu0 %v5483_v19  ;;  %983 = vmatprep.subr.bf16.mxu1 %v5489_v21 }
  0x7a   : > { %4556 = vmatprep.subr.bf16.mxu0 %v5215_v0 }
  0x7c   : > { %984 = vmatpush1.bf16.msra.mxu1 %v5494_v23 }
  0x7d   : > { %4557 = vmatpush3.bf16.msra.mxu0 %v5491_v22  ;;  %985 = vmatprep.subr.bf16.mxu1 %v5498_v24 }
  0x7e   : > { %4558 = vmatprep.subr.bf16.mxu0 %v5215_v0 }
  0x80   : > { %986 = vmatpush1.bf16.msra.mxu1 %v5504_v26 }
  0x81   : > { %4559 = vmatpush3.bf16.msra.mxu0 %v5501_v25  ;;  %987 = vmatprep.subr.bf16.mxu1 %v5508_v27 }
  0x82   : > { %4560 = vmatprep.subr.bf16.mxu0 %v5215_v0 }
  0x84   : > { %988 = vmatpush1.bf16.msra.mxu1 %v5512_v28 }
  0x85   : > { %989 = vmatprep.subr.bf16.mxu1 %v5519_v29  ;;  %4561 = vmatpush3.bf16.msra.mxu0 %v5523_v31 }
  0x86   : > { %4562 = vmatprep.subr.bf16.mxu0 %v5215_v0 }
  0x88   : > { %990 = vmatpush1.bf16.msra.mxu1 %v5521_v30 }
  0x89   : > { %4574 = vmatprep.subr.bf16.mxu1 %v5215_v0  ;;  %4563 = vmatpush3.bf16.msra.mxu0 %v5531_v33 }
  0x8a   : > { %4568 = vmatprep.subr.bf16.mxu0 %v5215_v0 }
 0x13e   : > { %v741_v39 = vpop.f32.mrb[0].mxu1 }
 0x13f   : > { %v672_v36 = vpop.f32.mrb[0].mxu0  ;;  %v5543_v41 = vadd.f32 %v4277_v35, %v741_v39  ;;  %v4546_v42 = vpop.f32.mrb[1].mxu1 }
 0x140   : > { %v5541_v37 = vadd.f32 %v4274_v34, %v672_v36  ;;  %v4538_v38 = vpop.f32.mrb[1].mxu0  ;;  %v744_v45 = vpop.f32.mrb[2].mxu1 }
 0x141   : > { %v675_v40 = vpop.f32.mrb[2].mxu0  ;;  %v5549_v46 = vpack.c.bf16 %v5543_v41, %v5543_v41  ;;  %v4547_v47 = vpop.f32.mrb[3].mxu1 }
 0x142   : > { %v788_v43 = vpack.c.bf16 %v5541_v37, %v5541_v37  ;;  %v4539_v44 = vpop.f32.mrb[3].mxu0 }
 0x143   : > { %1008 = vmatmul.mubr.bf16.vlgmr.msra.gmra.mrb[4].mxu1 %v5549_v46 }
 0x144   : > { %4565 = vmatmul.mubr.bf16.vlgmr.msra.gmra.mrb[4].mxu0 %v788_v43  ;;  %4576 = vmatprep.mubr.msk.bf16.mxu1 %vm5216_vm0, %v5215_v0 }
 0x145   : > { %4570 = vmatprep.mubr.msk.bf16.mxu0 %vm5216_vm0, %v5215_v0 }
 0x216   : > { %v1009_v56 = vpop.f32.mrb[4].mxu1 }
 0x217   : > { %v877_v54 = vpop.f32.mrb[4].mxu0  ;;  %v1010_v58 = vadd.f32 %v1009_v56, %v5565_v52  ;;  %v1011_v59 = vpop.f32.mrb[5].mxu1 }
 0x218   : > { %v4566_v55 = vpop.f32.mrb[5].mxu0  ;;  %v878_v60 = vadd.f32 %v5570_v53, %v877_v54  ;;  %v1013_v62 = vpop.f32.mrb[6].mxu1  ;;  %v1012_v9 = vadd.f32 %v1011_v59, %v5588_v5 }
 0x219   : > { %v880_v57 = vpop.f32.mrb[6].mxu0  ;;  %v1017_v63 = vpack.c.bf16 %v1010_v58, %v1010_v58  ;;  %v1014_v1 = vpop.f32.mrb[7].mxu1 }
 0x21a   : > { %v4567_v61 = vpop.f32.mrb[7].mxu0  ;;  %v1016_v2 = vpack.c.bf16 %v878_v60, %v878_v60  ;;  %v5595_v38 = vpack.c.bf16 %v1012_v9, %v1012_v9 }
 0x21b   : > { %1119 = vrot.lane.b32.xlu1 %v1017_v63, %s5218_s24  ;;  %1069 = vrot.lane.b32.xlu0 %v1017_v63, %s5219_s20  ;;  %v1023_v3 = vsel %vm1018_vm4, %v1017_v63, 0 }
 0x21c   : > { %4569 = vmatpush3.bf16.xpose.msra.mxu0 %v1023_v3  ;;  %v1269_v43 = vsel %vm1267_vm5, %v5595_v38, 0 }
 0x21d   : > { %4580 = vmatprep.subr.bf16.mxu0 %v5215_v0 }
 0x21f   : > { %1117 = vrot.lane.b32.xlu1 %v1016_v2, %s5218_s24  ;;  %1066 = vrot.lane.b32.xlu0 %v1016_v2, %s5219_s20 }
 0x223   : > { %1167 = vrot.lane.b32.xlu1 %v1016_v2, %s5220_s21  ;;  %1169 = vrot.lane.b32.xlu0 %v1017_v63, %s5220_s21 }
 0x224   : > { %4571 = vmatmul.mubr.msk.bf16.vlgmr.msra.gmra.mrb[8].mxu0 %vm1018_vm4, %v1016_v2 }
 0x225   : > { %4582 = vmatprep.mubr.msk.bf16.mxu0 %vm5216_vm0, %v5215_v0 }
 0x28d   : > { %v1120_v6 = vpop.permute.xlu1 %1119  ;;  %v1070_v7 = vpop.permute.xlu0 %1069 }
 0x28e   : > { %v1125_v34 = vsel %vm1018_vm4, %v1120_v6, 0  ;;  %v1075_v35 = vsel %vm1018_vm4, %v1070_v7, 0 }
 0x28f   : > { %4575 = vmatpush3.bf16.xpose.msra.mxu1 %v1075_v35  ;;  %4581 = vmatpush3.bf16.xpose.msra.mxu0 %v1125_v34 }
 0x290   : > { %4586 = vmatprep.subr.bf16.mxu1 %v5215_v0  ;;  %4592 = vmatprep.subr.bf16.mxu0 %v5215_v0 }
 0x291   : > { %v1067_v36 = vpop.permute.xlu0 %1066  ;;  %v1118_v39 = vpop.permute.xlu1 %1117 }
 0x295   : > { %v1170_v40 = vpop.permute.xlu0 %1169  ;;  %v1168_v44 = vpop.permute.xlu1 %1167 }
 0x296   : > { %v1175_v42 = vsel %vm1018_vm4, %v1170_v40, 0  ;;  %4577 = vmatmul.mubr.msk.bf16.vlgmr.msra.gmra.mrb[8].mxu1 %vm1018_vm4, %v1067_v36  ;;  %4583 = vmatmul.mubr.msk.bf16.vlgmr.msra.gmra.mrb[12].mxu0 %vm1018_vm4, %v1118_v39 }
 0x297   : > { %4587 = vmatpush3.bf16.xpose.msra.mxu1 %v1175_v42  ;;  %4593 = vmatpush3.bf16.msra.mxu0 %v1269_v43 }
 0x298   : > { %4588 = vmatprep.mubr.msk.bf16.mxu1 %vm5216_vm0, %v5215_v0  ;;  %4598 = vmatprep.subr.bf16.mxu1 %v5215_v0 }
 0x299   : > { %4594 = vmatprep.mubr.msk.bf16.mxu0 %vm5216_vm0, %v5215_v0  ;;  %4604 = vmatprep.subr.bf16.mxu0 %v5215_v0 }
 0x29e   : > { %4589 = vmatmul.mubr.msk.bf16.vlgmr.msra.gmra.mrb[12].mxu1 %vm1018_vm4, %v1168_v44 }
 0x29f   : > { %4600 = vmatprep.mubr.msk.bf16.mxu1 %vm5216_vm0, %v5215_v0 }
 0x2f7   : > { %v1059_v45 = vpop.f32.mrb[8].mxu0 }
 0x2f8   : > { %v4572_v47 = vpop.f32.mrb[9].mxu0  ;;  %v1218_v42 = vsel %vm1217_vm6, %v1059_v45, -inf }
 0x2f9   : > { %v1062_v51 = vpop.f32.mrb[10].mxu0 }
 0x2fa   : > { %v4573_v54 = vpop.f32.mrb[11].mxu0 }
 0x369   : > { %v1111_v55 = vpop.f32.mrb[8].mxu1  ;;  %v1161_v56 = vpop.f32.mrb[12].mxu0 }
 0x36a   : > { %v4578_v57 = vpop.f32.mrb[9].mxu1  ;;  %v4584_v58 = vpop.f32.mrb[13].mxu0  ;;  %v1221_v59 = vsel %vm1217_vm6, %v1111_v55, -inf  ;;  %v1224_v43 = vsel %vm1217_vm6, %v1161_v56, -inf }
 0x36b   : > { %1222 = vmax.xlane.f32.xlu0 %v1221_v59  ;;  %v1114_v60 = vpop.f32.mrb[10].mxu1  ;;  %v1164_v61 = vpop.f32.mrb[14].mxu0 }
 0x36c   : > { %v4579_v62 = vpop.f32.mrb[11].mxu1  ;;  %v4585_v63 = vpop.f32.mrb[15].mxu0 }
 0x371   : > { %v1211_v1 = vpop.f32.mrb[12].mxu1 }
 0x372   : > { %v4590_v2 = vpop.f32.mrb[13].mxu1  ;;  %v1227_v44 = vsel %vm1217_vm6, %v1211_v1, -inf }
 0x373   : > { %v1214_v3 = vpop.f32.mrb[14].mxu1 }
 0x374   : > { %v4591_v6 = vpop.f32.mrb[15].mxu1 }
 0x381   : > { %1314 = vrot.lane.b32.xlu0 %v5595_v38, %s5219_s20 }
 0x3f8   : > { %v1223_v7 = vpop.xlane.xlu0 %1222 }
 0x3f9   : > { %v1231_v9 = vsub.f32 %v1111_v55, %v1223_v7 }
 0x3fb   : > { %v1236_v34 = vmul.f32 1.442695, %v1231_v9 }
 0x3fc   : > { %v1315_v35 = vpop.permute.xlu0 %1314 }
 0x3fd   : > { %5032 = vpow2.f32 %v1236_v34  ;;  %v1320_v36 = vsel %vm1267_vm5, %v1315_v35, 0 }
 0x3fe   : > { %4599 = vmatpush3.bf16.msra.mxu1 %v1320_v36  ;;  %v782_v36 = vld [vmem:[#allocation6 + $0x4] sm:$0xf] }
 0x3ff   : > { %4610 = vmatprep.subr.bf16.mxu1 %v5215_v0 }
 0x407   : > { %v5033_v39 = vpop.eup %5032 }
 0x408   : > { %v1245_v40 = vsel %vm1217_vm6, %v5033_v39, 0.0 }
 0x409   : > { %1246 = vadd.xlane.f32.xlu1 %v1245_v40 }
 0x40d   : > { %1219 = vmax.xlane.f32.xlu1 %v1218_v42  ;;  %v5631_v42 = vsel %vm703_vm1, %v782_v36, 0 }
 0x411   : > { %1225 = vmax.xlane.f32.xlu1 %v1224_v43 }
 0x415   : > { %1228 = vmax.xlane.f32.xlu1 %v1227_v44 }
 0x496   : > { %v1247_v47 = vpop.xlane.xlu1 %1246 }
 0x497   : > { %5034 = vrcp.f32 %v1247_v47 }
 0x49a   : > { %v1220_v51 = vpop.xlane.xlu1 %1219 }
 0x49b   : > { %v1230_v54 = vsub.f32 %v1059_v45, %v1220_v51 }
 0x49d   : > { %v1234_v55 = vmul.f32 1.442695, %v1230_v54 }
 0x49e   : > { %v1226_v57 = vpop.xlane.xlu1 %1225 }
 0x49f   : > { %5036 = vpow2.f32 %v1234_v55  ;;  %v1232_v58 = vsub.f32 %v1161_v56, %v1226_v57 }
 0x4a1   : > { %v5035_v59 = vpop.eup %5034  ;;  %v1238_v60 = vmul.f32 1.442695, %v1232_v58 }
 0x4a2   : > { %v1259_v61 = vmul.f32 %v5035_v59, %v5033_v39  ;;  %v1229_v62 = vpop.xlane.xlu1 %1228 }
 0x4a3   : > { %5038 = vpow2.f32 %v1238_v60  ;;  %v1233_v63 = vsub.f32 %v1211_v1, %v1229_v62 }
 0x4a4   : > { %v1312_v2 = vpack.c.bf16 %v1259_v61, %v1259_v61 }
 0x4a5   : > { %v1240_v3 = vmul.f32 1.442695, %v1233_v63 }
 0x4a6   : > { %4601 = vmatmul.mubr.msk.bf16.vlgmr.msra.gmra.mrb[16].mxu1 %vm1217_vm6, %v1312_v2 }
 0x4a7   : > { %5040 = vpow2.f32 %v1240_v3  ;;  %4612 = vmatprep.mubr.msk.bf16.mxu1 %vm5216_vm0, %v5215_v0 }
 0x4a9   : > { %v5037_v6 = vpop.eup %5036 }
 0x4aa   : > { %v1242_v45 = vsel %vm1217_vm6, %v5037_v6, 0.0 }
 0x4ab   : > { %1243 = vadd.xlane.f32.xlu1 %v1242_v45  ;;  %v781_v45 = vld [vmem:[#allocation6] sm:$0xf] }
 0x4ad   : > { %v5039_v7 = vpop.eup %5038 }
 0x4ae   : > { %v1248_v56 = vsel %vm1217_vm6, %v5039_v7, 0.0 }
 0x4af   : > { %1249 = vadd.xlane.f32.xlu1 %v1248_v56 }
 0x4b1   : > { %v5041_v9 = vpop.eup %5040 }
 0x4b2   : > { %v1251_v34 = vsel %vm1217_vm6, %v5041_v9, 0.0 }
 0x4b3   : > { %1252 = vadd.xlane.f32.xlu0 %v1251_v34  ;;  %v784_v34 = vld [vmem:[#allocation6 + $0xc] sm:$0xf] }
 0x4c0   : > { %1456 = vrot.lane.b32.xlu1 %v5595_v38, %s5218_s24 }
 0x4c4   : > { %1553 = vrot.lane.b32.xlu1 %v5595_v38, %s5220_s21 }
 0x538   : > { %v1244_v1 = vpop.xlane.xlu1 %1243 }
 0x539   : > { %5042 = vrcp.f32 %v1244_v1 }
 0x53c   : > { %v1250_v43 = vpop.xlane.xlu1 %1249 }
 0x53d   : > { %5044 = vrcp.f32 %v1250_v43 }
 0x540   : > { %v1253_v38 = vpop.xlane.xlu0 %1252  ;;  %v1457_v44 = vpop.permute.xlu1 %1456 }
 0x541   : > { %5046 = vrcp.f32 %v1253_v38  ;;  %v1462_v58 = vsel %vm1267_vm5, %v1457_v44, 0 }
 0x543   : > { %v5043_v35 = vpop.eup %5042 }
 0x544   : > { %v1258_v39 = vmul.f32 %v5043_v35, %v5037_v6  ;;  %v1554_v61 = vpop.permute.xlu1 %1553 }
 0x545   : > { %v1559_v2 = vsel %vm1267_vm5, %v1554_v61, 0 }
 0x546   : > { %v1263_v40 = vpack.c.bf16 %v1258_v39, %v1258_v39  ;;  %v5684_v39 = vsel %vm703_vm1, %v784_v34, 0 }
 0x547   : > { %v5045_v55 = vpop.eup %5044 }
 0x548   : > { %4595 = vmatmul.mubr.msk.bf16.vlgmr.msra.gmra.mrb[16].mxu0 %vm1217_vm6, %v1263_v40  ;;  %v1260_v60 = vmul.f32 %v5045_v55, %v5039_v7 }
 0x549   : > { %4605 = vmatpush3.bf16.msra.mxu0 %v5631_v42  ;;  %4606 = vmatprep.mubr.msk.bf16.mxu0 %vm5216_vm0, %v5215_v0 }
 0x54a   : > { %4616 = vmatprep.subr.bf16.mxu0 %v5215_v0  ;;  %v1455_v62 = vpack.c.bf16 %v1260_v60, %v1260_v60 }
 0x54b   : > { %v5047_v63 = vpop.eup %5046 }
 0x54c   : > { %v1261_v3 = vmul.f32 %v5047_v63, %v5041_v9 }
 0x54e   : > { %v1552_v6 = vpack.c.bf16 %v1261_v3, %v1261_v3 }
 0x579   : > { %v1356_v47 = vpop.f32.mrb[16].mxu1 }
 0x57a   : > { %v1362_v51 = vpack.c.bf16 %v1356_v47, %v1356_v47  ;;  %v4602_v54 = vpop.f32.mrb[17].mxu1 }
 0x57b   : > { %v1359_v57 = vpop.f32.mrb[18].mxu1 }
 0x57c   : > { %v4603_v59 = vpop.f32.mrb[19].mxu1  ;;  %4607 = vmatmul.mubr.msk.bf16.vlgmr.msra.gmra.mrb[20].mxu0 %vm1018_vm4, %v1362_v51 }
 0x57d   : > { %4617 = vmatpush3.bf16.msra.mxu0 %v1462_v58  ;;  %4618 = vmatprep.mubr.msk.bf16.mxu0 %vm5216_vm0, %v5215_v0 }
 0x57e   : > { %4628 = vmatprep.subr.bf16.mxu0 %v5215_v0 }
 0x584   : > { %4619 = vmatmul.mubr.msk.bf16.vlgmr.msra.gmra.mrb[24].mxu0 %vm1217_vm6, %v1455_v62 }
 0x585   : > { %4629 = vmatpush3.bf16.msra.mxu0 %v1559_v2  ;;  %4630 = vmatprep.mubr.msk.bf16.mxu0 %vm5216_vm0, %v5215_v0 }
 0x586   : > { %4640 = vmatprep.subr.bf16.mxu0 %v5215_v0 }
 0x58c   : > { %4631 = vmatmul.mubr.msk.bf16.vlgmr.msra.gmra.mrb[28].mxu0 %vm1217_vm6, %v1552_v6 }
 0x58d   : > { %4641 = vmatpush3.bf16.msra.mxu0 %v5455_v11  ;;  %4656 = vmatprep.mubr.msk.bf16.mxu0 %vm5216_vm0, %v5215_v0  ;;  %v5660_v11 = vsel %vm703_vm1, %v781_v45, 0 }
 0x58e   : > { %4642 = vmatprep.subr.bf16.mxu0 %v5215_v0  ;;  %4611 = vmatpush3.bf16.msra.mxu1 %v5660_v11 }
 0x58f   : > { %4622 = vmatprep.subr.bf16.mxu1 %v5215_v0 }
 0x591   : > { %4643 = vmatpush3.bf16.msra.mxu0 %v5464_v13  ;;  %v783_v13 = vld [vmem:[#allocation6 + $0x8] sm:$0xf] }
 0x592   : > { %4644 = vmatprep.subr.bf16.mxu0 %v5215_v0 }
 0x595   : > { %4645 = vmatpush3.bf16.msra.mxu0 %v5473_v16 }
 0x596   : > { %4646 = vmatprep.subr.bf16.mxu0 %v5215_v0 }
 0x599   : > { %4647 = vmatpush3.bf16.msra.mxu0 %v5483_v19 }
 0x59a   : > { %4648 = vmatprep.subr.bf16.mxu0 %v5215_v0 }
 0x59d   : > { %4649 = vmatpush3.bf16.msra.mxu0 %v5491_v22 }
 0x59e   : > { %4650 = vmatprep.subr.bf16.mxu0 %v5215_v0 }
 0x5a1   : > { %4651 = vmatpush3.bf16.msra.mxu0 %v5501_v25  ;;  %v5676_v25 = vsel %vm703_vm1, %v783_v13, 0 }
 0x5a2   : > { %4652 = vmatprep.subr.bf16.mxu0 %v5215_v0 }
 0x5a5   : > { %4653 = vmatpush3.bf16.msra.mxu0 %v5523_v31 }
 0x5a6   : > { %4654 = vmatprep.subr.bf16.mxu0 %v5215_v0 }
 0x5a9   : > { %4655 = vmatpush3.bf16.msra.mxu0 %v5531_v33 }
 0x5aa   : > { %4660 = vmatprep.subr.bf16.mxu0 %v5215_v0 }
 0x5ac   : > { %4657 = vmatmul.mubr.bf16.vlgmr.msra.gmra.mrb[32].mxu0 %v5549_v46 }
 0x5ad   : > { %4662 = vmatprep.mubr.msk.bf16.mxu0 %vm5216_vm0, %v5215_v0 }
 0x61b   : > { %v1305_v16 = vpop.f32.mrb[16].mxu0 }
 0x61c   : > { %v1311_v19 = vpack.c.bf16 %v1305_v16, %v1305_v16  ;;  %v4596_v22 = vpop.f32.mrb[17].mxu0 }
 0x61d   : > { %v1308_v7 = vpop.f32.mrb[18].mxu0 }
 0x61e   : > { %v4597_v31 = vpop.f32.mrb[19].mxu0  ;;  %4613 = vmatmul.mubr.msk.bf16.vlgmr.msra.gmra.mrb[20].mxu1 %vm1018_vm4, %v1311_v19 }
 0x61f   : > { %4623 = vmatpush3.bf16.msra.mxu1 %v5676_v25  ;;  %4624 = vmatprep.mubr.msk.bf16.mxu1 %vm5216_vm0, %v5215_v0  ;;  %v5725_v31 = vld [vmem:[%s6234_s12] ss:$0 sm:$0xff] }
 0x620   : > { %4634 = vmatprep.subr.bf16.mxu1 %v5215_v0 }
 0x64f   : > { %v1403_v33 = vpop.f32.mrb[20].mxu0 }
 0x650   : > { %v4608_v46 = vpop.f32.mrb[21].mxu0 }
 0x651   : > { %v1406_v56 = vpop.f32.mrb[22].mxu0 }
 0x652   : > { %v4609_v9 = vpop.f32.mrb[23].mxu0 }
 0x657   : > { %v1498_v1 = vpop.f32.mrb[24].mxu0 }
 0x658   : > { %v1504_v35 = vpack.c.bf16 %v1498_v1, %v1498_v1  ;;  %v4620_v36 = vpop.f32.mrb[25].mxu0 }
 0x659   : > { %v1501_v40 = vpop.f32.mrb[26].mxu0 }
 0x65a   : > { %v4621_v43 = vpop.f32.mrb[27].mxu0  ;;  %4625 = vmatmul.mubr.msk.bf16.vlgmr.msra.gmra.mrb[24].mxu1 %vm1018_vm4, %v1504_v35 }
 0x65b   : > { %4635 = vmatpush3.bf16.msra.mxu1 %v5684_v39  ;;  %4636 = vmatprep.mubr.msk.bf16.mxu1 %vm5216_vm0, %v5215_v0 }
 0x65c   : > { %1730 = vmatprep.subr.bf16.mxu1 %v5450_v8 }
 0x65f   : > { %v1595_v38 = vpop.f32.mrb[28].mxu0 }
 0x660   : > { %v1601_v44 = vpack.c.bf16 %v1595_v38, %v1595_v38  ;;  %v4632_v47 = vpop.f32.mrb[29].mxu0 }
 0x661   : > { %v1598_v51 = vpop.f32.mrb[30].mxu0 }
 0x662   : > { %v4633_v54 = vpop.f32.mrb[31].mxu0  ;;  %4637 = vmatmul.mubr.msk.bf16.vlgmr.msra.gmra.mrb[28].mxu1 %vm1018_vm4, %v1601_v44 }
 0x663   : > { %1731 = vmatpush1.bf16.msra.mxu1 %v5452_v10  ;;  %1762 = vmatprep.mubr.bf16.mxu1 %v5217_v32 }
 0x664   : > { %1732 = vmatprep.subr.bf16.mxu1 %v5458_v12 }
 0x667   : > { %1733 = vmatpush1.bf16.msra.mxu1 %v5467_v14 }
 0x668   : > { %1734 = vmatprep.subr.bf16.mxu1 %v5470_v15 }
 0x66b   : > { %1735 = vmatpush1.bf16.msra.mxu1 %v5477_v17 }
 0x66c   : > { %1736 = vmatprep.subr.bf16.mxu1 %v5480_v18 }
 0x66f   : > { %1737 = vmatpush1.bf16.msra.mxu1 %v5485_v20 }
 0x670   : > { %1738 = vmatprep.subr.bf16.mxu1 %v5489_v21 }
 0x673   : > { %1739 = vmatpush1.bf16.msra.mxu1 %v5494_v23 }
 0x674   : > { %1740 = vmatprep.subr.bf16.mxu1 %v5498_v24 }
 0x677   : > { %1741 = vmatpush1.bf16.msra.mxu1 %v5504_v26 }
 0x678   : > { %1742 = vmatprep.subr.bf16.mxu1 %v5508_v27 }
 0x67b   : > { %1743 = vmatpush1.bf16.msra.mxu1 %v5512_v28 }
 0x67c   : > { %1744 = vmatprep.subr.bf16.mxu1 %v5519_v29  ;;  %v1658_v29 = vand.u32 127, %v885_v48 }
 0x67e   : > { %vm1659_vm7 = vcmp.lt.s32.totalorder %v1658_v29, 32 }
 0x67f   : > { %v1723_v8 = vpop.f32.mrb[32].mxu0  ;;  %1745 = vmatpush1.bf16.msra.mxu1 %v5521_v30  ;;  %v5713_v30 = vld [vmem:[%s6233_s11] ss:$0 sm:$0xff]  ;;  %v5717_v62 = vsel %vm1659_vm7, 1.0, %v5215_v0 }
 0x680   : > { %v4658_v10 = vpop.f32.mrb[33].mxu0  ;;  %4666 = vmatprep.subr.bf16.mxu1 %v5215_v0  ;;  %v1724_v40 = vadd.f32 %v5570_v53, %v1723_v8 }
 0x681   : > { %v1726_v12 = vpop.f32.mrb[34].mxu0 }
 0x682   : > { %v4659_v14 = vpop.f32.mrb[35].mxu0  ;;  %v1771_v47 = vpack.c.bf16 %v1724_v40, %v1724_v40 }
 0x6f1   : > { %v1449_v15 = vpop.f32.mrb[20].mxu1 }
 0x6f2   : > { %v1450_v17 = vadd.f32 %v1449_v15, %v1403_v33  ;;  %v4614_v18 = vpop.f32.mrb[21].mxu1  ;;  %v5730_v33 = vld [vmem:[%s6235_s13] ss:$0 sm:$0xff] }
 0x6f3   : > { %v1452_v20 = vpop.f32.mrb[22].mxu1 }
 0x6f4   : > { %v4615_v21 = vpop.f32.mrb[23].mxu1 }
 0x72d   : > { %v1545_v23 = vpop.f32.mrb[24].mxu1 }
 0x72e   : > { %v1551_v24 = vadd.f32 %v1545_v23, %v1450_v17  ;;  %v4626_v26 = vpop.f32.mrb[25].mxu1 }
 0x72f   : > { %v1548_v27 = vpop.f32.mrb[26].mxu1 }
 0x730   : > { %v4627_v28 = vpop.f32.mrb[27].mxu1 }
 0x735   : > { %v1642_v55 = vpop.f32.mrb[28].mxu1 }
 0x736   : > { %v1648_v57 = vadd.f32 %v1642_v55, %v1551_v24  ;;  %v4638_v58 = vpop.f32.mrb[29].mxu1 }
 0x737   : > { %v1645_v59 = vpop.f32.mrb[30].mxu1 }
 0x738   : > { %v1655_v60 = vadd.f32 %v5713_v30, %v1648_v57  ;;  %v4639_v61 = vpop.f32.mrb[31].mxu1 }
 0x73a   : > { %v1656_v63 = vadd.f32 %v1655_v60, %v5541_v37 }
 0x73c   : > { %v1662_v48 = vmul.f32 %v5717_v62, %v1656_v63 }
 0x73e   : > { %1663 = vadd.xlane.f32.xlu1 %v1662_v48 }
 0x7cb   : > { %v1664_v2 = vpop.xlane.xlu1 %1663 }
 0x7cc   : > { %v1665_v3 = vmul.f32 0.03125, %v1664_v2 }
 0x7ce   : > { %v1666_v6 = vsub.f32 %v1656_v63, %v1665_v3 }
 0x7d0   : > { %v1667_v45 = vmul.f32 %v5717_v62, %v1666_v6 }
 0x7d2   : > { %v1668_v13 = vmul.f32 %v1667_v45, %v1667_v45 }
 0x7d4   : > { %1669 = vadd.xlane.f32.xlu0 %v1668_v13 }
 0x861   : > { %v1670_v16 = vpop.xlane.xlu0 %1669 }
 0x862   : > { %v1671_v19 = vmul.f32 0.03125, %v1670_v16 }
 0x864   : > { %v1672_v22 = vadd.f32 1e-05, %v1671_v19 }
 0x866   : > { %5048 = vrsqrt.f32 %v1672_v22 }
 0x870   : > { %v5049_v7 = vpop.eup %5048 }
 0x871   : > { %v1674_v37 = vmul.f32 %v5049_v7, %v1667_v45 }
 0x873   : > { %v1681_v46 = vmul.f32 %v5725_v31, %v1674_v37 }
 0x875   : > { %v5734_v56 = vadd.f32 %v5730_v33, %v1681_v46 }
 0x877   : > { %v5738_v9 = vpack.c.bf16 %v5734_v56, %v5734_v56 }
 0x879   : > { %1763 = vmatmul.mubr.bf16.vlgmr.msra.gmra.mrb[32].mxu1 %v5738_v9 }
 0x87a   : > { %4668 = vmatprep.mubr.msk.bf16.mxu1 %vm5216_vm0, %v5215_v0 }
 0x94c   : > { %v1764_v34 = vpop.f32.mrb[32].mxu1 }
 0x94d   : > { %v1765_v1 = vadd.f32 %v1764_v34, %v5565_v52  ;;  %v1766_v35 = vpop.f32.mrb[33].mxu1 }
 0x94e   : > { %v1768_v36 = vpop.f32.mrb[34].mxu1  ;;  %v1767_v51 = vadd.f32 %v1766_v35, %v5588_v5 }
 0x94f   : > { %v1772_v43 = vpack.c.bf16 %v1765_v1, %v1765_v1  ;;  %v1769_v38 = vpop.f32.mrb[35].mxu1 }
 0x950   : > { %v5761_v12 = vpack.c.bf16 %v1767_v51, %v1767_v51 }
 0x951   : > { %1873 = vrot.lane.b32.xlu1 %v1772_v43, %s5218_s24  ;;  %1823 = vrot.lane.b32.xlu0 %v1772_v43, %s5219_s20  ;;  %v1777_v44 = vsel %vm1018_vm4, %v1772_v43, 0 }
 0x952   : > { %4661 = vmatpush3.bf16.xpose.msra.mxu0 %v1777_v44  ;;  %v2022_v5 = vsel %vm703_vm1, %v5761_v12, 0 }
 0x953   : > { %4672 = vmatprep.subr.bf16.mxu0 %v5215_v0 }
 0x955   : > { %1820 = vrot.lane.b32.xlu0 %v1771_v47, %s5219_s20 }
 0x959   : > { %1871 = vrot.lane.b32.xlu0 %v1771_v47, %s5218_s24  ;;  %4663 = vmatmul.mubr.msk.bf16.vlgmr.msra.gmra.mrb[36].mxu0 %vm1018_vm4, %v1771_v47 }
 0x95a   : > { %4674 = vmatprep.mubr.msk.bf16.mxu0 %vm5216_vm0, %v5215_v0 }
 0x95d   : > { %1923 = vrot.lane.b32.xlu0 %v1772_v43, %s5220_s21 }
 0x961   : > { %1921 = vrot.lane.b32.xlu0 %v1771_v47, %s5220_s21 }
 0x9c3   : > { %v1874_v52 = vpop.permute.xlu1 %1873  ;;  %v1824_v53 = vpop.permute.xlu0 %1823 }
 0x9c4   : > { %v1879_v54 = vsel %vm1018_vm4, %v1874_v52, 0  ;;  %v1829_v8 = vsel %vm1018_vm4, %v1824_v53, 0 }
 0x9c5   : > { %4667 = vmatpush3.bf16.xpose.msra.mxu1 %v1829_v8  ;;  %4673 = vmatpush3.bf16.xpose.msra.mxu0 %v1879_v54 }
 0x9c6   : > { %4684 = vmatprep.subr.bf16.mxu0 %v5215_v0  ;;  %4678 = vmatprep.subr.bf16.mxu1 %v5215_v0 }
 0x9c7   : > { %v1821_v10 = vpop.permute.xlu0 %1820 }
 0x9cb   : > { %v1872_v14 = vpop.permute.xlu0 %1871 }
 0x9cc   : > { %4669 = vmatmul.mubr.msk.bf16.vlgmr.msra.gmra.mrb[36].mxu1 %vm1018_vm4, %v1821_v10  ;;  %4675 = vmatmul.mubr.msk.bf16.vlgmr.msra.gmra.mrb[40].mxu0 %vm1018_vm4, %v1872_v14 }
 0x9cd   : > { %4685 = vmatpush3.bf16.msra.mxu0 %v2022_v5  ;;  %4680 = vmatprep.mubr.msk.bf16.mxu1 %vm5216_vm0, %v5215_v0 }
 0x9ce   : > { %4686 = vmatprep.mubr.msk.bf16.mxu0 %vm5216_vm0, %v5215_v0  ;;  %4696 = vmatprep.subr.bf16.mxu0 %v5215_v0 }
 0x9cf   : > { %v1924_v15 = vpop.permute.xlu0 %1923 }
 0x9d0   : > { %v1929_v17 = vsel %vm1018_vm4, %v1924_v15, 0 }
 0x9d1   : > { %4679 = vmatpush3.bf16.xpose.msra.mxu1 %v1929_v17 }
 0x9d2   : > { %4690 = vmatprep.subr.bf16.mxu1 %v5215_v0 }
 0x9d3   : > { %v1922_v18 = vpop.permute.xlu0 %1921 }
 0x9d8   : > { %4681 = vmatmul.mubr.msk.bf16.vlgmr.msra.gmra.mrb[40].mxu1 %vm1018_vm4, %v1922_v18 }
 0x9d9   : > { %4692 = vmatprep.mubr.msk.bf16.mxu1 %vm5216_vm0, %v5215_v0 }
 0xa2c   : > { %v1813_v20 = vpop.f32.mrb[36].mxu0 }
 0xa2d   : > { %v4664_v21 = vpop.f32.mrb[37].mxu0  ;;  %v1972_v7 = vsel %vm1971_vm8, %v1813_v20, -inf }
 0xa2e   : > { %v1816_v23 = vpop.f32.mrb[38].mxu0 }
 0xa2f   : > { %v4665_v24 = vpop.f32.mrb[39].mxu0 }
 0xa9f   : > { %v1865_v26 = vpop.f32.mrb[36].mxu1  ;;  %v1915_v27 = vpop.f32.mrb[40].mxu0 }
 0xaa0   : > { %v4670_v28 = vpop.f32.mrb[37].mxu1  ;;  %v4676_v29 = vpop.f32.mrb[41].mxu0  ;;  %v1975_v55 = vsel %vm1971_vm8, %v1865_v26, -inf  ;;  %v1978_v37 = vsel %vm1971_vm8, %v1915_v27, -inf }
 0xaa1   : > { %1976 = vmax.xlane.f32.xlu0 %v1975_v55  ;;  %v1868_v57 = vpop.f32.mrb[38].mxu1  ;;  %v1918_v58 = vpop.f32.mrb[42].mxu0 }
 0xaa2   : > { %v4671_v59 = vpop.f32.mrb[39].mxu1  ;;  %v4677_v60 = vpop.f32.mrb[43].mxu0 }
 0xaab   : > { %v1965_v61 = vpop.f32.mrb[40].mxu1 }
 0xaac   : > { %v4682_v63 = vpop.f32.mrb[41].mxu1  ;;  %v1981_v46 = vsel %vm1971_vm8, %v1965_v61, -inf }
 0xaad   : > { %v1968_v48 = vpop.f32.mrb[42].mxu1 }
 0xaae   : > { %v4683_v2 = vpop.f32.mrb[43].mxu1 }
 0xaaf   : > { %v5813_v2 = vld [vmem:[#allocation2 + $0x40] sm:$0xff]  }
 0xab7   : > { %2067 = vrot.lane.b32.xlu0 %v5761_v12, %s5219_s20 }
 0xb2e   : > { %v1977_v3 = vpop.xlane.xlu0 %1976 }
 0xb2f   : > { %v1985_v6 = vsub.f32 %v1865_v26, %v1977_v3 }
 0xb31   : > { %v1990_v45 = vmul.f32 1.442695, %v1985_v6  ;;  %v5817_v6 = vld [vmem:[#allocation2 + $0x48] sm:$0xff]  }
 0xb32   : > { %v2068_v13 = vpop.permute.xlu0 %2067 }
 0xb33   : > { %5050 = vpow2.f32 %v1990_v45  ;;  %v2073_v16 = vsel %vm703_vm1, %v2068_v13, 0  ;;  %v5823_v45 = vld [vmem:[#allocation2 + $0x50] sm:$0xff]   ;;  %v5827_v13 = vld [vmem:[#allocation2 + $0x58] sm:$0xff]  }
 0xb34   : > { %4691 = vmatpush3.bf16.msra.mxu1 %v2073_v16  ;;  %v5831_v16 = vld [vmem:[#allocation2 + $0x60] sm:$0xff]  }
 0xb35   : > { %4702 = vmatprep.subr.bf16.mxu1 %v5215_v0 }
 0xb3d   : > { %v5051_v19 = vpop.eup %5050 }
 0xb3e   : > { %v1999_v22 = vsel %vm1971_vm8, %v5051_v19, 0.0 }
 0xb3f   : > { %2000 = vadd.xlane.f32.xlu1 %v1999_v22  ;;  %v5839_v22 = vld [vmem:[#allocation2 + $0x70] sm:$0xff]  }
 0xb43   : > { %1973 = vmax.xlane.f32.xlu1 %v1972_v7  ;;  %v5843_v7 = vld [vmem:[#allocation2 + $0x78] sm:$0xff]  }
 0xb47   : > { %1979 = vmax.xlane.f32.xlu1 %v1978_v37 }
 0xb4b   : > { %1982 = vmax.xlane.f32.xlu1 %v1981_v46 }
 0xbcc   : > { %v2001_v34 = vpop.xlane.xlu1 %2000 }
 0xbcd   : > { %5052 = vrcp.f32 %v2001_v34 }
 0xbd0   : > { %v1974_v1 = vpop.xlane.xlu1 %1973 }
 0xbd1   : > { %v1984_v35 = vsub.f32 %v1813_v20, %v1974_v1 }
 0xbd3   : > { %v1988_v36 = vmul.f32 1.442695, %v1984_v35 }
 0xbd4   : > { %v1980_v40 = vpop.xlane.xlu1 %1979 }
 0xbd5   : > { %5054 = vpow2.f32 %v1988_v36  ;;  %v1986_v43 = vsub.f32 %v1915_v27, %v1980_v40 }
 0xbd7   : > { %v5053_v38 = vpop.eup %5052  ;;  %v1992_v44 = vmul.f32 1.442695, %v1986_v43 }
 0xbd8   : > { %v2013_v47 = vmul.f32 %v5053_v38, %v5051_v19  ;;  %v1983_v10 = vpop.xlane.xlu1 %1982  ;;  %v5835_v19 = vld [vmem:[#allocation2 + $0x68] sm:$0xff]  }
 0xbd9   : > { %5056 = vpow2.f32 %v1992_v44  ;;  %v1987_v14 = vsub.f32 %v1965_v61, %v1983_v10 }
 0xbda   : > { %v2065_v52 = vpack.c.bf16 %v2013_v47, %v2013_v47 }
 0xbdb   : > { %v1994_v5 = vmul.f32 1.442695, %v1987_v14 }
 0xbdc   : > { %4693 = vmatmul.mubr.msk.bf16.vlgmr.msra.gmra.mrb[44].mxu1 %vm1018_vm4, %v2065_v52 }
 0xbdd   : > { %4703 = vmatpush3.bf16.msra.mxu1 %v5660_v11  ;;  %4704 = vmatprep.mubr.msk.bf16.mxu1 %vm5216_vm0, %v5215_v0  ;;  %5058 = vpow2.f32 %v1994_v5 }
 0xbde   : > { %4714 = vmatprep.subr.bf16.mxu1 %v5215_v0 }
 0xbdf   : > { %v5055_v53 = vpop.eup %5054 }
 0xbe0   : > { %v1996_v51 = vsel %vm1971_vm8, %v5055_v53, 0.0 }
 0xbe1   : > { %1997 = vadd.xlane.f32.xlu1 %v1996_v51 }
 0xbe3   : > { %v5057_v54 = vpop.eup %5056 }
 0xbe4   : > { %v2002_v8 = vsel %vm1971_vm8, %v5057_v54, 0.0 }
 0xbe5   : > { %2003 = vadd.xlane.f32.xlu0 %v2002_v8 }
 0xbe7   : > { %v5059_v11 = vpop.eup %5058 }
 0xbe8   : > { %v2005_v15 = vsel %vm1971_vm8, %v5059_v11, 0.0 }
 0xbf2   : > { %2203 = vrot.lane.b32.xlu1 %v5761_v12, %s5218_s24 }
 0xc16   : > { %2006 = vadd.xlane.f32.xlu1 %v2005_v15 }
 0xc27   : > { %2297 = vrot.lane.b32.xlu1 %v5761_v12, %s5220_s21 }
 0xc6e   : > { %v1998_v17 = vpop.xlane.xlu1 %1997 }
 0xc6f   : > { %5060 = vrcp.f32 %v1998_v17 }
 0xc72   : > { %v2004_v23 = vpop.xlane.xlu0 %2003  ;;  %v2204_v24 = vpop.permute.xlu1 %2203 }
 0xc73   : > { %5062 = vrcp.f32 %v2004_v23  ;;  %v2209_v57 = vsel %vm703_vm1, %v2204_v24, 0 }
 0xc79   : > { %v5061_v18 = vpop.eup %5060 }
 0xc7a   : > { %v2012_v20 = vmul.f32 %v5061_v18, %v5055_v53 }
 0xc7c   : > { %v2017_v21 = vpack.c.bf16 %v2012_v20, %v2012_v20 }
 0xc7d   : > { %v5063_v29 = vpop.eup %5062 }
 0xc7e   : > { %4687 = vmatmul.mubr.msk.bf16.vlgmr.msra.gmra.mrb[44].mxu0 %vm1018_vm4, %v2017_v21 }
 0xc7f   : > { %4697 = vmatpush3.bf16.msra.mxu0 %v5631_v42  ;;  %4698 = vmatprep.mubr.msk.bf16.mxu0 %vm5216_vm0, %v5215_v0  ;;  %v2014_v42 = vmul.f32 %v5063_v29, %v5057_v54 }
 0xc80   : > { %4708 = vmatprep.subr.bf16.mxu0 %v5215_v0 }
 0xc81   : > { %v2202_v60 = vpack.c.bf16 %v2014_v42, %v2014_v42 }
 0xca3   : > { %v2007_v26 = vpop.xlane.xlu1 %2006 }
 0xca4   : > { %5064 = vrcp.f32 %v2007_v26 }
 0xca7   : > { %v2298_v59 = vpop.permute.xlu1 %2297 }
 0xca8   : > { %v2303_v63 = vsel %vm703_vm1, %v2298_v59, 0 }
 0xcae   : > { %v5065_v61 = vpop.eup %5064 }
 0xcaf   : > { %v2109_v12 = vpop.f32.mrb[44].mxu1  ;;  %v2015_v48 = vmul.f32 %v5065_v61, %v5059_v11 }
 0xcb0   : > { %v2115_v27 = vpack.c.bf16 %v2109_v12, %v2109_v12  ;;  %v4694_v28 = vpop.f32.mrb[45].mxu1 }
 0xcb1   : > { %v2112_v55 = vpop.f32.mrb[46].mxu1  ;;  %v2296_v3 = vpack.c.bf16 %v2015_v48, %v2015_v48 }
 0xcb2   : > { %v4695_v58 = vpop.f32.mrb[47].mxu1  ;;  %4699 = vmatmul.mubr.msk.bf16.vlgmr.msra.gmra.mrb[48].mxu0 %vm1018_vm4, %v2115_v27 }
 0xcb3   : > { %4709 = vmatpush3.bf16.msra.mxu0 %v2209_v57  ;;  %4710 = vmatprep.mubr.msk.bf16.mxu0 %vm5216_vm0, %v5215_v0 }
 0xcb4   : > { %4720 = vmatprep.subr.bf16.mxu0 %v5215_v0 }
 0xcba   : > { %4711 = vmatmul.mubr.msk.bf16.vlgmr.msra.gmra.mrb[52].mxu0 %vm1018_vm4, %v2202_v60 }
 0xcbb   : > { %4721 = vmatpush3.bf16.msra.mxu0 %v2303_v63  ;;  %4722 = vmatprep.mubr.msk.bf16.mxu0 %vm5216_vm0, %v5215_v0  ;;  %v5869_v63 = vld [vmem:[%s6229_s7 + $0x1] ss:$0 sm:$0xff] }
 0xcbc   : > { %4732 = vmatprep.subr.bf16.mxu0 %v5215_v0 }
 0xcc2   : > { %4723 = vmatmul.mubr.msk.bf16.vlgmr.msra.gmra.mrb[56].mxu0 %vm1018_vm4, %v2296_v3 }
 0xcc3   : > { %4733 = vmatpush3.bf16.msra.mxu0 %v5813_v2  ;;  %4748 = vmatprep.mubr.msk.bf16.mxu0 %vm5216_vm0, %v5215_v0 }
 0xcc4   : > { %4734 = vmatprep.subr.bf16.mxu0 %v5215_v0 }
 0xcc7   : > { %4735 = vmatpush3.bf16.msra.mxu0 %v5817_v6 }
 0xcc8   : > { %4736 = vmatprep.subr.bf16.mxu0 %v5215_v0 }
 0xccb   : > { %4737 = vmatpush3.bf16.msra.mxu0 %v5823_v45 }
 0xccc   : > { %4738 = vmatprep.subr.bf16.mxu0 %v5215_v0 }
 0xccf   : > { %4739 = vmatpush3.bf16.msra.mxu0 %v5827_v13 }
 0xcd0   : > { %4740 = vmatprep.subr.bf16.mxu0 %v5215_v0 }
 0xcd3   : > { %4741 = vmatpush3.bf16.msra.mxu0 %v5831_v16 }
 0xcd4   : > { %4742 = vmatprep.subr.bf16.mxu0 %v5215_v0 }
 0xcd7   : > { %4743 = vmatpush3.bf16.msra.mxu0 %v5835_v19 }
 0xcd8   : > { %4744 = vmatprep.subr.bf16.mxu0 %v5215_v0 }
 0xcdb   : > { %4745 = vmatpush3.bf16.msra.mxu0 %v5839_v22 }
 0xcdc   : > { %4746 = vmatprep.subr.bf16.mxu0 %v5215_v0 }
 0xcdf   : > { %4747 = vmatpush3.bf16.msra.mxu0 %v5843_v7 }
 0xce0   : > { %4752 = vmatprep.subr.bf16.mxu0 %v5215_v0 }
 0xce2   : > { %4749 = vmatmul.mubr.bf16.vlgmr.msra.gmra.mrb[60].mxu0 %v5738_v9 }
 0xce3   : > { %4754 = vmatprep.mubr.msk.bf16.mxu0 %vm5216_vm0, %v5215_v0 }
 0xd51   : > { %v2058_v37 = vpop.f32.mrb[44].mxu0 }
 0xd52   : > { %v2064_v46 = vpack.c.bf16 %v2058_v37, %v2058_v37  ;;  %v4688_v34 = vpop.f32.mrb[45].mxu0  ;;  %v5880_v37 = vld [vmem:[#allocation4 + $0x94] ss:$8 sps:$4 sm:$0xff]  }
 0xd53   : > { %v2061_v1 = vpop.f32.mrb[46].mxu0  ;;  %v5887_v34 = vld [vmem:[#allocation4 + $0xa4] ss:$8 sps:$4 sm:$0xff]  }
 0xd54   : > { %v4689_v35 = vpop.f32.mrb[47].mxu0  ;;  %4705 = vmatmul.mubr.msk.bf16.vlgmr.msra.gmra.mrb[48].mxu1 %vm1018_vm4, %v2064_v46  ;;  %v5884_v46 = vld [vmem:[#allocation4 + $0x90] ss:$8 sps:$4 sm:$0xff]   ;;  %v5890_v1 = vld [vmem:[#allocation4 + $0xa0] ss:$8 sps:$4 sm:$0xff]  }
 0xd55   : > { %4715 = vmatpush3.bf16.msra.mxu1 %v5676_v25  ;;  %4716 = vmatprep.mubr.msk.bf16.mxu1 %vm5216_vm0, %v5215_v0 }
 0xd56   : > { %4726 = vmatprep.subr.bf16.mxu1 %v5215_v0 }
 0xd85   : > { %v2153_v36 = vpop.f32.mrb[48].mxu0 }
 0xd86   : > { %v4700_v40 = vpop.f32.mrb[49].mxu0 }
 0xd87   : > { %v2156_v9 = vpop.f32.mrb[50].mxu0 }
 0xd88   : > { %v4701_v43 = vpop.f32.mrb[51].mxu0 }
 0xd8d   : > { %v2245_v38 = vpop.f32.mrb[52].mxu0 }
 0xd8e   : > { %v2251_v44 = vpack.c.bf16 %v2245_v38, %v2245_v38  ;;  %v4712_v47 = vpop.f32.mrb[53].mxu0 }
 0xd8f   : > { %v2248_v52 = vpop.f32.mrb[54].mxu0  ;;  %v5898_v47 = vld [vmem:[#allocation4 + $0xb0] ss:$8 sps:$4 sm:$0xff]  }
 0xd90   : > { %v4713_v53 = vpop.f32.mrb[55].mxu0  ;;  %4717 = vmatmul.mubr.msk.bf16.vlgmr.msra.gmra.mrb[52].mxu1 %vm1018_vm4, %v2251_v44  ;;  %v5896_v44 = vld [vmem:[#allocation4 + $0xb4] ss:$8 sps:$4 sm:$0xff]   ;;  %v5902_v52 = vld [vmem:[#allocation4 + $0xc4] ss:$8 sps:$4 sm:$0xff]  }
 0xd91   : > { %4727 = vmatpush3.bf16.msra.mxu1 %v5684_v39  ;;  %4728 = vmatprep.mubr.msk.bf16.mxu1 %vm5216_vm0, %v5215_v0  ;;  %v5904_v53 = vld [vmem:[#allocation4 + $0xc0] ss:$8 sps:$4 sm:$0xff]  }
 0xd95   : > { %v2339_v25 = vpop.f32.mrb[56].mxu0 }
 0xd96   : > { %v2345_v51 = vpack.c.bf16 %v2339_v25, %v2339_v25  ;;  %v4724_v54 = vpop.f32.mrb[57].mxu0  ;;  %v5908_v25 = vld [vmem:[#allocation4 + $0xd4] ss:$8 sps:$4 sm:$0xff]  }
 0xd97   : > { %v2342_v8 = vpop.f32.mrb[58].mxu0  ;;  %v5914_v54 = vld [vmem:[#allocation4 + $0xe4] ss:$8 sps:$4 sm:$0xff]  }
 0xd98   : > { %v4725_v10 = vpop.f32.mrb[59].mxu0  ;;  %4729 = vmatmul.mubr.msk.bf16.vlgmr.msra.gmra.mrb[56].mxu1 %vm1018_vm4, %v2345_v51  ;;  %v5910_v51 = vld [vmem:[#allocation4 + $0xd0] ss:$8 sps:$4 sm:$0xff]   ;;  %v5916_v8 = vld [vmem:[#allocation4 + $0xe0] ss:$8 sps:$4 sm:$0xff]  }
 0xd99   : > { %2677 = vmatprep.mubr.bf16.mxu1 %v5217_v32  ;;  %v5918_v10 = vld [vmem:[#allocation4 + $0xf4] ss:$8 sps:$4 sm:$0xff]  }
 0xdb5   : > { %v2547_v14 = vpop.f32.mrb[60].mxu0 }
 0xdb6   : > { %v4750_v5 = vpop.f32.mrb[61].mxu0  ;;  %v2548_v48 = vadd.f32 %v5869_v63, %v2547_v14  ;;  %v5922_v14 = vld [vmem:[#allocation4 + $0xf0] ss:$8 sps:$4 sm:$0xff]  }
 0xdb7   : > { %v2550_v11 = vpop.f32.mrb[62].mxu0 }
 0xdb8   : > { %v4751_v15 = vpop.f32.mrb[63].mxu0  ;;  %v5872_v3 = vpack.c.bf16 %v2548_v48, %v2548_v48 }
 0xe27   : > { %v2196_v17 = vpop.f32.mrb[48].mxu1 }
 0xe28   : > { %v2197_v18 = vadd.f32 %v2196_v17, %v2153_v36  ;;  %v4706_v20 = vpop.f32.mrb[49].mxu1 }
 0xe29   : > { %v2199_v39 = vpop.f32.mrb[50].mxu1 }
 0xe2a   : > { %v4707_v21 = vpop.f32.mrb[51].mxu1 }
 0xe63   : > { %v2289_v23 = vpop.f32.mrb[52].mxu1 }
 0xe64   : > { %v2295_v24 = vadd.f32 %v2289_v23, %v2197_v18  ;;  %v4718_v26 = vpop.f32.mrb[53].mxu1  ;;  %v4335_v23 = vld [vmem:[%s6231_s9 + $0x2] sm:$0x3] }
 0xe65   : > { %v2292_v12 = vpop.f32.mrb[54].mxu1 }
 0xe66   : > { %v4719_v27 = vpop.f32.mrb[55].mxu1 }
 0xe6b   : > { %v2383_v28 = vpop.f32.mrb[56].mxu1 }
 0xe6c   : > { %v2389_v29 = vadd.f32 %v2383_v28, %v2295_v24  ;;  %v4730_v55 = vpop.f32.mrb[57].mxu1  ;;  %v5943_v24 = vrot.slane %v4335_v23, %v887_v50 }
 0xe6d   : > { %v2386_v57 = vpop.f32.mrb[58].mxu1 }
 0xe6e   : > { %v2390_v58 = vadd.f32 %v5713_v30, %v2389_v29  ;;  %v4731_v42 = vpop.f32.mrb[59].mxu1  ;;  %v5876_v30 = vld [vmem:[#allocation4 + $0x80] ss:$8 sps:$4 sm:$0xff]  }
 0xe70   : > { %v2391_v59 = vadd.f32 %v2390_v58, %v5543_v41  ;;  %v5878_v41 = vld [vmem:[#allocation4 + $0x84] ss:$8 sps:$4 sm:$0xff]   ;;  %v5963_v58 = vrot.slane %v4335_v23, %v891_v4 }
 0xe71   : > { %2645 = vmatprep.subr.bf16.mxu1 %v5878_v41 }
 0xe72   : > { %v2392_v60 = vmul.f32 %v5717_v62, %v2391_v59  ;;  %2646 = vmatpush1.bf16.msra.mxu1 %v5876_v30 }
 0xe73   : > { %2647 = vmatprep.subr.bf16.mxu1 %v5880_v37 }
 0xe74   : > { %v2394_v61 = vsel %vm2393_vm9, %v2392_v60, 0.0 }
 0xe75   : > { %2395 = vadd.xlane.f32.xlu1 %v2394_v61 }
 0xe76   : > { %2648 = vmatpush1.bf16.msra.mxu1 %v5884_v46 }
 0xe77   : > { %2649 = vmatprep.subr.bf16.mxu1 %v5887_v34 }
 0xe7a   : > { %2650 = vmatpush1.bf16.msra.mxu1 %v5890_v1 }
 0xe7b   : > { %2651 = vmatprep.subr.bf16.mxu1 %v5896_v44 }
 0xe7e   : > { %2652 = vmatpush1.bf16.msra.mxu1 %v5898_v47 }
 0xe7f   : > { %2653 = vmatprep.subr.bf16.mxu1 %v5902_v52 }
 0xe82   : > { %2654 = vmatpush1.bf16.msra.mxu1 %v5904_v53 }
 0xe83   : > { %2655 = vmatprep.subr.bf16.mxu1 %v5908_v25 }
 0xe86   : > { %2786 = vrot.lane.b32.xlu1 %v5872_v3, %s5218_s24  ;;  %2656 = vmatpush1.bf16.msra.mxu1 %v5910_v51 }
 0xe87   : > { %2657 = vmatprep.subr.bf16.mxu1 %v5914_v54 }
 0xe8a   : > { %2658 = vmatpush1.bf16.msra.mxu1 %v5916_v8 }
 0xe8b   : > { %2659 = vmatprep.subr.bf16.mxu1 %v5918_v10 }
 0xe8e   : > { %2660 = vmatpush1.bf16.msra.mxu1 %v5922_v14 }
 0xe8f   : > { %4758 = vmatprep.subr.bf16.mxu1 %v5215_v0 }
 0xf02   : > { %v2396_v35 = vpop.xlane.xlu1 %2395 }
 0xf03   : > { %v2397_v36 = vmul.f32 0.03125, %v2396_v35 }
 0xf05   : > { %v2398_v40 = vsub.f32 %v2391_v59, %v2397_v36 }
 0xf06   : > { %v2787_v4 = vpop.permute.xlu1 %2786 }
 0xf07   : > { %v2399_v9 = vmul.f32 %v5717_v62, %v2398_v40 }
 0xf09   : > { %v2400_v43 = vmul.f32 %v2399_v9, %v2399_v9 }
 0xf0b   : > { %v2401_v38 = vsel %vm2393_vm9, %v2400_v43, 0.0 }
 0xf0c   : > { %2402 = vadd.xlane.f32.xlu0 %v2401_v38 }
 0xf99   : > { %v2403_v5 = vpop.xlane.xlu0 %2402 }
 0xf9a   : > { %v2404_v11 = vmul.f32 0.03125, %v2403_v5 }
 0xf9c   : > { %v2405_v15 = vadd.f32 1e-05, %v2404_v11 }
 0xf9e   : > { %5066 = vrsqrt.f32 %v2405_v15 }
 0xfa8   : > { %v5067_v17 = vpop.eup %5066 }
 0xfa9   : > { %v2407_v18 = vmul.f32 %v5067_v17, %v2399_v9 }
 0xfab   : > { %v2408_v20 = vmul.f32 %v5725_v31, %v2407_v18 }
 0xfad   : > { %v5929_v39 = vadd.f32 %v5730_v33, %v2408_v20 }
 0xfaf   : > { %v5933_v21 = vpack.c.bf16 %v5929_v39, %v5929_v39 }
 0xfb1   : > { %2678 = vmatmul.mubr.bf16.vlgmr.msra.gmra.mrb[60].mxu1 %v5933_v21 }
 0xfb2   : > { %4760 = vmatprep.mubr.msk.bf16.mxu1 %vm5216_vm0, %v5215_v0 }
0x1084   : > { %v2679_v31 = vpop.f32.mrb[60].mxu1 }
0x1085   : > { %v2680_v33 = vadd.f32 %v2679_v31, %v5943_v24  ;;  %v2681_v26 = vpop.f32.mrb[61].mxu1 }
0x1086   : > { %v2683_v12 = vpop.f32.mrb[62].mxu1  ;;  %v2682_v59 = vadd.f32 %v2681_v26, %v5963_v58 }
0x1087   : > { %v2687_v27 = vpack.c.bf16 %v2680_v33, %v2680_v33  ;;  %v2684_v28 = vpop.f32.mrb[63].mxu1 }
0x1088   : > { %v5971_v48 = vpack.c.bf16 %v2682_v59, %v2682_v59 }
0x1089   : > { %2738 = vrot.lane.b32.xlu0 %v2687_v27, %s5219_s20  ;;  %v2692_v29 = vsel %vm1018_vm4, %v2687_v27, 0 }
0x108a   : > { %4753 = vmatpush3.bf16.xpose.msra.mxu0 %v2692_v29 }
0x108b   : > { %4764 = vmatprep.subr.bf16.mxu0 %v5215_v0 }
0x108d   : > { %2735 = vrot.lane.b32.xlu0 %v5872_v3, %s5219_s20 }
0x1091   : > { %2788 = vrot.lane.b32.xlu0 %v2687_v27, %s5218_s24  ;;  %4755 = vmatmul.mubr.msk.bf16.vlgmr.msra.gmra.mrb[64].mxu0 %vm1018_vm4, %v5872_v3 }
0x1092   : > { %4766 = vmatprep.mubr.msk.bf16.mxu0 %vm5216_vm0, %v5215_v0 }
0x1095   : > { %2838 = vrot.lane.b32.xlu0 %v2687_v27, %s5220_s21 }
0x1099   : > { %2836 = vrot.lane.b32.xlu0 %v5872_v3, %s5220_s21  ;;  %v2936_v3 = vsel %vm1267_vm5, %v5971_v48, 0 }
0x10fb   : > { %v2739_v50 = vpop.permute.xlu0 %2738 }
0x10fc   : > { %v2744_v55 = vsel %vm1018_vm4, %v2739_v50, 0 }
0x10fd   : > { %4759 = vmatpush3.bf16.xpose.msra.mxu1 %v2744_v55 }
0x10fe   : > { %4770 = vmatprep.subr.bf16.mxu1 %v5215_v0 }
0x10ff   : > { %v2736_v57 = vpop.permute.xlu0 %2735 }
0x1103   : > { %v2789_v42 = vpop.permute.xlu0 %2788 }
0x1104   : > { %v2794_v60 = vsel %vm1018_vm4, %v2789_v42, 0  ;;  %4761 = vmatmul.mubr.msk.bf16.vlgmr.msra.gmra.mrb[64].mxu1 %vm1018_vm4, %v2736_v57 }
0x1105   : > { %4765 = vmatpush3.bf16.xpose.msra.mxu0 %v2794_v60  ;;  %4772 = vmatprep.mubr.msk.bf16.mxu1 %vm5216_vm0, %v5215_v0 }
0x1106   : > { %4776 = vmatprep.subr.bf16.mxu0 %v5215_v0 }
0x1107   : > { %v2839_v61 = vpop.permute.xlu0 %2838 }
0x1108   : > { %v2844_v49 = vsel %vm1018_vm4, %v2839_v61, 0 }
0x1109   : > { %4771 = vmatpush3.bf16.xpose.msra.mxu1 %v2844_v49 }
0x110a   : > { %4782 = vmatprep.subr.bf16.mxu1 %v5215_v0 }
0x110b   : > { %v2837_v35 = vpop.permute.xlu0 %2836 }
0x110c   : > { %4767 = vmatmul.mubr.msk.bf16.vlgmr.msra.gmra.mrb[68].mxu0 %vm1018_vm4, %v2787_v4 }
0x110d   : > { %4777 = vmatpush3.bf16.msra.mxu0 %v2936_v3  ;;  %4778 = vmatprep.mubr.msk.bf16.mxu0 %vm5216_vm0, %v5215_v0 }
0x110e   : > { %4788 = vmatprep.subr.bf16.mxu0 %v5215_v0 }
0x1110   : > { %4773 = vmatmul.mubr.msk.bf16.vlgmr.msra.gmra.mrb[68].mxu1 %vm1018_vm4, %v2837_v35 }
0x1111   : > { %4784 = vmatprep.mubr.msk.bf16.mxu1 %vm5216_vm0, %v5215_v0 }
0x1164   : > { %v2728_v36 = vpop.f32.mrb[64].mxu0 }
0x1165   : > { %v4756_v40 = vpop.f32.mrb[65].mxu0  ;;  %v2886_v60 = vsel %vm1217_vm6, %v2728_v36, -inf }
0x1166   : > { %v2731_v9 = vpop.f32.mrb[66].mxu0 }
0x1167   : > { %v4757_v43 = vpop.f32.mrb[67].mxu0 }
0x11d7   : > { %v2780_v38 = vpop.f32.mrb[64].mxu1 }
0x11d8   : > { %v4762_v5 = vpop.f32.mrb[65].mxu1  ;;  %v2889_v11 = vsel %vm1217_vm6, %v2780_v38, -inf }
0x11d9   : > { %2890 = vmax.xlane.f32.xlu0 %v2889_v11  ;;  %v2783_v15 = vpop.f32.mrb[66].mxu1 }
0x11da   : > { %v4763_v17 = vpop.f32.mrb[67].mxu1 }
0x11df   : > { %v2830_v18 = vpop.f32.mrb[68].mxu0 }
0x11e0   : > { %v4768_v20 = vpop.f32.mrb[69].mxu0  ;;  %v2892_v61 = vsel %vm1217_vm6, %v2830_v18, -inf }
0x11e1   : > { %v2833_v23 = vpop.f32.mrb[70].mxu0 }
0x11e2   : > { %v4769_v31 = vpop.f32.mrb[71].mxu0 }
0x11e3   : > { %v2880_v33 = vpop.f32.mrb[68].mxu1 }
0x11e4   : > { %v4774_v26 = vpop.f32.mrb[69].mxu1  ;;  %v2895_v49 = vsel %vm1217_vm6, %v2880_v33, -inf }
0x11e5   : > { %v2883_v12 = vpop.f32.mrb[70].mxu1 }
0x11e6   : > { %v4775_v27 = vpop.f32.mrb[71].mxu1 }
0x11ef   : > { %2981 = vrot.lane.b32.xlu0 %v5971_v48, %s5219_s20 }
0x1266   : > { %v2891_v28 = vpop.xlane.xlu0 %2890 }
0x1267   : > { %v2899_v29 = vsub.f32 %v2780_v38, %v2891_v28 }
0x1269   : > { %v2904_v50 = vmul.f32 1.442695, %v2899_v29  ;;  %v2450_v29 = vld [vmem:[#allocation6 + $0x44] sm:$0xf] }
0x126a   : > { %v2982_v55 = vpop.permute.xlu0 %2981 }
0x126b   : > { %5068 = vpow2.f32 %v2904_v50  ;;  %v2987_v57 = vsel %vm1267_vm5, %v2982_v55, 0 }
0x126c   : > { %4783 = vmatpush3.bf16.msra.mxu1 %v2987_v57  ;;  %v6004_v57 = vsel %vm703_vm1, %v2450_v29, 0 }
0x126d   : > { %4794 = vmatprep.subr.bf16.mxu1 %v5215_v0 }
0x1275   : > { %v5069_v42 = vpop.eup %5068 }
0x1276   : > { %v2913_v59 = vsel %vm1217_vm6, %v5069_v42, 0.0 }
0x1277   : > { %2914 = vadd.xlane.f32.xlu1 %v2913_v59 }
0x127b   : > { %2887 = vmax.xlane.f32.xlu1 %v2886_v60 }
0x127f   : > { %2893 = vmax.xlane.f32.xlu1 %v2892_v61 }
0x1283   : > { %2896 = vmax.xlane.f32.xlu1 %v2895_v49 }
0x1294   : > { %3123 = vrot.lane.b32.xlu1 %v5971_v48, %s5218_s24 }
0x1304   : > { %v2915_v4 = vpop.xlane.xlu1 %2914 }
0x1305   : > { %5070 = vrcp.f32 %v2915_v4 }
0x1308   : > { %v2888_v3 = vpop.xlane.xlu1 %2887 }
0x1309   : > { %v2898_v35 = vsub.f32 %v2728_v36, %v2888_v3 }
0x130b   : > { %v2902_v40 = vmul.f32 1.442695, %v2898_v35 }
0x130c   : > { %v2894_v9 = vpop.xlane.xlu1 %2893 }
0x130d   : > { %5072 = vpow2.f32 %v2902_v40  ;;  %v2900_v43 = vsub.f32 %v2830_v18, %v2894_v9 }
0x130f   : > { %v5071_v38 = vpop.eup %5070  ;;  %v2906_v5 = vmul.f32 1.442695, %v2900_v43 }
0x1310   : > { %v2927_v11 = vmul.f32 %v5071_v38, %v5069_v42  ;;  %v2897_v15 = vpop.xlane.xlu1 %2896 }
0x1311   : > { %5074 = vpow2.f32 %v2906_v5  ;;  %v2901_v17 = vsub.f32 %v2880_v33, %v2897_v15 }
0x1312   : > { %v2979_v20 = vpack.c.bf16 %v2927_v11, %v2927_v11 }
0x1313   : > { %v2908_v23 = vmul.f32 1.442695, %v2901_v17 }
0x1314   : > { %4785 = vmatmul.mubr.msk.bf16.vlgmr.msra.gmra.mrb[72].mxu1 %vm1217_vm6, %v2979_v20  ;;  %v3124_v42 = vpop.permute.xlu1 %3123  ;;  %v2449_v20 = vld [vmem:[#allocation6 + $0x40] sm:$0xf] }
0x1315   : > { %5076 = vpow2.f32 %v2908_v23  ;;  %4796 = vmatprep.mubr.msk.bf16.mxu1 %vm5216_vm0, %v5215_v0  ;;  %v3129_v35 = vsel %vm1267_vm5, %v3124_v42, 0 }
0x1317   : > { %v5073_v31 = vpop.eup %5072 }
0x1318   : > { %v2910_v36 = vsel %vm1217_vm6, %v5073_v31, 0.0 }
0x1319   : > { %2911 = vadd.xlane.f32.xlu0 %v2910_v36 }
0x131b   : > { %v5075_v26 = vpop.eup %5074 }
0x131c   : > { %v2916_v18 = vsel %vm1217_vm6, %v5075_v26, 0.0 }
0x131d   : > { %2917 = vadd.xlane.f32.xlu1 %v2916_v18 }
0x131f   : > { %v5077_v12 = vpop.eup %5076 }
0x1320   : > { %v2919_v27 = vsel %vm1217_vm6, %v5077_v12, 0.0 }
0x1321   : > { %2920 = vadd.xlane.f32.xlu1 %v2919_v27 }
0x1332   : > { %3220 = vrot.lane.b32.xlu1 %v5971_v48, %s5220_s21 }
0x13a6   : > { %v2912_v33 = vpop.xlane.xlu0 %2911 }
0x13a7   : > { %5078 = vrcp.f32 %v2912_v33 }
0x13aa   : > { %v2918_v48 = vpop.xlane.xlu1 %2917 }
0x13ab   : > { %5080 = vrcp.f32 %v2918_v48 }
0x13ae   : > { %v2921_v59 = vpop.xlane.xlu1 %2920 }
0x13af   : > { %5082 = vrcp.f32 %v2921_v59 }
0x13b1   : > { %v5079_v28 = vpop.eup %5078 }
0x13b2   : > { %v2926_v50 = vmul.f32 %v5079_v28, %v5073_v31  ;;  %v3221_v43 = vpop.permute.xlu1 %3220 }
0x13b3   : > { %v3226_v11 = vsel %vm1267_vm5, %v3221_v43, 0 }
0x13b4   : > { %v2931_v55 = vpack.c.bf16 %v2926_v50, %v2926_v50 }
0x13b5   : > { %v5081_v4 = vpop.eup %5080 }
0x13b6   : > { %4779 = vmatmul.mubr.msk.bf16.vlgmr.msra.gmra.mrb[72].mxu0 %vm1217_vm6, %v2931_v55  ;;  %v2928_v9 = vmul.f32 %v5081_v4, %v5075_v26  ;;  %v2452_v26 = vld [vmem:[#allocation6 + $0x4c] sm:$0xf] }
0x13b7   : > { %4789 = vmatpush3.bf16.msra.mxu0 %v6004_v57  ;;  %4790 = vmatprep.mubr.msk.bf16.mxu0 %vm5216_vm0, %v5215_v0  ;;  %v6057_v33 = vsel %vm703_vm1, %v2452_v26, 0 }
0x13b8   : > { %4800 = vmatprep.subr.bf16.mxu0 %v5215_v0  ;;  %v3122_v38 = vpack.c.bf16 %v2928_v9, %v2928_v9 }
0x13b9   : > { %v5083_v5 = vpop.eup %5082 }
0x13ba   : > { %v2929_v15 = vmul.f32 %v5083_v5, %v5077_v12 }
0x13bc   : > { %v3219_v17 = vpack.c.bf16 %v2929_v15, %v2929_v15 }
0x13e7   : > { %v3023_v60 = vpop.f32.mrb[72].mxu1 }
0x13e8   : > { %v3029_v61 = vpack.c.bf16 %v3023_v60, %v3023_v60  ;;  %v4786_v49 = vpop.f32.mrb[73].mxu1 }
0x13e9   : > { %v3026_v3 = vpop.f32.mrb[74].mxu1 }
0x13ea   : > { %v4787_v40 = vpop.f32.mrb[75].mxu1  ;;  %4791 = vmatmul.mubr.msk.bf16.vlgmr.msra.gmra.mrb[76].mxu0 %vm1018_vm4, %v3029_v61 }
0x13eb   : > { %4801 = vmatpush3.bf16.msra.mxu0 %v3129_v35  ;;  %4802 = vmatprep.mubr.msk.bf16.mxu0 %vm5216_vm0, %v5215_v0 }
0x13ec   : > { %4812 = vmatprep.subr.bf16.mxu0 %v5215_v0 }
0x13f2   : > { %4803 = vmatmul.mubr.msk.bf16.vlgmr.msra.gmra.mrb[80].mxu0 %vm1217_vm6, %v3122_v38 }
0x13f3   : > { %4813 = vmatpush3.bf16.msra.mxu0 %v3226_v11  ;;  %4814 = vmatprep.mubr.msk.bf16.mxu0 %vm5216_vm0, %v5215_v0 }
0x13f4   : > { %4824 = vmatprep.subr.bf16.mxu0 %v5215_v0 }
0x13fa   : > { %4815 = vmatmul.mubr.msk.bf16.vlgmr.msra.gmra.mrb[84].mxu0 %vm1217_vm6, %v3219_v17 }
0x13fb   : > { %4825 = vmatpush3.bf16.msra.mxu0 %v5813_v2  ;;  %4840 = vmatprep.mubr.msk.bf16.mxu0 %vm5216_vm0, %v5215_v0  ;;  %v6033_v2 = vsel %vm703_vm1, %v2449_v20, 0 }
0x13fc   : > { %4826 = vmatprep.subr.bf16.mxu0 %v5215_v0  ;;  %4795 = vmatpush3.bf16.msra.mxu1 %v6033_v2 }
0x13fd   : > { %4806 = vmatprep.subr.bf16.mxu1 %v5215_v0 }
0x13ff   : > { %4827 = vmatpush3.bf16.msra.mxu0 %v5817_v6  ;;  %v2451_v6 = vld [vmem:[#allocation6 + $0x48] sm:$0xf] }
0x1400   : > { %4828 = vmatprep.subr.bf16.mxu0 %v5215_v0 }
0x1403   : > { %4829 = vmatpush3.bf16.msra.mxu0 %v5823_v45 }
0x1404   : > { %4830 = vmatprep.subr.bf16.mxu0 %v5215_v0 }
0x1407   : > { %4831 = vmatpush3.bf16.msra.mxu0 %v5827_v13 }
0x1408   : > { %4832 = vmatprep.subr.bf16.mxu0 %v5215_v0 }
0x140b   : > { %4833 = vmatpush3.bf16.msra.mxu0 %v5831_v16 }
0x140c   : > { %4834 = vmatprep.subr.bf16.mxu0 %v5215_v0 }
0x140f   : > { %4835 = vmatpush3.bf16.msra.mxu0 %v5835_v19  ;;  %v6049_v19 = vsel %vm703_vm1, %v2451_v6, 0  ;;  %v6094_v6 = vld [vmem:[%s6234_s12 + $0x1] ss:$0 sm:$0xff] }
0x1410   : > { %4836 = vmatprep.subr.bf16.mxu0 %v5215_v0 }
0x1413   : > { %4837 = vmatpush3.bf16.msra.mxu0 %v5839_v22 }
0x1414   : > { %4838 = vmatprep.subr.bf16.mxu0 %v5215_v0 }
0x1417   : > { %4839 = vmatpush3.bf16.msra.mxu0 %v5843_v7 }
0x1418   : > { %4844 = vmatprep.subr.bf16.mxu0 %v5215_v0 }
0x141a   : > { %4841 = vmatmul.mubr.bf16.vlgmr.msra.gmra.mrb[88].mxu0 %v5933_v21 }
0x141b   : > { %4846 = vmatprep.mubr.msk.bf16.mxu0 %vm5216_vm0, %v5215_v0 }
0x1489   : > { %v2972_v45 = vpop.f32.mrb[72].mxu0 }
0x148a   : > { %v2978_v13 = vpack.c.bf16 %v2972_v45, %v2972_v45  ;;  %v4780_v16 = vpop.f32.mrb[73].mxu0  ;;  %v6099_v45 = vld [vmem:[%s6235_s13 + $0x1] ss:$0 sm:$0xff] }
0x148b   : > { %v2975_v23 = vpop.f32.mrb[74].mxu0 }
0x148c   : > { %v4781_v22 = vpop.f32.mrb[75].mxu0  ;;  %4797 = vmatmul.mubr.msk.bf16.vlgmr.msra.gmra.mrb[76].mxu1 %vm1018_vm4, %v2978_v13 }
0x148d   : > { %4807 = vmatpush3.bf16.msra.mxu1 %v6049_v19  ;;  %4808 = vmatprep.mubr.msk.bf16.mxu1 %vm5216_vm0, %v5215_v0 }
0x148e   : > { %4818 = vmatprep.subr.bf16.mxu1 %v5215_v0 }
0x14bd   : > { %v3070_v7 = vpop.f32.mrb[76].mxu0 }
0x14be   : > { %v4792_v21 = vpop.f32.mrb[77].mxu0 }
0x14bf   : > { %v3073_v31 = vpop.f32.mrb[78].mxu0 }
0x14c0   : > { %v4793_v36 = vpop.f32.mrb[79].mxu0 }
0x14c5   : > { %v3165_v18 = vpop.f32.mrb[80].mxu0 }
0x14c6   : > { %v3171_v12 = vpack.c.bf16 %v3165_v18, %v3165_v18  ;;  %v4804_v27 = vpop.f32.mrb[81].mxu0 }
0x14c7   : > { %v3168_v28 = vpop.f32.mrb[82].mxu0 }
0x14c8   : > { %v4805_v29 = vpop.f32.mrb[83].mxu0  ;;  %4809 = vmatmul.mubr.msk.bf16.vlgmr.msra.gmra.mrb[80].mxu1 %vm1018_vm4, %v3171_v12 }
0x14c9   : > { %4819 = vmatpush3.bf16.msra.mxu1 %v6057_v33  ;;  %4820 = vmatprep.mubr.msk.bf16.mxu1 %vm5216_vm0, %v5215_v0 }
0x14ca   : > { %3392 = vmatprep.subr.bf16.mxu1 %v5878_v41 }
0x14cd   : > { %v3262_v50 = vpop.f32.mrb[84].mxu0 }
0x14ce   : > { %v3268_v55 = vpack.c.bf16 %v3262_v50, %v3262_v50  ;;  %v4816_v42 = vpop.f32.mrb[85].mxu0 }
0x14cf   : > { %v3265_v48 = vpop.f32.mrb[86].mxu0 }
0x14d0   : > { %v4817_v59 = vpop.f32.mrb[87].mxu0  ;;  %4821 = vmatmul.mubr.msk.bf16.vlgmr.msra.gmra.mrb[84].mxu1 %vm1018_vm4, %v3268_v55 }
0x14d1   : > { %3393 = vmatpush1.bf16.msra.mxu1 %v5876_v30  ;;  %3424 = vmatprep.mubr.bf16.mxu1 %v5217_v32 }
0x14d2   : > { %3394 = vmatprep.subr.bf16.mxu1 %v5880_v37 }
0x14d5   : > { %3395 = vmatpush1.bf16.msra.mxu1 %v5884_v46 }
0x14d6   : > { %3396 = vmatprep.subr.bf16.mxu1 %v5887_v34 }
0x14d9   : > { %3397 = vmatpush1.bf16.msra.mxu1 %v5890_v1 }
0x14da   : > { %3398 = vmatprep.subr.bf16.mxu1 %v5896_v44 }
0x14dd   : > { %3399 = vmatpush1.bf16.msra.mxu1 %v5898_v47 }
0x14de   : > { %3400 = vmatprep.subr.bf16.mxu1 %v5902_v52 }
0x14e1   : > { %3401 = vmatpush1.bf16.msra.mxu1 %v5904_v53 }
0x14e2   : > { %3402 = vmatprep.subr.bf16.mxu1 %v5908_v25 }
0x14e5   : > { %3403 = vmatpush1.bf16.msra.mxu1 %v5910_v51 }
0x14e6   : > { %3404 = vmatprep.subr.bf16.mxu1 %v5914_v54 }
0x14e9   : > { %3405 = vmatpush1.bf16.msra.mxu1 %v5916_v8  ;;  %v6085_v8 = vld [vmem:[%s6233_s11 + $0x1] ss:$0 sm:$0xff] }
0x14ea   : > { %3406 = vmatprep.subr.bf16.mxu1 %v5918_v10 }
0x14ed   : > { %v3385_v32 = vpop.f32.mrb[88].mxu0  ;;  %3407 = vmatpush1.bf16.msra.mxu1 %v5922_v14 }
0x14ee   : > { %v4842_v30 = vpop.f32.mrb[89].mxu0  ;;  %4850 = vmatprep.subr.bf16.mxu1 %v5215_v0  ;;  %v3386_v36 = vadd.f32 %v5869_v63, %v3385_v32 }
0x14ef   : > { %v3388_v41 = vpop.f32.mrb[90].mxu0 }
0x14f0   : > { %v4843_v37 = vpop.f32.mrb[91].mxu0  ;;  %v3433_v27 = vpack.c.bf16 %v3386_v36, %v3386_v36 }
0x155f   : > { %v3116_v46 = vpop.f32.mrb[76].mxu1 }
0x1560   : > { %v3117_v34 = vadd.f32 %v3116_v46, %v3070_v7  ;;  %v4798_v1 = vpop.f32.mrb[77].mxu1 }
0x1561   : > { %v3119_v44 = vpop.f32.mrb[78].mxu1 }
0x1562   : > { %v4799_v47 = vpop.f32.mrb[79].mxu1 }
0x159b   : > { %v3212_v52 = vpop.f32.mrb[80].mxu1 }
0x159c   : > { %v3218_v53 = vadd.f32 %v3212_v52, %v3117_v34  ;;  %v4810_v25 = vpop.f32.mrb[81].mxu1 }
0x159d   : > { %v3215_v51 = vpop.f32.mrb[82].mxu1 }
0x159e   : > { %v4811_v54 = vpop.f32.mrb[83].mxu1 }
0x15a3   : > { %v3309_v10 = vpop.f32.mrb[84].mxu1 }
0x15a4   : > { %v3315_v14 = vadd.f32 %v3309_v10, %v3218_v53  ;;  %v4822_v60 = vpop.f32.mrb[85].mxu1 }
0x15a5   : > { %v3312_v61 = vpop.f32.mrb[86].mxu1 }
0x15a6   : > { %v3322_v49 = vadd.f32 %v6085_v8, %v3315_v14  ;;  %v4823_v4 = vpop.f32.mrb[87].mxu1 }
0x15a8   : > { %v3323_v3 = vadd.f32 %v3322_v49, %v5734_v56 }
0x15aa   : > { %v3324_v35 = vmul.f32 %v5717_v62, %v3323_v3 }
0x15ac   : > { %3325 = vadd.xlane.f32.xlu0 %v3324_v35 }
0x1639   : > { %v3326_v40 = vpop.xlane.xlu0 %3325 }
0x163a   : > { %v3327_v9 = vmul.f32 0.03125, %v3326_v40 }
0x163c   : > { %v3328_v43 = vsub.f32 %v3323_v3, %v3327_v9 }
0x163e   : > { %v3329_v38 = vmul.f32 %v5717_v62, %v3328_v43 }
0x1640   : > { %v3330_v5 = vmul.f32 %v3329_v38, %v3329_v38 }
0x1642   : > { %3331 = vadd.xlane.f32.xlu1 %v3330_v5 }
0x16cf   : > { %v3332_v11 = vpop.xlane.xlu1 %3331 }
0x16d0   : > { %v3333_v15 = vmul.f32 0.03125, %v3332_v11 }
0x16d2   : > { %v3334_v17 = vadd.f32 1e-05, %v3333_v15 }
0x16d4   : > { %5084 = vrsqrt.f32 %v3334_v17 }
0x16de   : > { %v5085_v20 = vpop.eup %5084 }
0x16df   : > { %v3336_v56 = vmul.f32 %v5085_v20, %v3329_v38 }
0x16e1   : > { %v3343_v13 = vmul.f32 %v6094_v6, %v3336_v56 }
0x16e3   : > { %v6103_v16 = vadd.f32 %v6099_v45, %v3343_v13 }
0x16e5   : > { %v3391_v23 = vpack.c.bf16 %v6103_v16, %v6103_v16 }
0x16e7   : > { %3425 = vmatmul.mubr.bf16.vlgmr.msra.gmra.mrb[88].mxu1 %v3391_v23 }
0x16e8   : > { %4852 = vmatprep.mubr.msk.bf16.mxu1 %vm5216_vm0, %v5215_v0 }
0x17ba   : > { %v3426_v22 = vpop.f32.mrb[88].mxu1 }
0x17bb   : > { %v3427_v7 = vadd.f32 %v3426_v22, %v5943_v24  ;;  %v3428_v21 = vpop.f32.mrb[89].mxu1 }
0x17bc   : > { %v3430_v31 = vpop.f32.mrb[90].mxu1  ;;  %v3429_v55 = vadd.f32 %v3428_v21, %v5963_v58 }
0x17bd   : > { %v3434_v26 = vpack.c.bf16 %v3427_v7, %v3427_v7  ;;  %v3431_v18 = vpop.f32.mrb[91].mxu1 }
0x17be   : > { %v6132_v32 = vpack.c.bf16 %v3429_v55, %v3429_v55 }
0x17bf   : > { %3585 = vrot.lane.b32.xlu1 %v3434_v26, %s5220_s21  ;;  %3485 = vrot.lane.b32.xlu0 %v3434_v26, %s5219_s20  ;;  %v3439_v12 = vsel %vm1018_vm4, %v3434_v26, 0 }
0x17c0   : > { %4845 = vmatpush3.bf16.xpose.msra.mxu0 %v3439_v12  ;;  %v3683_v58 = vsel %vm703_vm1, %v6132_v32, 0 }
0x17c1   : > { %4856 = vmatprep.subr.bf16.mxu0 %v5215_v0 }
0x17c3   : > { %3482 = vrot.lane.b32.xlu0 %v3433_v27, %s5219_s20 }
0x17c7   : > { %3535 = vrot.lane.b32.xlu0 %v3434_v26, %s5218_s24  ;;  %4847 = vmatmul.mubr.msk.bf16.vlgmr.msra.gmra.mrb[92].mxu0 %vm1018_vm4, %v3433_v27 }
0x17c8   : > { %4858 = vmatprep.mubr.msk.bf16.mxu0 %vm5216_vm0, %v5215_v0 }
0x17cb   : > { %3533 = vrot.lane.b32.xlu0 %v3433_v27, %s5218_s24 }
0x17cf   : > { %3583 = vrot.lane.b32.xlu0 %v3433_v27, %s5220_s21 }
0x1831   : > { %v3486_v63 = vpop.permute.xlu0 %3485  ;;  %v3586_v29 = vpop.permute.xlu1 %3585 }
0x1832   : > { %v3491_v24 = vsel %vm1018_vm4, %v3486_v63, 0  ;;  %v3591_v42 = vsel %vm1018_vm4, %v3586_v29, 0 }
0x1833   : > { %4851 = vmatpush3.bf16.xpose.msra.mxu1 %v3491_v24 }
0x1834   : > { %4862 = vmatprep.subr.bf16.mxu1 %v5215_v0 }
0x1835   : > { %v3483_v28 = vpop.permute.xlu0 %3482 }
0x1839   : > { %v3536_v50 = vpop.permute.xlu0 %3535 }
0x183a   : > { %v3541_v48 = vsel %vm1018_vm4, %v3536_v50, 0  ;;  %4853 = vmatmul.mubr.msk.bf16.vlgmr.msra.gmra.mrb[92].mxu1 %vm1018_vm4, %v3483_v28 }
0x183b   : > { %4857 = vmatpush3.bf16.xpose.msra.mxu0 %v3541_v48  ;;  %4863 = vmatpush3.bf16.xpose.msra.mxu1 %v3591_v42 }
0x183c   : > { %4864 = vmatprep.mubr.msk.bf16.mxu1 %vm5216_vm0, %v5215_v0  ;;  %4868 = vmatprep.subr.bf16.mxu0 %v5215_v0 }
0x183d   : > { %v3534_v59 = vpop.permute.xlu0 %3533  ;;  %4874 = vmatprep.subr.bf16.mxu1 %v5215_v0 }
0x1841   : > { %v3584_v30 = vpop.permute.xlu0 %3583 }
0x1842   : > { %4859 = vmatmul.mubr.msk.bf16.vlgmr.msra.gmra.mrb[96].mxu0 %vm1018_vm4, %v3534_v59  ;;  %4865 = vmatmul.mubr.msk.bf16.vlgmr.msra.gmra.mrb[96].mxu1 %vm1018_vm4, %v3584_v30 }
0x1843   : > { %4869 = vmatpush3.bf16.msra.mxu0 %v3683_v58  ;;  %4876 = vmatprep.mubr.msk.bf16.mxu1 %vm5216_vm0, %v5215_v0 }
0x1844   : > { %4870 = vmatprep.mubr.msk.bf16.mxu0 %vm5216_vm0, %v5215_v0  ;;  %4880 = vmatprep.subr.bf16.mxu0 %v5215_v0 }
0x189a   : > { %v3475_v41 = vpop.f32.mrb[92].mxu0 }
0x189b   : > { %v4848_v37 = vpop.f32.mrb[93].mxu0  ;;  %v3633_v11 = vsel %vm1971_vm8, %v3475_v41, -inf }
0x189c   : > { %v3478_v46 = vpop.f32.mrb[94].mxu0 }
0x189d   : > { %v4849_v34 = vpop.f32.mrb[95].mxu0 }
0x190d   : > { %v3527_v1 = vpop.f32.mrb[92].mxu1 }
0x190e   : > { %v4854_v44 = vpop.f32.mrb[93].mxu1  ;;  %v3636_v47 = vsel %vm1971_vm8, %v3527_v1, -inf }
0x190f   : > { %3637 = vmax.xlane.f32.xlu0 %v3636_v47  ;;  %v3530_v52 = vpop.f32.mrb[94].mxu1 }
0x1910   : > { %v4855_v53 = vpop.f32.mrb[95].mxu1 }
0x1915   : > { %v3577_v25 = vpop.f32.mrb[96].mxu0  ;;  %v3627_v51 = vpop.f32.mrb[96].mxu1 }
0x1916   : > { %v4860_v54 = vpop.f32.mrb[97].mxu0  ;;  %v4866_v10 = vpop.f32.mrb[97].mxu1  ;;  %v3642_v4 = vsel %vm1971_vm8, %v3627_v51, -inf  ;;  %v3639_v15 = vsel %vm1971_vm8, %v3577_v25, -inf }
0x1917   : > { %v3580_v14 = vpop.f32.mrb[98].mxu0  ;;  %v3630_v60 = vpop.f32.mrb[98].mxu1 }
0x1918   : > { %v4861_v61 = vpop.f32.mrb[99].mxu0  ;;  %v4867_v49 = vpop.f32.mrb[99].mxu1 }
0x1925   : > { %3728 = vrot.lane.b32.xlu0 %v6132_v32, %s5219_s20 }
0x1944   : > { %3643 = vmax.xlane.f32.xlu0 %v3642_v4 }
0x195a   : > { %3958 = vrot.lane.b32.xlu0 %v6132_v32, %s5220_s21 }
0x199c   : > { %v3638_v3 = vpop.xlane.xlu0 %3637 }
0x199d   : > { %v3646_v35 = vsub.f32 %v3527_v1, %v3638_v3 }
0x199f   : > { %v3651_v40 = vmul.f32 1.442695, %v3646_v35 }
0x19a0   : > { %v3729_v9 = vpop.permute.xlu0 %3728 }
0x19a1   : > { %5086 = vpow2.f32 %v3651_v40  ;;  %v3734_v43 = vsel %vm703_vm1, %v3729_v9, 0 }
0x19a2   : > { %4875 = vmatpush3.bf16.msra.mxu1 %v3734_v43 }
0x19a3   : > { %4886 = vmatprep.subr.bf16.mxu1 %v5215_v0 }
0x19ab   : > { %v5087_v38 = vpop.eup %5086 }
0x19ac   : > { %v3660_v5 = vsel %vm1971_vm8, %v5087_v38, 0.0 }
0x19ad   : > { %3661 = vadd.xlane.f32.xlu1 %v3660_v5 }
0x19b1   : > { %3634 = vmax.xlane.f32.xlu1 %v3633_v11 }
0x19b5   : > { %3640 = vmax.xlane.f32.xlu1 %v3639_v15 }
0x19d1   : > { %v3644_v20 = vpop.xlane.xlu0 %3643 }
0x19d2   : > { %v3648_v23 = vsub.f32 %v3627_v51, %v3644_v20 }
0x19d4   : > { %v3655_v36 = vmul.f32 1.442695, %v3648_v23 }
0x19d5   : > { %v3959_v47 = vpop.permute.xlu0 %3958 }
0x1a3a   : > { %v3662_v17 = vpop.xlane.xlu1 %3661 }
0x1a3b   : > { %5088 = vrcp.f32 %v3662_v17 }
0x1a3e   : > { %v3635_v56 = vpop.xlane.xlu1 %3634 }
0x1a3f   : > { %v3645_v13 = vsub.f32 %v3475_v41, %v3635_v56 }
0x1a41   : > { %v3649_v22 = vmul.f32 1.442695, %v3645_v13 }
0x1a42   : > { %v3641_v7 = vpop.xlane.xlu1 %3640 }
0x1a43   : > { %5090 = vpow2.f32 %v3649_v22  ;;  %v3647_v21 = vsub.f32 %v3577_v25, %v3641_v7  ;;  %v3964_v25 = vsel %vm703_vm1, %v3959_v47, 0 }
0x1a45   : > { %v5089_v31 = vpop.eup %5088  ;;  %v3653_v26 = vmul.f32 1.442695, %v3647_v21 }
0x1a46   : > { %v3674_v18 = vmul.f32 %v5089_v31, %v5087_v38 }
0x1a47   : > { %5092 = vpow2.f32 %v3653_v26 }
0x1a48   : > { %v3726_v12 = vpack.c.bf16 %v3674_v18, %v3674_v18  ;;  %5094 = vpow2.f32 %v3655_v36 }
0x1a4a   : > { %4877 = vmatmul.mubr.msk.bf16.vlgmr.msra.gmra.mrb[100].mxu1 %vm1018_vm4, %v3726_v12 }
0x1a4b   : > { %4887 = vmatpush3.bf16.msra.mxu1 %v6033_v2  ;;  %4888 = vmatprep.mubr.msk.bf16.mxu1 %vm5216_vm0, %v5215_v0 }
0x1a4c   : > { %4898 = vmatprep.subr.bf16.mxu1 %v5215_v0 }
0x1a4d   : > { %v5091_v27 = vpop.eup %5090 }
0x1a4e   : > { %v3657_v63 = vsel %vm1971_vm8, %v5091_v27, 0.0 }
0x1a4f   : > { %3658 = vadd.xlane.f32.xlu1 %v3657_v63 }
0x1a51   : > { %v5093_v24 = vpop.eup %5092 }
0x1a52   : > { %v3663_v28 = vsel %vm1971_vm8, %v5093_v24, 0.0  ;;  %v5095_v29 = vpop.eup %5094 }
0x1a53   : > { %3664 = vadd.xlane.f32.xlu1 %v3663_v28  ;;  %v3666_v50 = vsel %vm1971_vm8, %v5095_v29, 0.0 }
0x1a57   : > { %3667 = vadd.xlane.f32.xlu1 %v3666_v50 }
0x1a68   : > { %3864 = vrot.lane.b32.xlu1 %v6132_v32, %s5218_s24 }
0x1adc   : > { %v3659_v2 = vpop.xlane.xlu1 %3658 }
0x1add   : > { %5096 = vrcp.f32 %v3659_v2 }
0x1ae0   : > { %v3665_v59 = vpop.xlane.xlu1 %3664 }
0x1ae1   : > { %5098 = vrcp.f32 %v3665_v59 }
0x1ae4   : > { %v3668_v30 = vpop.xlane.xlu1 %3667 }
0x1ae5   : > { %5100 = vrcp.f32 %v3668_v30 }
0x1ae7   : > { %v5097_v55 = vpop.eup %5096 }
0x1ae8   : > { %v3673_v42 = vmul.f32 %v5097_v55, %v5091_v27  ;;  %v3865_v58 = vpop.permute.xlu1 %3864 }
0x1ae9   : > { %v3870_v1 = vsel %vm703_vm1, %v3865_v58, 0 }
0x1aea   : > { %v3678_v48 = vpack.c.bf16 %v3673_v42, %v3673_v42 }
0x1aeb   : > { %v5099_v46 = vpop.eup %5098 }
0x1aec   : > { %4871 = vmatmul.mubr.msk.bf16.vlgmr.msra.gmra.mrb[100].mxu0 %vm1018_vm4, %v3678_v48 }
0x1aed   : > { %4881 = vmatpush3.bf16.msra.mxu0 %v6004_v57  ;;  %4882 = vmatprep.mubr.msk.bf16.mxu0 %vm5216_vm0, %v5215_v0  ;;  %v3675_v57 = vmul.f32 %v5099_v46, %v5093_v24 }
0x1aee   : > { %4892 = vmatprep.subr.bf16.mxu0 %v5215_v0 }
0x1aef   : > { %v3863_v52 = vpack.c.bf16 %v3675_v57, %v3675_v57  ;;  %v5101_v53 = vpop.eup %5100  ;;  %v4072_v57 = vmul.f32 %v5717_v62, %v6103_v16 }
0x1af0   : > { %v3676_v51 = vmul.f32 %v5101_v53, %v5095_v29 }
0x1af2   : > { %v3957_v54 = vpack.c.bf16 %v3676_v51, %v3676_v51 }
0x1b1d   : > { %v3770_v32 = vpop.f32.mrb[100].mxu1 }
0x1b1e   : > { %v3776_v41 = vpack.c.bf16 %v3770_v32, %v3770_v32  ;;  %v4878_v37 = vpop.f32.mrb[101].mxu1 }
0x1b1f   : > { %v3773_v34 = vpop.f32.mrb[102].mxu1 }
0x1b20   : > { %v4879_v44 = vpop.f32.mrb[103].mxu1  ;;  %4883 = vmatmul.mubr.msk.bf16.vlgmr.msra.gmra.mrb[104].mxu0 %vm1018_vm4, %v3776_v41 }
0x1b21   : > { %4893 = vmatpush3.bf16.msra.mxu0 %v3870_v1  ;;  %4894 = vmatprep.mubr.msk.bf16.mxu0 %vm5216_vm0, %v5215_v0 }
0x1b22   : > { %4904 = vmatprep.subr.bf16.mxu0 %v5215_v0 }
0x1b28   : > { %4895 = vmatmul.mubr.msk.bf16.vlgmr.msra.gmra.mrb[108].mxu0 %vm1018_vm4, %v3863_v52 }
0x1b29   : > { %4905 = vmatpush3.bf16.msra.mxu0 %v3964_v25  ;;  %4906 = vmatprep.mubr.msk.bf16.mxu0 %vm5216_vm0, %v5215_v0 }
0x1b30   : > { %4907 = vmatmul.mubr.msk.bf16.vlgmr.msra.gmra.mrb[112].mxu0 %vm1018_vm4, %v3957_v54 }
0x1bbf   : > { %v3719_v10 = vpop.f32.mrb[100].mxu0 }
0x1bc0   : > { %v3725_v14 = vpack.c.bf16 %v3719_v10, %v3719_v10  ;;  %v4872_v60 = vpop.f32.mrb[101].mxu0 }
0x1bc1   : > { %v3722_v61 = vpop.f32.mrb[102].mxu0 }
0x1bc2   : > { %v4873_v49 = vpop.f32.mrb[103].mxu0  ;;  %4889 = vmatmul.mubr.msk.bf16.vlgmr.msra.gmra.mrb[104].mxu1 %vm1018_vm4, %v3725_v14 }
0x1bc3   : > { %4899 = vmatpush3.bf16.msra.mxu1 %v6049_v19  ;;  %4900 = vmatprep.mubr.msk.bf16.mxu1 %vm5216_vm0, %v5215_v0 }
0x1bc4   : > { %4910 = vmatprep.subr.bf16.mxu1 %v5215_v0 }
0x1bf3   : > { %v3814_v4 = vpop.f32.mrb[104].mxu0 }
0x1bf4   : > { %v4884_v3 = vpop.f32.mrb[105].mxu0 }
0x1bf5   : > { %v3817_v35 = vpop.f32.mrb[106].mxu0 }
0x1bf6   : > { %v4885_v40 = vpop.f32.mrb[107].mxu0 }
0x1bfb   : > { %v3906_v9 = vpop.f32.mrb[108].mxu0 }
0x1bfc   : > { %v3912_v43 = vpack.c.bf16 %v3906_v9, %v3906_v9  ;;  %v4896_v38 = vpop.f32.mrb[109].mxu0 }
0x1bfd   : > { %v3909_v5 = vpop.f32.mrb[110].mxu0 }
0x1bfe   : > { %v4897_v11 = vpop.f32.mrb[111].mxu0  ;;  %4901 = vmatmul.mubr.msk.bf16.vlgmr.msra.gmra.mrb[108].mxu1 %vm1018_vm4, %v3912_v43  ;;  %v4392_v43 = vld [vmem:[%s6259_s18] ss:$0 sm:$0xff] }
0x1bff   : > { %4911 = vmatpush3.bf16.msra.mxu1 %v6057_v33  ;;  %4912 = vmatprep.mubr.msk.bf16.mxu1 %vm5216_vm0, %v5215_v0 }
0x1c03   : > { %v4000_v19 = vpop.f32.mrb[112].mxu0 }
0x1c04   : > { %v4006_v15 = vpack.c.bf16 %v4000_v19, %v4000_v19  ;;  %v4908_v17 = vpop.f32.mrb[113].mxu0 }
0x1c05   : > { %v4003_v20 = vpop.f32.mrb[114].mxu0 }
0x1c06   : > { %v4909_v56 = vpop.f32.mrb[115].mxu0  ;;  %4913 = vmatmul.mubr.msk.bf16.vlgmr.msra.gmra.mrb[112].mxu1 %vm1018_vm4, %v4006_v15 }
0x1c95   : > { %v3857_v13 = vpop.f32.mrb[104].mxu1 }
0x1c96   : > { %v3858_v23 = vadd.f32 %v3857_v13, %v3814_v4  ;;  %v4890_v22 = vpop.f32.mrb[105].mxu1 }
0x1c97   : > { %v3860_v7 = vpop.f32.mrb[106].mxu1 }
0x1c98   : > { %v4891_v21 = vpop.f32.mrb[107].mxu1 }
0x1cd1   : > { %v3950_v31 = vpop.f32.mrb[108].mxu1 }
0x1cd2   : > { %v3956_v36 = vadd.f32 %v3950_v31, %v3858_v23  ;;  %v4902_v26 = vpop.f32.mrb[109].mxu1 }
0x1cd3   : > { %v3953_v18 = vpop.f32.mrb[110].mxu1 }
0x1cd4   : > { %v4903_v33 = vpop.f32.mrb[111].mxu1 }
0x1cd9   : > { %v4044_v12 = vpop.f32.mrb[112].mxu1 }
0x1cda   : > { %v4050_v27 = vadd.f32 %v4044_v12, %v3956_v36  ;;  %v4914_v0 = vpop.f32.mrb[113].mxu1 }
0x1cdb   : > { %v4047_v63 = vpop.f32.mrb[114].mxu1 }
0x1cdc   : > { %v4051_v24 = vadd.f32 %v6085_v8, %v4050_v27  ;;  %v4915_v28 = vpop.f32.mrb[115].mxu1 }
0x1cde   : > { %v4052_v29 = vadd.f32 %v4051_v24, %v5929_v39 }
0x1ce0   : > { %v4053_v50 = vmul.f32 %v5717_v62, %v4052_v29 }
0x1ce2   : > { %v4054_v2 = vsel %vm2393_vm9, %v4053_v50, 0.0 }
0x1ce3   : > { %4055 = vadd.xlane.f32.xlu1 %v4054_v2 }
0x1d70   : > { %v4056_v55 = vpop.xlane.xlu1 %4055 }
0x1d71   : > { %v4057_v42 = vmul.f32 0.03125, %v4056_v55 }
0x1d73   : > { %v4058_v48 = vsub.f32 %v4052_v29, %v4057_v42 }
0x1d75   : > { %v4059_v59 = vmul.f32 %v5717_v62, %v4058_v48 }
0x1d77   : > { %v4060_v30 = vmul.f32 %v4059_v59, %v4059_v59 }
0x1d79   : > { %v4061_v58 = vsel %vm2393_vm9, %v4060_v30, 0.0 }
0x1d7a   : > { %4062 = vadd.xlane.f32.xlu0 %v4061_v58 }
0x1e07   : > { %v4063_v32 = vpop.xlane.xlu0 %4062 }
0x1e08   : > { %v4064_v41 = vmul.f32 0.03125, %v4063_v32 }
0x1e0a   : > { %v4065_v8 = vadd.f32 1e-05, %v4064_v41 }
0x1e0c   : > { %5102 = vrsqrt.f32 %v4065_v8 }
0x1e16   : > { %v5103_v37 = vpop.eup %5102 }
0x1e17   : > { %v4067_v39 = vmul.f32 %v5103_v37, %v4059_v59 }
0x1e19   : > { %v4068_v46 = vmul.f32 %v6094_v6, %v4067_v39 }
0x1e1b   : > { %v4069_v34 = vadd.f32 %v6099_v45, %v4068_v46 }
0x1e1d   : > { %v4102_v1 = vmul.f32 %v5717_v62, %v4069_v34 }
0x1e1f   : > { %v4103_v44 = vsel %vm2393_vm9, %v4102_v1, 0.0 }
0x1e20   : > { %4104 = vadd.xlane.f32.xlu1 %v4103_v44 }
0x1e24   : > { %4073 = vadd.xlane.f32.xlu1 %v4072_v57 }
0x1ead   : > { %v4105_v47 = vpop.xlane.xlu1 %4104 }
0x1eae   : > { %v4106_v52 = vmul.f32 0.03125, %v4105_v47 }
0x1eb0   : > { %v4107_v53 = vsub.f32 %v4069_v34, %v4106_v52 }
0x1eb1   : > { %v4074_v25 = vpop.xlane.xlu1 %4073 }
0x1eb2   : > { %v4075_v51 = vmul.f32 0.03125, %v4074_v25  ;;  %v4108_v6 = vmul.f32 %v5717_v62, %v4107_v53 }
0x1eb4   : > { %v4076_v54 = vsub.f32 %v6103_v16, %v4075_v51  ;;  %v4109_v14 = vmul.f32 %v4108_v6, %v4108_v6 }
0x1eb6   : > { %v4077_v45 = vmul.f32 %v5717_v62, %v4076_v54  ;;  %v4110_v60 = vsel %vm2393_vm9, %v4109_v14, 0.0  ;;  %v4391_v62 = vld [vmem:[%s6236_s14] ss:$0 sm:$0xff] }
0x1eb8   : > { %v4078_v10 = vmul.f32 %v4077_v45, %v4077_v45 }
0x1eba   : > { %4079 = vadd.xlane.f32.xlu1 %v4078_v10 }
0x1ebe   : > { %4111 = vadd.xlane.f32.xlu1 %v4110_v60 }
0x1f47   : > { %v4080_v61 = vpop.xlane.xlu1 %4079 }
0x1f48   : > { %v4081_v49 = vmul.f32 0.03125, %v4080_v61 }
0x1f4a   : > { %v4082_v4 = vadd.f32 1e-05, %v4081_v49 }
0x1f4b   : > { %v4112_v3 = vpop.xlane.xlu1 %4111 }
0x1f4c   : > { %5104 = vrsqrt.f32 %v4082_v4  ;;  %v4113_v35 = vmul.f32 0.03125, %v4112_v3 }
0x1f4e   : > { %v4114_v40 = vadd.f32 1e-05, %v4113_v35 }
0x1f50   : > { %5106 = vrsqrt.f32 %v4114_v40 }
0x1f56   : > { %v5105_v16 = vpop.eup %5104 }
0x1f57   : > { %v4084_v9 = vmul.f32 %v5105_v16, %v4077_v45 }
0x1f59   : > { %v4091_v38 = vmul.f32 %v4391_v62, %v4084_v9 }
0x1f5a   : > { %v5107_v5 = vpop.eup %5106 }
0x1f5b   : > { %v4098_v11 = vadd.f32 %v4392_v43, %v4091_v38  ;;  %v4116_v19 = vmul.f32 %v5107_v5, %v4108_v6 }
0x1f5d   : > { %4099 = vst [vmem:[%s611_s0] sm:$0xff] %v4098_v11  ;;  %v4123_v15 = vmul.f32 %v4391_v62, %v4116_v19 }
0x1f5f   : > { %v4130_v17 = vadd.f32 %v4392_v43, %v4123_v15 }
0x1f61   : > { %4131 = vst [vmem:[%s615_s25] sm:$0x3f] %v4130_v17 }
0x1f62 PF: > { %s6262_s16 = sld [smem:[#allocation9_spill]] }
0x1f68   : > { %s30_s24 = sadd.s32 1, %s6262_s16  }
0x1f69   : > { %p27_p5 = scmp.ge.s32.totalorder %s30_s24, 4  }
0x1f6b   :  { %29 = sbr.rel (!%p27_p5) target bundleno = 8 (0x8), region = 150 }
0x1f72   :  { %4165 = vsyncpa [#allocation3], 1 }
0x1f73   :  { %4167 = vsyncpa [#allocation3 + $0x1], 1 }
0x1f74   :  { %4168 = vsyncpa [#allocation5], 1 }

</bundles_post_ra>
